<compile_context>
chip_gen: v6e
topology: v6e:2x2x1
jax: 0.10.0
libtpu: 0.0.40
codegen_flags: <defaults>
</compile_context>

<pallas_src>
import jax
import jax.numpy as jnp
from jax.experimental import pallas as pl
from jax.experimental.pallas import tpu as pltpu

KSIZE = 5
PAD = 2


def _sigmoid(x):
    return 1.0 / (1.0 + jnp.exp(-x))


def stpn_kernel(x2c_ref, wf_ref, x_ref,
                b1_ref, w2_ref, b2_ref, w3_ref, b3_ref,
                wc1_ref, bc1_ref, wc2_ref, bc2_ref,
                att_ref, score_ref, h1_acc):
    j = pl.program_id(0)

    @pl.when(j == 0)
    def _init():
        h1_acc[...] = jnp.zeros_like(h1_acc)

    # --- fused (conv -> L1) contribution of this K tile: one contiguous bf16 weight
    #     slab per grid step, f32 accumulation in VMEM ---------------------------------
    h1_acc[...] += jnp.dot(x2c_ref[...], wf_ref[...],
                           preferred_element_type=jnp.float32)          # (S, 1024) f32

    @pl.when(j == pl.num_programs(0) - 1)
    def _finalize():
        # --- attention MLP tail: 1024 -> 256 -> ncp, Sigmoid ---------------------------
        h1 = jnp.maximum(h1_acc[...] + b1_ref[...], 0.0)
        h2 = jnp.maximum(
            jnp.dot(h1.astype(jnp.bfloat16), w2_ref[...],
                    preferred_element_type=jnp.float32) + b2_ref[...], 0.0)
        logits = jnp.dot(h2.astype(jnp.bfloat16), w3_ref[...],
                         preferred_element_type=jnp.float32) + b3_ref[...]
        att = _sigmoid(logits)                                           # (S, NCP)
        att_ref[...] = att

        # --- attention-weighted temporal pooling (num_classes == 1) --------------------
        # TODO(synk): per-class pooling for num_classes > 1 — the reference `att * x`
        # broadcast is only well-defined when num_classes == 1 (module default).
        y = jnp.sum(att[:, 0:1] * x_ref[...], axis=0, keepdims=True)     # (1, F) f32

        # --- classifier: F -> 512 -> ncp, Sigmoid --------------------------------------
        c1 = jnp.maximum(
            jnp.dot(y.astype(jnp.bfloat16), wc1_ref[...],
                    preferred_element_type=jnp.float32) + bc1_ref[...], 0.0)
        c2 = jnp.dot(c1.astype(jnp.bfloat16), wc2_ref[...],
                     preferred_element_type=jnp.float32) + bc2_ref[...]
        score_ref[...] = _sigmoid(c2)                                    # (1, NCP)


def _pick_tile(k, cap=1024):
    """Largest multiple of 128 dividing k, capped at `cap`; falls back to k."""
    t = min(cap, k)
    t -= t % 128
    while t >= 128:
        if k % t == 0:
            return t
        t -= 128
    return k


def _pad_cols(a, n):
    return jnp.pad(a, ((0, 0), (0, n - a.shape[1])))


def prepare_params(params):
    """One-time parameter preparation (do NOT call per forward pass):
       fuses Conv1d with L1, folds bconv into b1, casts weights to bf16,
       pads the num_classes axis to a lane-dense multiple of 128."""
    f = params["w1"].shape[0]
    nc = params["w3"].shape[1]
    ncp = ((nc + 127) // 128) * 128
    bf16 = jnp.bfloat16
    f32 = jnp.float32

    wconv2d = params["wconv"].reshape(KSIZE * f, f).astype(f32)          # (5F, F)
    w1_f32 = params["w1"].astype(f32)
    # valid because the module has no nonlinearity between Conv1d and Linear(F,1024)
    wfused = jnp.dot(wconv2d, w1_f32, preferred_element_type=f32)        # (5F, 1024)
    b1_fused = params["b1"].astype(f32) + jnp.dot(params["bconv"].astype(f32), w1_f32)

    return {
        "num_classes": nc,
        "in_features": f,
        "wfused": wfused.astype(bf16),                                   # streamed
        "b1": b1_fused,
        "w2": params["w2"].astype(bf16),  "b2": params["b2"].astype(f32),
        "w3": _pad_cols(params["w3"], ncp).astype(bf16),
        "b3": _pad_cols(params["b3"], ncp).astype(f32),
        "wc1": params["wc1"].astype(bf16), "bc1": params["bc1"].astype(f32),
        "wc2": _pad_cols(params["wc2"], ncp).astype(bf16),
        "bc2": _pad_cols(params["bc2"], ncp).astype(f32),
    }


def _im2col(x_sf):
    """k=5 / pad=2 im2col: column block k holds x shifted by (k - PAD)."""
    S = x_sf.shape[0]
    xpad = jnp.pad(x_sf, ((PAD, PAD), (0, 0)))
    return jnp.concatenate([xpad[k:k + S] for k in range(KSIZE)], axis=1)  # (S, 5F)


def stpn_forward(x, prep, *, tk=None):
    """x: (1, S, F) float32; prep: output of prepare_params. Returns (att, score)."""
    x_sf = x[0].astype(jnp.float32)
    S, F = x_sf.shape
    nc = prep["num_classes"]
    assert nc == 1, "pooling path implemented for num_classes == 1 (module default)"
    assert prep["in_features"] == F
    ncp = prep["w3"].shape[1]
    K = KSIZE * F

    tk = tk if tk is not None else _pick_tile(K, cap=1024)
    assert K % tk == 0

    # per-call activation prep (small): im2col, bf16 for the MXU operand
    x2c = _im2col(x_sf).astype(jnp.bfloat16)                              # (S, 5F) bf16

    grid = (K // tk,)
    const = lambda j: (0, 0)

    in_specs = [
        pl.BlockSpec((S, tk), lambda j: (0, j)),        # x2c K-tile (streamed, bf16)
        pl.BlockSpec((tk, 1024), lambda j: (j, 0)),     # Wfused row-tile (contiguous DMA)
        pl.BlockSpec((S, F), const),                    # x f32 (resident, pooling)
        pl.BlockSpec((1, 1024), const),                 # b1 (fused)
        pl.BlockSpec((1024, 256), const),               # W2
        pl.BlockSpec((1, 256), const),                  # b2
        pl.BlockSpec((256, ncp), const),                # W3
        pl.BlockSpec((1, ncp), const),                  # b3
        pl.BlockSpec((F, 512), const),                  # Wc1
        pl.BlockSpec((1, 512), const),                  # bc1
        pl.BlockSpec((512, ncp), const),                # Wc2
        pl.BlockSpec((1, ncp), const),                  # bc2
    ]
    out_specs = (
        pl.BlockSpec((S, ncp), const),                  # att
        pl.BlockSpec((1, ncp), const),                  # score
    )

    # VMEM accounting: 2x (double-buffered streamed tiles) + 1x residents/outputs/scratch
    streamed = S * tk * 2 + tk * 1024 * 2
    resident = (S * F * 4 + 1024 * 4
                + 1024 * 256 * 2 + 256 * 4 + 256 * ncp * 2 + ncp * 4
                + F * 512 * 2 + 512 * 4 + 512 * ncp * 2 + ncp * 4
                + (S * ncp + ncp) * 4                   # outputs
                + S * 1024 * 4)                         # h1 accumulator scratch
    need = 2 * streamed + resident + (2 << 20)
    try:
        phys = pltpu.get_tpu_info().vmem_capacity_bytes
        cap = int(phys * 3 // 4)                        # 48 MiB on v7x, ~96 MiB on v5e/v6e
    except Exception:
        cap = 48 << 20
    vmem_limit = int(min(cap, max(need, 16 << 20)))

    flops = 2 * S * (K * 1024 + 1024 * 256 + 256 * ncp) + 2 * (F * 512 + 512 * ncp)
    operands = (x2c, prep["wfused"], x_sf,
                prep["b1"], prep["w2"], prep["b2"], prep["w3"], prep["b3"],
                prep["wc1"], prep["bc1"], prep["wc2"], prep["bc2"])
    bytes_accessed = sum(int(a.size) * a.dtype.itemsize for a in operands) \
        + (S * ncp + ncp) * 4

    att_p, score_p = pl.pallas_call(
        stpn_kernel,
        out_shape=(jax.ShapeDtypeStruct((S, ncp), jnp.float32),
                   jax.ShapeDtypeStruct((1, ncp), jnp.float32)),
        grid_spec=pltpu.PrefetchScalarGridSpec(
            num_scalar_prefetch=0,
            grid=grid,
            in_specs=in_specs,
            out_specs=out_specs,
            scratch_shapes=[pltpu.VMEM((S, 1024), jnp.float32)],   # h1 pre-activation acc
        ),
        compiler_params=pltpu.CompilerParams(
            # the single grid axis is the K-reduction for h1 -> must stay "arbitrary"
            dimension_semantics=("arbitrary",),
            vmem_limit_bytes=vmem_limit,
        ),
        cost_estimate=pl.CostEstimate(
            flops=int(flops),
            transcendentals=int((S + 1) * ncp),
            bytes_accessed=int(bytes_accessed),
        ),
    )(*operands)

    return att_p[:, :nc], score_p[:, :nc]


def make_params(key, in_features, num_classes):
    ks = jax.random.split(key, 7)
    f = in_features

    def xavier(k, fan_in, fan_out):
        std = (2.0 / (fan_in + fan_out)) ** 0.5
        return std * jax.random.normal(k, (fan_in, fan_out), jnp.float32)

    return {
        # conv weight stored as (k, c_in, c_out); flattened to (5F, F) for im2col matmul
        "wconv": (1.0 / (f * KSIZE) ** 0.5)
                 * jax.random.normal(ks[0], (KSIZE, f, f), jnp.float32),
        "bconv": jnp.zeros((1, f), jnp.float32),
        "w1": xavier(ks[1], f, 1024),     "b1": jnp.zeros((1, 1024), jnp.float32),
        "w2": xavier(ks[2], 1024, 256),   "b2": jnp.zeros((1, 256), jnp.float32),
        "w3": xavier(ks[3], 256, num_classes),
        "b3": jnp.zeros((1, num_classes), jnp.float32),
        "wc1": xavier(ks[4], f, 512),     "bc1": jnp.zeros((1, 512), jnp.float32),
        "wc2": xavier(ks[5], 512, num_classes),
        "bc2": jnp.zeros((1, num_classes), jnp.float32),
    }


def stpn_reference_fused(x, prep):
    """Pure-JAX mirror of the kernel's exact math (bf16 fused weights, f32 accum)."""
    x_sf = x[0].astype(jnp.float32)
    nc = prep["num_classes"]
    bf = lambda a: a.astype(jnp.bfloat16)
    x2c = bf(_im2col(x_sf))
    h1 = jax.nn.relu(jnp.dot(x2c, prep["wfused"],
                             preferred_element_type=jnp.float32) + prep["b1"])
    h2 = jax.nn.relu(jnp.dot(bf(h1), prep["w2"],
                             preferred_element_type=jnp.float32) + prep["b2"])
    att = jax.nn.sigmoid(jnp.dot(bf(h2), prep["w3"],
                                 preferred_element_type=jnp.float32) + prep["b3"])[:, :nc]
    y = jnp.sum(att * x_sf, axis=0, keepdims=True)
    c1 = jax.nn.relu(jnp.dot(bf(y), prep["wc1"],
                             preferred_element_type=jnp.float32) + prep["bc1"])
    score = jax.nn.sigmoid(jnp.dot(bf(c1), prep["wc2"],
                                   preferred_element_type=jnp.float32) + prep["bc2"])[:, :nc]
    return att, score


def stpn_reference_f32(x, p):
    """Original module semantics (unfused, full f32) — loose sanity check on the fusion."""
    x_sf = x[0].astype(jnp.float32)
    f = x_sf.shape[1]
    conv = jnp.dot(_im2col(x_sf), p["wconv"].reshape(KSIZE * f, f)) + p["bconv"]
    h1 = jax.nn.relu(jnp.dot(conv, p["w1"]) + p["b1"])
    h2 = jax.nn.relu(jnp.dot(h1, p["w2"]) + p["b2"])
    att = jax.nn.sigmoid(jnp.dot(h2, p["w3"]) + p["b3"])
    y = jnp.sum(att * x_sf, axis=0, keepdims=True)          # num_classes == 1
    c1 = jax.nn.relu(jnp.dot(y, p["wc1"]) + p["bc1"])
    score = jax.nn.sigmoid(jnp.dot(c1, p["wc2"]) + p["bc2"])
    return att, score


if __name__ == "__main__":
    IN_FEATURES = 512   # small stand-in for the module's default 2048
    SEQ = 8
    NUM_CLASSES = 1

    key = jax.random.PRNGKey(0)
    k_x, k_p = jax.random.split(key)
    x = jax.random.normal(k_x, (1, SEQ, IN_FEATURES), jnp.float32)
    params = make_params(k_p, IN_FEATURES, NUM_CLASSES)

    # one-time prep: Wconv@W1 fusion, bf16 cast, lane padding
    prep = jax.block_until_ready(prepare_params(params))

    # tk=512 -> 5-step grid: exercises the weight-streaming / accumulator pipeline.
    att, score = jax.block_until_ready(stpn_forward(x, prep, tk=512))

    att_m, score_m = stpn_reference_fused(x, prep)
    att_f, score_f = stpn_reference_f32(x, params)

    assert att.shape == (SEQ, NUM_CLASSES) and score.shape == (1, NUM_CLASSES)
    # tight check vs. exact bf16-mirrored math
    assert jnp.allclose(att, att_m, atol=5e-3, rtol=5e-3)
    assert jnp.allclose(score, score_m, atol=5e-3, rtol=5e-3)
    # loose check vs. original unfused f32 module semantics (validates the fusion)
    assert jnp.allclose(att, att_f, atol=1e-1, rtol=1e-1)
    assert jnp.allclose(score, score_f, atol=1e-1, rtol=1e-1)
    print("KERNEL_OK")
</pallas_src>

<mosaic_0001>
module attributes {stable_mosaic.version = 11 : i64} {
  func.func @stpn_kernel(%arg0: i32, %arg1: memref<8x512xbf16, #tpu.memory_space<vmem>>, %arg2: memref<512x1024xbf16, #tpu.memory_space<vmem>>, %arg3: memref<8x512xf32, #tpu.memory_space<vmem>>, %arg4: memref<1x1024xf32, #tpu.memory_space<vmem>>, %arg5: memref<1024x256xbf16, #tpu.memory_space<vmem>>, %arg6: memref<1x256xf32, #tpu.memory_space<vmem>>, %arg7: memref<256x128xbf16, #tpu.memory_space<vmem>>, %arg8: memref<1x128xf32, #tpu.memory_space<vmem>>, %arg9: memref<512x512xbf16, #tpu.memory_space<vmem>>, %arg10: memref<1x512xf32, #tpu.memory_space<vmem>>, %arg11: memref<512x128xbf16, #tpu.memory_space<vmem>>, %arg12: memref<1x128xf32, #tpu.memory_space<vmem>>, %arg13: memref<8x128xf32, #tpu.memory_space<vmem>>, %arg14: memref<1x128xf32, #tpu.memory_space<vmem>>, %arg15: memref<8x1024xf32, #tpu.memory_space<vmem>>) attributes {dimension_semantics = [#tpu.dimension_semantics<arbitrary>], iteration_bounds = array<i64: 5>, scalar_prefetch = 0 : i64, scratch_operands = 1 : i64, tpu.core_type = #tpu.core_type<tc>, window_params = [{transform_indices = @transform_0, window_bounds = array<i64: 8, 512>}, {transform_indices = @transform_1, window_bounds = array<i64: 512, 1024>}, {pipeline_mode = #tpu.pipeline_mode<synchronous>, transform_indices = @transform_2, window_bounds = array<i64: 8, 512>}, {pipeline_mode = #tpu.pipeline_mode<synchronous>, transform_indices = @transform_3, window_bounds = array<i64: 1, 1024>}, {pipeline_mode = #tpu.pipeline_mode<synchronous>, transform_indices = @transform_4, window_bounds = array<i64: 1024, 256>}, {pipeline_mode = #tpu.pipeline_mode<synchronous>, transform_indices = @transform_5, window_bounds = array<i64: 1, 256>}, {pipeline_mode = #tpu.pipeline_mode<synchronous>, transform_indices = @transform_6, window_bounds = array<i64: 256, 128>}, {pipeline_mode = #tpu.pipeline_mode<synchronous>, transform_indices = @transform_7, window_bounds = array<i64: 1, 128>}, {pipeline_mode = #tpu.pipeline_mode<synchronous>, transform_indices = @transform_8, window_bounds = array<i64: 512, 512>}, {pipeline_mode = #tpu.pipeline_mode<synchronous>, transform_indices = @transform_9, window_bounds = array<i64: 1, 512>}, {pipeline_mode = #tpu.pipeline_mode<synchronous>, transform_indices = @transform_10, window_bounds = array<i64: 512, 128>}, {pipeline_mode = #tpu.pipeline_mode<synchronous>, transform_indices = @transform_11, window_bounds = array<i64: 1, 128>}, {pipeline_mode = #tpu.pipeline_mode<synchronous>, transform_indices = @transform_12, window_bounds = array<i64: 8, 128>}, {pipeline_mode = #tpu.pipeline_mode<synchronous>, transform_indices = @transform_13, window_bounds = array<i64: 1, 128>}]} {
    %c0_i32 = arith.constant 0 : i32
    %0 = arith.cmpi eq, %arg0, %c0_i32 : i32
    %1 = arith.extui %0 : i1 to i32
    %c0_i32_0 = arith.constant 0 : i32
    %2 = arith.cmpi ne, %1, %c0_i32_0 : i32
    scf.if %2 {
      %cst_9 = arith.constant 0.000000e+00 : f32
      %12 = vector.broadcast %cst_9 : f32 to vector<8x1024xf32>
      %c0_10 = arith.constant 0 : index
      %c0_11 = arith.constant 0 : index
      %13 = vector.load %arg15[%c0_10, %c0_11] : memref<8x1024xf32, #tpu.memory_space<vmem>>, vector<8x1024xf32>
      tpu.vector_store %arg15[%c0_10, %c0_11], %12 {strides = array<i32>} : memref<8x1024xf32, #tpu.memory_space<vmem>>, vector<8x1024xf32>,
    } else {
    }
    %c0 = arith.constant 0 : index
    %c0_1 = arith.constant 0 : index
    %3 = vector.load %arg15[%c0, %c0_1] : memref<8x1024xf32, #tpu.memory_space<vmem>>, vector<8x1024xf32>
    %c0_2 = arith.constant 0 : index
    %c0_3 = arith.constant 0 : index
    %4 = vector.load %arg1[%c0_2, %c0_3] : memref<8x512xbf16, #tpu.memory_space<vmem>>, vector<8x512xbf16>
    %c0_4 = arith.constant 0 : index
    %c0_5 = arith.constant 0 : index
    %5 = vector.load %arg2[%c0_4, %c0_5] : memref<512x1024xbf16, #tpu.memory_space<vmem>>, vector<512x1024xbf16>
    %cst = arith.constant dense<0.000000e+00> : vector<8x1024xf32>
    %6 = tpu.matmul %4, %5, %cst {dimension_numbers = #tpu.dot_dimension_numbers<[1], [0], [0], [1], [0, 0, 1, 1], [], []>} : vector<8x512xbf16>, vector<512x1024xbf16>, vector<8x1024xf32> -> vector<8x1024xf32>
    %7 = arith.addf %3, %6 : vector<8x1024xf32>
    %c0_6 = arith.constant 0 : index
    %c0_7 = arith.constant 0 : index
    %8 = vector.load %arg15[%c0_6, %c0_7] : memref<8x1024xf32, #tpu.memory_space<vmem>>, vector<8x1024xf32>
    tpu.vector_store %arg15[%c0_6, %c0_7], %7 {strides = array<i32>} : memref<8x1024xf32, #tpu.memory_space<vmem>>, vector<8x1024xf32>,
    %c4_i32 = arith.constant 4 : i32
    %9 = arith.cmpi eq, %arg0, %c4_i32 : i32
    %10 = arith.extui %9 : i1 to i32
    %c0_i32_8 = arith.constant 0 : i32
    %11 = arith.cmpi ne, %10, %c0_i32_8 : i32
    scf.if %11 {
      %c0_9 = arith.constant 0 : index
      %c0_10 = arith.constant 0 : index
      %12 = vector.load %arg15[%c0_9, %c0_10] : memref<8x1024xf32, #tpu.memory_space<vmem>>, vector<8x1024xf32>
      %c0_11 = arith.constant 0 : index
      %c0_12 = arith.constant 0 : index
      %13 = vector.load %arg4[%c0_11, %c0_12] : memref<1x1024xf32, #tpu.memory_space<vmem>>, vector<1x1024xf32>
      %14 = vector.broadcast %13 : vector<1x1024xf32> to vector<8x1024xf32>
      %15 = arith.addf %12, %14 : vector<8x1024xf32>
      %cst_13 = arith.constant 0.000000e+00 : f32
      %16 = vector.broadcast %cst_13 : f32 to vector<8x1024xf32>
      %17 = arith.maximumf %15, %16 : vector<8x1024xf32>
      %18 = arith.truncf %17 : vector<8x1024xf32> to vector<8x1024xbf16>
      %c0_14 = arith.constant 0 : index
      %c0_15 = arith.constant 0 : index
      %19 = vector.load %arg5[%c0_14, %c0_15] : memref<1024x256xbf16, #tpu.memory_space<vmem>>, vector<1024x256xbf16>
      %cst_16 = arith.constant dense<0.000000e+00> : vector<8x256xf32>
      %20 = tpu.matmul %18, %19, %cst_16 {dimension_numbers = #tpu.dot_dimension_numbers<[1], [0], [0], [1], [0, 0, 1, 1], [], []>} : vector<8x1024xbf16>, vector<1024x256xbf16>, vector<8x256xf32> -> vector<8x256xf32>
      %c0_17 = arith.constant 0 : index
      %c0_18 = arith.constant 0 : index
      %21 = vector.load %arg6[%c0_17, %c0_18] : memref<1x256xf32, #tpu.memory_space<vmem>>, vector<1x256xf32>
      %22 = vector.broadcast %21 : vector<1x256xf32> to vector<8x256xf32>
      %23 = arith.addf %20, %22 : vector<8x256xf32>
      %cst_19 = arith.constant 0.000000e+00 : f32
      %24 = vector.broadcast %cst_19 : f32 to vector<8x256xf32>
      %25 = arith.maximumf %23, %24 : vector<8x256xf32>
      %26 = arith.truncf %25 : vector<8x256xf32> to vector<8x256xbf16>
      %c0_20 = arith.constant 0 : index
      %c0_21 = arith.constant 0 : index
      %27 = vector.load %arg7[%c0_20, %c0_21] : memref<256x128xbf16, #tpu.memory_space<vmem>>, vector<256x128xbf16>
      %cst_22 = arith.constant dense<0.000000e+00> : vector<8x128xf32>
      %28 = tpu.matmul %26, %27, %cst_22 {dimension_numbers = #tpu.dot_dimension_numbers<[1], [0], [0], [1], [0, 0, 1, 1], [], []>} : vector<8x256xbf16>, vector<256x128xbf16>, vector<8x128xf32> -> vector<8x128xf32>
      %c0_23 = arith.constant 0 : index
      %c0_24 = arith.constant 0 : index
      %29 = vector.load %arg8[%c0_23, %c0_24] : memref<1x128xf32, #tpu.memory_space<vmem>>, vector<1x128xf32>
      %30 = vector.broadcast %29 : vector<1x128xf32> to vector<8x128xf32>
      %31 = arith.addf %28, %30 : vector<8x128xf32>
      %cst_25 = arith.constant 0.000000e+00 : f32
      %32 = vector.broadcast %cst_25 : f32 to vector<8x128xf32>
      %33 = arith.subf %32, %31 : vector<8x128xf32>
      %34 = math.exp %33 : vector<8x128xf32>
      %cst_26 = arith.constant 1.000000e+00 : f32
      %35 = vector.broadcast %cst_26 : f32 to vector<8x128xf32>
      %36 = arith.addf %35, %34 : vector<8x128xf32>
      %cst_27 = arith.constant 1.000000e+00 : f32
      %37 = vector.broadcast %cst_27 : f32 to vector<8x128xf32>
      %38 = arith.divf %37, %36 : vector<8x128xf32>
      %c0_28 = arith.constant 0 : index
      %c0_29 = arith.constant 0 : index
      %39 = vector.load %arg13[%c0_28, %c0_29] : memref<8x128xf32, #tpu.memory_space<vmem>>, vector<8x128xf32>
      tpu.vector_store %arg13[%c0_28, %c0_29], %38 {strides = array<i32>} : memref<8x128xf32, #tpu.memory_space<vmem>>, vector<8x128xf32>,
      %40 = vector.extract_strided_slice %38 {offsets = [0, 0], sizes = [8, 1], strides = [1, 1]} : vector<8x128xf32> to vector<8x1xf32>
      %c0_30 = arith.constant 0 : index
      %c0_31 = arith.constant 0 : index
      %41 = vector.load %arg3[%c0_30, %c0_31] : memref<8x512xf32, #tpu.memory_space<vmem>>, vector<8x512xf32>
      %42 = vector.broadcast %40 : vector<8x1xf32> to vector<8x512xf32>
      %43 = arith.mulf %42, %41 : vector<8x512xf32>
      %cst_32 = arith.constant dense<0.000000e+00> : vector<512xf32>
      %44 = vector.multi_reduction <add>, %43, %cst_32 [0] : vector<8x512xf32> to vector<512xf32>
      %45 = vector.shape_cast %44 : vector<512xf32> to vector<1x512xf32>
      %46 = arith.truncf %45 : vector<1x512xf32> to vector<1x512xbf16>
      %c0_33 = arith.constant 0 : index
      %c0_34 = arith.constant 0 : index
      %47 = vector.load %arg9[%c0_33, %c0_34] : memref<512x512xbf16, #tpu.memory_space<vmem>>, vector<512x512xbf16>
      %cst_35 = arith.constant dense<0.000000e+00> : vector<1x512xf32>
      %48 = tpu.matmul %46, %47, %cst_35 {dimension_numbers = #tpu.dot_dimension_numbers<[1], [0], [0], [1], [0, 0, 1, 1], [], []>} : vector<1x512xbf16>, vector<512x512xbf16>, vector<1x512xf32> -> vector<1x512xf32>
      %c0_36 = arith.constant 0 : index
      %c0_37 = arith.constant 0 : index
      %49 = vector.load %arg10[%c0_36, %c0_37] : memref<1x512xf32, #tpu.memory_space<vmem>>, vector<1x512xf32>
      %50 = arith.addf %48, %49 : vector<1x512xf32>
      %cst_38 = arith.constant 0.000000e+00 : f32
      %51 = vector.broadcast %cst_38 : f32 to vector<1x512xf32>
      %52 = arith.maximumf %50, %51 : vector<1x512xf32>
      %53 = arith.truncf %52 : vector<1x512xf32> to vector<1x512xbf16>
      %c0_39 = arith.constant 0 : index
      %c0_40 = arith.constant 0 : index
      %54 = vector.load %arg11[%c0_39, %c0_40] : memref<512x128xbf16, #tpu.memory_space<vmem>>, vector<512x128xbf16>
      %cst_41 = arith.constant dense<0.000000e+00> : vector<1x128xf32>
      %55 = tpu.matmul %53, %54, %cst_41 {dimension_numbers = #tpu.dot_dimension_numbers<[1], [0], [0], [1], [0, 0, 1, 1], [], []>} : vector<1x512xbf16>, vector<512x128xbf16>, vector<1x128xf32> -> vector<1x128xf32>
      %c0_42 = arith.constant 0 : index
      %c0_43 = arith.constant 0 : index
      %56 = vector.load %arg12[%c0_42, %c0_43] : memref<1x128xf32, #tpu.memory_space<vmem>>, vector<1x128xf32>
      %57 = arith.addf %55, %56 : vector<1x128xf32>
      %cst_44 = arith.constant 0.000000e+00 : f32
      %58 = vector.broadcast %cst_44 : f32 to vector<1x128xf32>
      %59 = arith.subf %58, %57 : vector<1x128xf32>
      %60 = math.exp %59 : vector<1x128xf32>
      %cst_45 = arith.constant 1.000000e+00 : f32
      %61 = vector.broadcast %cst_45 : f32 to vector<1x128xf32>
      %62 = arith.addf %61, %60 : vector<1x128xf32>
      %cst_46 = arith.constant 1.000000e+00 : f32
      %63 = vector.broadcast %cst_46 : f32 to vector<1x128xf32>
      %64 = arith.divf %63, %62 : vector<1x128xf32>
      %c0_47 = arith.constant 0 : index
      %c0_48 = arith.constant 0 : index
      %65 = vector.load %arg14[%c0_47, %c0_48] : memref<1x128xf32, #tpu.memory_space<vmem>>, vector<1x128xf32>
      tpu.vector_store %arg14[%c0_47, %c0_48], %64 {strides = array<i32>} : memref<1x128xf32, #tpu.memory_space<vmem>>, vector<1x128xf32>,
    } else {
    }
    return
  }
  func.func @transform_0(%arg0: i32) -> (i32, i32) {
    %c0_i32 = arith.constant 0 : i32
    %c0_i32_0 = arith.constant 0 : i32
    return %c0_i32, %arg0 : i32, i32
  }
  func.func @transform_1(%arg0: i32) -> (i32, i32) {
    %c0_i32 = arith.constant 0 : i32
    %c0_i32_0 = arith.constant 0 : i32
    return %arg0, %c0_i32 : i32, i32
  }
  func.func @transform_2(%arg0: i32) -> (i32, i32) {
    %c0_i32 = arith.constant 0 : i32
    %c0_i32_0 = arith.constant 0 : i32
    %c0_i32_1 = arith.constant 0 : i32
    return %c0_i32, %c0_i32_0 : i32, i32
  }
  func.func @transform_3(%arg0: i32) -> (i32, i32) {
    %c0_i32 = arith.constant 0 : i32
    %c0_i32_0 = arith.constant 0 : i32
    %c0_i32_1 = arith.constant 0 : i32
    return %c0_i32, %c0_i32_0 : i32, i32
  }
  func.func @transform_4(%arg0: i32) -> (i32, i32) {
    %c0_i32 = arith.constant 0 : i32
    %c0_i32_0 = arith.constant 0 : i32
    %c0_i32_1 = arith.constant 0 : i32
    return %c0_i32, %c0_i32_0 : i32, i32
  }
  func.func @transform_5(%arg0: i32) -> (i32, i32) {
    %c0_i32 = arith.constant 0 : i32
    %c0_i32_0 = arith.constant 0 : i32
    %c0_i32_1 = arith.constant 0 : i32
    return %c0_i32, %c0_i32_0 : i32, i32
  }
  func.func @transform_6(%arg0: i32) -> (i32, i32) {
    %c0_i32 = arith.constant 0 : i32
    %c0_i32_0 = arith.constant 0 : i32
    %c0_i32_1 = arith.constant 0 : i32
    return %c0_i32, %c0_i32_0 : i32, i32
  }
  func.func @transform_7(%arg0: i32) -> (i32, i32) {
    %c0_i32 = arith.constant 0 : i32
    %c0_i32_0 = arith.constant 0 : i32
    %c0_i32_1 = arith.constant 0 : i32
    return %c0_i32, %c0_i32_0 : i32, i32
  }
  func.func @transform_8(%arg0: i32) -> (i32, i32) {
    %c0_i32 = arith.constant 0 : i32
    %c0_i32_0 = arith.constant 0 : i32
    %c0_i32_1 = arith.constant 0 : i32
    return %c0_i32, %c0_i32_0 : i32, i32
  }
  func.func @transform_9(%arg0: i32) -> (i32, i32) {
    %c0_i32 = arith.constant 0 : i32
    %c0_i32_0 = arith.constant 0 : i32
    %c0_i32_1 = arith.constant 0 : i32
    return %c0_i32, %c0_i32_0 : i32, i32
  }
  func.func @transform_10(%arg0: i32) -> (i32, i32) {
    %c0_i32 = arith.constant 0 : i32
    %c0_i32_0 = arith.constant 0 : i32
    %c0_i32_1 = arith.constant 0 : i32
    return %c0_i32, %c0_i32_0 : i32, i32
  }
  func.func @transform_11(%arg0: i32) -> (i32, i32) {
    %c0_i32 = arith.constant 0 : i32
    %c0_i32_0 = arith.constant 0 : i32
    %c0_i32_1 = arith.constant 0 : i32
    return %c0_i32, %c0_i32_0 : i32, i32
  }
  func.func @transform_12(%arg0: i32) -> (i32, i32) {
    %c0_i32 = arith.constant 0 : i32
    %c0_i32_0 = arith.constant 0 : i32
    %c0_i32_1 = arith.constant 0 : i32
    return %c0_i32, %c0_i32_0 : i32, i32
  }
  func.func @transform_13(%arg0: i32) -> (i32, i32) {
    %c0_i32 = arith.constant 0 : i32
    %c0_i32_0 = arith.constant 0 : i32
    %c0_i32_1 = arith.constant 0 : i32
    return %c0_i32, %c0_i32_0 : i32, i32
  }
}

</mosaic_0001>

<bundles_post_ra>
// kernel: tpu_custom_call.1
= control target key start
LH: loop header
LB: loop body
LE: loop exit
PB: predicated region body
PF: predicated region fallthrough
CT: control target
= control target key end

     0   :  { %s7755_s0 = inlined_call_operand.hbm [shape: bf16[8,2560], index: 0, kind: input, shape index: {}]   ;;  %s7756_s1 = inlined_call_operand.hbm [shape: bf16[2560,1024], index: 1, kind: input, shape index: {}]   ;;  %s7757_s2 = inlined_call_operand.hbm [shape: f32[8,512], index: 2, kind: input, shape index: {}]   ;;  %s7758_s3 = inlined_call_operand.hbm [shape: f32[1,1024], index: 3, kind: input, shape index: {}]   ;;  %s7759_s4 = inlined_call_operand.hbm [shape: bf16[1024,256], index: 4, kind: input, shape index: {}]   ;;  %s7760_s5 = inlined_call_operand.hbm [shape: f32[1,256], index: 5, kind: input, shape index: {}]   ;;  %s7761_s6 = inlined_call_operand.hbm [shape: bf16[256,128], index: 6, kind: input, shape index: {}]   ;;  %s7762_s7 = inlined_call_operand.hbm [shape: f32[1,128], index: 7, kind: input, shape index: {}]   ;;  %s7763_s8 = inlined_call_operand.hbm [shape: bf16[512,512], index: 8, kind: input, shape index: {}]   ;;  %s7764_s9 = inlined_call_operand.hbm [shape: f32[1,512], index: 9, kind: input, shape index: {}]   ;;  %s7765_s10 = inlined_call_operand.hbm [shape: bf16[512,128], index: 10, kind: input, shape index: {}]   ;;  %s7766_s11 = inlined_call_operand.hbm [shape: f32[1,128], index: 11, kind: input, shape index: {}]   ;;  %s7767_s12 = inlined_call_operand.hbm [shape: f32[8,128], index: 12, kind: output, shape index: {0}]   ;;  %s7768_s13 = inlined_call_operand.hbm [shape: f32[1,128], index: 13, kind: output, shape index: {1}]  }
   0x1   :  { %7774 = sst [smem:[#allocation36_spill]] %s7757_s2 }
   0x2   :  { %7775 = sst [smem:[#allocation37_spill]] %s7758_s3 }
   0x3   :  { %7776 = sst [smem:[#allocation38_spill]] %s7759_s4 }
   0x4   :  { %7777 = sst [smem:[#allocation39_spill]] %s7760_s5 }
   0x5   :  { %7778 = sst [smem:[#allocation40_spill]] %s7761_s6 }
   0x6   :  { %19 = vsyncpa [#allocation4], 0 }
   0x7   :  { %21 = vsyncpa [#allocation4 + $0x1], 0 }
   0x8   :  { %22 = vsyncpa [#allocation7], 0 }
   0x9   :  { %24 = vsyncpa [#allocation7 + $0x1], 0 }
   0xa   :  { %25 = vsyncpa [#allocation10], 0 }
   0xb   :  { %26 = vsyncpa [#allocation13], 0 }
   0xc   :  { %27 = vsyncpa [#allocation16], 0 }
   0xd   :  { %28 = vsyncpa [#allocation19], 0 }
   0xe   :  { %29 = vsyncpa [#allocation22], 0 }
   0xf   :  { %30 = vsyncpa [#allocation5], 0 }
  0x10   :  { %31 = vsyncpa [#allocation25], 0  ;;  %s7108_s25 = smov 0   ;;  %s7110_s26 = smov 0  }
  0x11   :  { %s7112_s27 = smov 0   ;;  %s7114_s28 = smov 0  }
  0x12 LB: > { %s7014_s29 = smov [#allocation8]   ;;  %s7129_s14 = sadd.s32 4294967295, %s7012_s28   ;;  %s7012_s28 = sphi %s7114_s28, %s7810_s28   ;;  %s7008_s27 = sphi %s7112_s27, %s7809_s27   ;;  %s7004_s26 = sphi %s7110_s26, %s7808_s26   ;;  %s7000_s25 = sphi %s7108_s25, %s7807_s25  }
  0x13   : > { %s359_s30 = sshll.u32 %s7014_s29, 4  ;;  %p5290_p0 = scmp.ge.s32.totalorder %s7012_s28, 1  ;;  %s360_s30 = int_to_ptr.vmem [resolvable:$true] %s359_s30 }
  0x14   : > { %p7769_p1 = scmp.eq.s32.totalorder %s7129_s14, 0  ;;  %p346_p2 = scmp.lt.s32.totalorder %s7012_s28, 6 }
  0x15   : > { %s7015_s16 = smov [#allocation9]   ;;  %s7016_s18 = smov [#allocation12]  }
  0x16   : > { %p7135_p4 = pnand %p5290_p0, %p346_p2  ;;  %s370_s17 = sshll.u32 %s7015_s16, 4  ;;  %s371_s17 = int_to_ptr.vmem [resolvable:$true] %s370_s17 }
  0x17   : > { %s394_s19 = sshll.u32 %s7016_s18, 4  ;;  %s7017_s21 = smov [#allocation15]   ;;  %s7147_s19 = int_to_ptr.vmem [resolvable:$true] %s394_s19 }
  0x18   : > { %s7779_s15 = scalar_select %p7135_p4, 1, 0 }
  0x19   : > { %p6016_p5 = pneg %p7135_p4  ;;  %s7149_s22 = sshll.u32 %s7017_s21, 4  ;;  %s419_s22 = int_to_ptr.vmem [resolvable:$true] %s7149_s22 }
  0x1a   : > { %s6589_s24 = scalar_lea.vmem %s360_s30, 512  ;;  %p6597_p11 = scmp.lt.s32.totalorder %s360_s30, %s360_s30 }
  0x1b   : > { %p7143_p6 = pnand %p6016_p5, %p7769_p1  ;;  %p6590_p8 = scmp.ne.s32.totalorder %s360_s30, %s6589_s24 }
  0x1c   : > { %p6598_p12 = scmp.lt.s32.totalorder %s6589_s24, %s6589_s24 }
  0x1d   : > { %p7153_p7 = pneg %p7143_p6 }
  0x1e   : > { %p6599_p13 = por %p6598_p12, %p6597_p11 }
  0x1f   : > { %p6592_p9 = pnand %p6590_p8, %p7153_p7 }
  0x21   : > { %p6593_p10 = pneg %p6592_p9 }
  0x23   : > { %p6600_p0 = pnand %p6599_p13, %p6593_p10 }
  0x25   : > { %6603 = shalt.err (!%p6600_p0)
}
  0x26   : > { %s7782_s2 = sld [smem:[#allocation36_spill]]  ;;  %s6615_s18 = scalar_lea.vmem %s371_s17, 128 }
  0x27   : > { %p6616_p2 = scmp.ne.s32.totalorder %s371_s17, %s6615_s18  ;;  %p6623_p1 = scmp.lt.s32.totalorder %s371_s17, %s371_s17 }
  0x28   : > { %p6624_p8 = scmp.lt.s32.totalorder %s6615_s18, %s6615_s18 }
  0x29   : > { %p6618_p5 = pnand %p6616_p2, %p7153_p7 }
  0x2a   : > { %p6625_p9 = por %p6624_p8, %p6623_p1 }
  0x2b   : > { %p6619_p3 = pneg %p6618_p5 }
  0x2c   : > { %6019 = dma.hbm_to_vmem [thread:$0]  (!%p7143_p6), %s7782_s2, 512, %s360_s30, [#allocation7]  }
  0x2d   : > { %p6626_p4 = pnand %p6625_p9, %p6619_p3 }
  0x2f   : > { %6629 = shalt.err (!%p6626_p4)
}
  0x30   : > { %s7783_s3 = sld [smem:[#allocation37_spill]]  ;;  %s6641_s30 = scalar_lea.vmem %s7147_s19, 32 }
  0x31   : > { %p6642_p10 = scmp.ne.s32.totalorder %s7147_s19, %s6641_s30  ;;  %p6649_p13 = scmp.lt.s32.totalorder %s7147_s19, %s7147_s19 }
  0x32   : > { %p6650_p1 = scmp.lt.s32.totalorder %s6641_s30, %s6641_s30 }
  0x33   : > { %p6644_p11 = pnand %p6642_p10, %p7153_p7 }
  0x34   : > { %p6651_p3 = por %p6650_p1, %p6649_p13 }
  0x35   : > { %p6645_p12 = pneg %p6644_p11 }
  0x36   : > { %6022 = dma.hbm_to_vmem [thread:$0]  (!%p7143_p6), %s7783_s3, 128, %s371_s17, [#allocation10]  }
  0x37   : > { %p6652_p4 = pnand %p6651_p3, %p6645_p12 }
  0x39   : > { %6655 = shalt.err (!%p6652_p4)
}
  0x3a   : > { %s7784_s5 = sld [smem:[#allocation39_spill]]  ;;  %s7018_s17 = smov [#allocation18]  }
  0x3b   : > { %s442_s18 = sshll.u32 %s7018_s17, 4  ;;  %s6667_s21 = scalar_lea.vmem %s419_s22, 16  ;;  %s443_s18 = int_to_ptr.vmem [resolvable:$true] %s442_s18 }
  0x3c   : > { %p6668_p0 = scmp.ne.s32.totalorder %s419_s22, %s6667_s21  ;;  %s6674_s24 = scalar_lea.vmem %s419_s22, 32 }
  0x3d   : > { %p6675_p8 = scmp.lt.s32.totalorder %s419_s22, %s419_s22  ;;  %p6676_p9 = scmp.lt.s32.totalorder %s6674_s24, %s6667_s21 }
  0x3e   : > { %p6670_p2 = pnand %p6668_p0, %p7153_p7 }
  0x3f   : > { %p6677_p10 = por %p6676_p9, %p6675_p8 }
  0x40   : > { %6028 = dma.hbm_to_vmem [thread:$0]  (!%p7143_p6), %s7784_s5, 32, %s7147_s19, [#allocation13]  }
  0x41   : > { %p6671_p5 = pneg %p6670_p2 }
  0x43   : > { %p6678_p11 = pnand %p6677_p10, %p6671_p5 }
  0x45   : > { %6681 = shalt.err (!%p6678_p11)
}
  0x46   : > { %6034 = dma.hbm_to_vmem [thread:$0]  (!%p7143_p6), %s7762_s7, 16, %s419_s22, [#allocation16]  }
  0x47   : > { %s6693_s19 = scalar_lea.vmem %s443_s18, 64  ;;  %p6701_p3 = scmp.lt.s32.totalorder %s443_s18, %s443_s18 }
  0x48   : > { %p6694_p12 = scmp.ne.s32.totalorder %s443_s18, %s6693_s19  ;;  %p6702_p4 = scmp.lt.s32.totalorder %s6693_s19, %s6693_s19 }
  0x4a   : > { %p6696_p13 = pnand %p6694_p12, %p7153_p7  ;;  %p6703_p0 = por %p6702_p4, %p6701_p3 }
  0x4c   : > { %p6697_p1 = pneg %p6696_p13 }
  0x4e   : > { %p6704_p2 = pnand %p6703_p0, %p6697_p1 }
  0x50   : > { %6707 = shalt.err (!%p6704_p2)
}
  0x51   : > { %6040 = dma.hbm_to_vmem [thread:$0]  (!%p7143_p6), %s7764_s9, 64, %s443_s18, [#allocation19]  }
  0x52   : > { %s7019_s21 = smov [#allocation11]  }
  0x53   : > { %s380_s22 = sshll.u32 %s7019_s21, 4  ;;  %s381_s22 = int_to_ptr.vmem [resolvable:$true] %s380_s22 }
  0x54   : > { %s6719_s24 = scalar_lea.vmem %s381_s22, 16384  ;;  %p6727_p10 = scmp.lt.s32.totalorder %s381_s22, %s381_s22 }
  0x55   : > { %p6720_p5 = scmp.ne.s32.totalorder %s381_s22, %s6719_s24  ;;  %p6728_p11 = scmp.lt.s32.totalorder %s6719_s24, %s6719_s24 }
  0x57   : > { %p6722_p8 = pnand %p6720_p5, %p7153_p7  ;;  %p6729_p12 = por %p6728_p11, %p6727_p10 }
  0x59   : > { %p6723_p9 = pneg %p6722_p8 }
  0x5b   : > { %p6730_p13 = pnand %p6729_p12, %p6723_p9 }
  0x5d   : > { %6733 = shalt.err (!%p6730_p13)
}
  0x5e   : > { %s7020_s30 = smov 128   ;;  %s7021_s29 = smov 8  }
  0x5f   : > { %s7785_s4 = sld [smem:[#allocation38_spill]]  ;;  %s7022_s16 = smov [#allocation14]  }
  0x60   : > { %s404_s17 = sshll.u32 %s7022_s16, 4  ;;  %s405_s17 = int_to_ptr.vmem [resolvable:$true] %s404_s17 }
  0x61   : > { %s6745_s21 = scalar_lea.vmem %s405_s17, 2048  ;;  %p6753_p0 = scmp.lt.s32.totalorder %s405_s17, %s405_s17 }
  0x62   : > { %p6746_p1 = scmp.ne.s32.totalorder %s405_s17, %s6745_s21  ;;  %p6754_p2 = scmp.lt.s32.totalorder %s6745_s21, %s6745_s21 }
  0x64   : > { %p6748_p3 = pnand %p6746_p1, %p7153_p7  ;;  %p6755_p5 = por %p6754_p2, %p6753_p0 }
  0x65   : > { %6025 = dma.hbm_to_vmem [thread:$0]  (!%p7143_p6), %s7785_s4, 16384, %s381_s22, [#allocation10], %s7020_s30, %s7020_s30, %s7021_s29  }
  0x66   : > { %p6749_p4 = pneg %p6748_p3 }
  0x68   : > { %p6756_p8 = pnand %p6755_p5, %p6749_p4 }
  0x6a   : > { %6759 = shalt.err (!%p6756_p8)
}
  0x6b   : > { %s7771_s24 = smov 64   ;;  %s7772_s2 = smov 4  }
  0x6c   : > { %s7786_s6 = sld [smem:[#allocation40_spill]]  ;;  %s7025_s29 = smov [#allocation17]  }
  0x6d   : > { %s428_s19 = sshll.u32 %s7025_s29, 4  ;;  %s429_s19 = int_to_ptr.vmem [resolvable:$true] %s428_s19 }
  0x6e   : > { %s6771_s18 = scalar_lea.vmem %s429_s19, 16384  ;;  %p6779_p12 = scmp.lt.s32.totalorder %s429_s19, %s429_s19 }
  0x6f   : > { %p6772_p9 = scmp.ne.s32.totalorder %s429_s19, %s6771_s18  ;;  %p6780_p13 = scmp.lt.s32.totalorder %s6771_s18, %s6771_s18 }
  0x71   : > { %p6774_p10 = pnand %p6772_p9, %p7153_p7  ;;  %p6781_p1 = por %p6780_p13, %p6779_p12 }
  0x72   : > { %6031 = dma.hbm_to_vmem [thread:$0]  (!%p7143_p6), %s7786_s6, 2048, %s405_s17, [#allocation13], %s7771_s24, %s7771_s24, %s7772_s2  }
  0x73   : > { %p6775_p11 = pneg %p6774_p10 }
  0x75   : > { %p6782_p3 = pnand %p6781_p1, %p6775_p11 }
  0x77   : > { %6785 = shalt.err (!%p6782_p3)
}
  0x78   : > { %s7026_s16 = smov 256   ;;  %s7027_s21 = smov 16  }
  0x79   : > { %6037 = dma.hbm_to_vmem [thread:$0]  (!%p7143_p6), %s7763_s8, 16384, %s429_s19, [#allocation16], %s7026_s16, %s7026_s16, %s7027_s21  }
  0x7a   : > { %s7028_s30 = smov [#allocation20]   ;;  %s7029_s24 = smov [#allocation21]  }
  0x7b   : > { %s452_s29 = sshll.u32 %s7028_s30, 4  ;;  %s466_s2 = sshll.u32 %s7029_s24, 4  ;;  %s453_s29 = int_to_ptr.vmem [resolvable:$true] %s452_s29  ;;  %s467_s2 = int_to_ptr.vmem [resolvable:$true] %s466_s2 }
  0x7c   : > { %s6797_s3 = scalar_lea.vmem %s453_s29, 4096  ;;  %p6805_p5 = scmp.lt.s32.totalorder %s453_s29, %s453_s29 }
  0x7d   : > { %p6798_p4 = scmp.ne.s32.totalorder %s453_s29, %s6797_s3  ;;  %p6806_p8 = scmp.lt.s32.totalorder %s6797_s3, %s6797_s3 }
  0x7f   : > { %p6800_p0 = pnand %p6798_p4, %p7153_p7  ;;  %p6807_p9 = por %p6806_p8, %p6805_p5 }
  0x81   : > { %p6801_p2 = pneg %p6800_p0 }
  0x83   : > { %p6808_p10 = pnand %p6807_p9, %p6801_p2 }
  0x85   : > { %6811 = shalt.err (!%p6808_p10)
}
  0x86   : > { %s7787_s18 = smov 4   ;;  %s7788_s19 = smov 64  }
  0x87   : > { %6043 = dma.hbm_to_vmem [thread:$0]  (!%p7143_p6), %s7765_s10, 4096, %s453_s29, [#allocation19], %s7788_s19, %s7788_s19, %s7787_s18  }
  0x88   : > { %s6823_s24 = scalar_lea.vmem %s467_s2, 16  ;;  %s6830_s22 = scalar_lea.vmem %s467_s2, 32 }
  0x89   : > { %p6824_p11 = scmp.ne.s32.totalorder %s467_s2, %s6823_s24  ;;  %p6831_p1 = scmp.lt.s32.totalorder %s467_s2, %s467_s2 }
  0x8a   : > { %p6832_p3 = scmp.lt.s32.totalorder %s6830_s22, %s6823_s24 }
  0x8b   : > { %p6826_p12 = pnand %p6824_p11, %p7153_p7 }
  0x8c   : > { %p6833_p4 = por %p6832_p3, %p6831_p1 }
  0x8d   : > { %p6827_p13 = pneg %p6826_p12 }
  0x8f   : > { %p6834_p0 = pnand %p6833_p4, %p6827_p13 }
  0x91   : > { %6837 = shalt.err (!%p6834_p0)
}
  0x92   : > { %6046 = dma.hbm_to_vmem [thread:$0]  (!%p7143_p6), %s7766_s11, 16, %s467_s2, [#allocation22]  }
  0x93   : > { %s7240_s23 = sadd.s32 1, %s7012_s28   ;;  %s44_s20 = sadd.s32 1, %s7008_s27 }
  0x94   : > { %s41_s30 = ssub.s32 %s7012_s28, %s7240_s23  ;;  %p51_p7 = scmp.ne.s32.totalorder %s7008_s27, %s7004_s26 }
  0x95   : > { %p42_p2 = scmp.eq.s32.totalorder %s41_s30, 0  ;;  %p52_p5 = scmp.eq.s32.totalorder %s7012_s28, 0 }
  0x96   : > { %p57_p8 = scmp.ne.s32.totalorder %s7004_s26, %s7000_s25  ;;  %p6064_p9 = scmp.lt.s32.totalorder %s7012_s28, 5 }
  0x97   : > { %s7252_s29 = scalar_select %p42_p2, %s7008_s27, %s44_s20  }
  0x98   : > { %p53_p10 = por %p52_p5, %p51_p7  ;;  %p7789_p11 = scmp.eq.s32.totalorder %s7129_s14, 0 }
  0x99   : > { %s7261_s19 = sand.u32 1, %s7008_s27   ;;  %s5895_s2 = sshll.u32 %s7012_s28, 8 }
  0x9a   : > { %p7256_p12 = por %p7789_p11, %p57_p8  ;;  %s5302_s16 = sshll.u32 %s7261_s19, 4 }
  0x9b   : > { %s7268_s25 = scalar_lea.hbm %s7755_s0, %s5895_s2  ;;  %s481_s22 = scalar_lea.vmem [#allocation3], %s5302_s16 }
  0x9c   : > { %s7790_s18 = scalar_select %p7256_p12, 1, 0 }
  0x9d   : > { %s489_s3 = sshll.u32 %s481_s22, 4  ;;  %p7270_p6 = pnand %p6064_p9, %p53_p10  ;;  %s490_s3 = int_to_ptr.vmem [resolvable:$true] %s489_s3 }
  0x9e   : > { %s5305_s20 = sshll.u32 %s7261_s19, 11  ;;  %s478_s30 = scalar_lea.sflag [#allocation4], %s7261_s19 }
  0x9f   : > { %s6838_s4 = scalar_lea.hbm %s7268_s25, 256  ;;  %p6840_p1 = pneg %p7270_p6 }
  0xa0   : > { %p6839_p13 = scmp.ne.s32.totalorder %s7268_s25, %s6838_s4  ;;  %s6843_s21 = scalar_lea.hbm %s7755_s0, 1280 }
  0xa1   : > { %p6844_p0 = scmp.lt.s32.totalorder %s7268_s25, %s7755_s0  ;;  %p6845_p7 = scmp.lt.s32.totalorder %s6843_s21, %s6838_s4 }
  0xa2   : > { %p6841_p3 = pnand %p6840_p1, %p6839_p13 }
  0xa3   : > { %p6846_p2 = por %p6845_p7, %p6844_p0 }
  0xa4   : > { %p6842_p4 = pneg %p6841_p3 }
  0xa6   : > { %p6847_p5 = pnand %p6846_p2, %p6842_p4 }
  0xa8   : > { %6850 = shalt.err (!%p6847_p5)
}
  0xa9   : > { %s6851_s19 = scalar_lea.vmem %s490_s3, 256  ;;  %s7030_s5 = smov [#allocation3]  }
  0xaa   : > { %p6852_p8 = scmp.ne.s32.totalorder %s490_s3, %s6851_s19  ;;  %s6856_s6 = sshll.u32 %s7030_s5, 4  ;;  %s6857_s6 = int_to_ptr.vmem [resolvable:$false] %s6856_s6 }
  0xab   : > { %s6858_s2 = scalar_lea.vmem %s6857_s6, 512  ;;  %p6859_p11 = scmp.lt.s32.totalorder %s490_s3, %s6857_s6 }
  0xac   : > { %p6854_p9 = pnand %p6852_p8, %p6840_p1  ;;  %p6860_p13 = scmp.lt.s32.totalorder %s6858_s2, %s6851_s19 }
  0xae   : > { %p6855_p10 = pneg %p6854_p9  ;;  %p6861_p3 = por %p6860_p13, %p6859_p11 }
  0xb0   : > { %p6862_p12 = pnand %p6861_p3, %p6855_p10 }
  0xb2   : > { %6865 = shalt.err (!%p6862_p12)
}
  0xb3   : > { %6050 = dma.hbm_to_vmem [thread:$0]  (!%p7270_p6), %s7268_s25, 256, %s490_s3, %s478_s30  }
  0xb4   : > { %s500_s4 = scalar_lea.vmem [#allocation6], %s5305_s20  ;;  %s496_s21 = sand.u32 1, %s7012_s28  }
  0xb5   : > { %s508_s16 = sshll.u32 %s500_s4, 4  ;;  %s5897_s5 = sshll.u32 %s7012_s28, 15  ;;  %s7297_s16 = int_to_ptr.vmem [resolvable:$true] %s508_s16 }
  0xb6   : > { %s7303_s6 = scalar_lea.hbm %s7756_s1, %s5897_s5  ;;  %s7305_s19 = scalar_lea.sflag [#allocation7], %s496_s21 }
  0xb7   : > { %s6866_s2 = scalar_lea.hbm %s7303_s6, 32768  ;;  %s6871_s28 = scalar_lea.hbm %s7756_s1, 163840 }
  0xb8   : > { %p6867_p12 = scmp.ne.s32.totalorder %s7303_s6, %s6866_s2  ;;  %p6872_p7 = scmp.lt.s32.totalorder %s7303_s6, %s7756_s1 }
  0xb9   : > { %p6873_p2 = scmp.lt.s32.totalorder %s6871_s28, %s6866_s2 }
  0xba   : > { %p6869_p4 = pnand %p6867_p12, %p6840_p1 }
  0xbb   : > { %p6874_p5 = por %p6873_p2, %p6872_p7 }
  0xbc   : > { %p6870_p0 = pneg %p6869_p4 }
  0xbe   : > { %p6875_p8 = pnand %p6874_p5, %p6870_p0 }
  0xc0   : > { %6878 = shalt.err (!%p6875_p8)
}
  0xc1   : > { %s6879_s4 = scalar_lea.vmem %s7297_s16, 32768  ;;  %s7031_s21 = smov [#allocation6]  }
  0xc2   : > { %p6880_p9 = scmp.ne.s32.totalorder %s7297_s16, %s6879_s4  ;;  %s6884_s5 = sshll.u32 %s7031_s21, 4  ;;  %s6885_s5 = int_to_ptr.vmem [resolvable:$false] %s6884_s5 }
  0xc3   : > { %s6886_s24 = scalar_lea.vmem %s6885_s5, 65536  ;;  %p6887_p13 = scmp.lt.s32.totalorder %s7297_s16, %s6885_s5 }
  0xc4   : > { %p6882_p10 = pnand %p6880_p9, %p6840_p1  ;;  %p6888_p3 = scmp.lt.s32.totalorder %s6886_s24, %s6879_s4 }
  0xc6   : > { %p6883_p11 = pneg %p6882_p10  ;;  %p6889_p12 = por %p6888_p3, %p6887_p13 }
  0xc8   : > { %p6890_p4 = pnand %p6889_p12, %p6883_p11 }
  0xca   : > { %6893 = shalt.err (!%p6890_p4)
}
  0xcb   : > { %s7032_s22 = smov 512   ;;  %s7033_s2 = smov 32  }
  0xcc   : > { %6053 = dma.hbm_to_vmem [thread:$0]  (!%p7270_p6), %s7303_s6, 32768, %s7297_s16, %s7305_s19, %s7032_s22, %s7032_s22, %s7033_s2  }
  0xcd   : > { %p7792_p1 = scmp.ne.s32.totalorder %s7779_s15, 0 }
  0xce   : > { %s522_s25 = sand.u32 (!%p7792_p1), 1, %s7004_s26   ;;  %p7793_p0 = scmp.ne.s32.totalorder (!%p7792_p1), %s7790_s18, 0 }
  0xcf   : > { %520 = sbr.rel (%p7792_p1) target bundleno = 1946 (0x79a), region = 68  ;;  %s5310_s3 = sshll.u32 (!%p7792_p1), %s522_s25, 4 }
  0xd0   : > { %s523_s28 = scalar_lea.sflag (!%p7792_p1), [#allocation4], %s522_s25  ;;  %s7333_s20 = scalar_lea.vmem (!%p7792_p1), [#allocation3], %s5310_s3 }
  0xd4   : > { %6959 = dma.done.wait (%p7793_p0), %s523_s28, 256  }
  0xd5   : > { %6961 = vsyncadd (%p7793_p0), %s523_s28, 4294967040  ;;  %s531_s30 = sand.u32 1, %s7129_s14   ;;  %s5311_s17 = sshll.u32 %s522_s25, 11 }
  0xd6   : > { %s532_s16 = scalar_lea.sflag [#allocation7], %s531_s30  ;;  %s7340_s6 = scalar_lea.vmem [#allocation6], %s5311_s17 }
  0xd7   : > { %6963 = dma.done.wait (%p7793_p0), %s532_s16, 32768  }
  0xd8   : > { %6965 = vsyncadd (%p7793_p0), %s532_s16, 4294934528  ;;  %p7794_p6 = scmp.eq.s32.totalorder %s7129_s14, 0 }
  0xda   : > { %6967 = dma.done.wait (%p7794_p6), [#allocation7], 512   ;;  %p7795_p7 = pmov %p7794_p6 }
  0xdb   : > { %p7796_p2 = pmov %p7794_p6 }
  0xdc   : > { %6969 = vsyncadd (%p7795_p7), [#allocation7], 4294966784 }
  0xdd   : > { %6971 = dma.done.wait (%p7796_p2), [#allocation10], 16512   ;;  %p7797_p5 = pmov %p7796_p2 }
  0xde   : > { %p7798_p8 = pmov %p7796_p2 }
  0xdf   : > { %6973 = vsyncadd (%p7797_p5), [#allocation10], 4294950784 }
  0xe0   : > { %6975 = dma.done.wait (%p7798_p8), [#allocation13], 2080   ;;  %p7799_p9 = pmov %p7796_p2 }
  0xe1   : > { %p7800_p10 = pmov %p7796_p2 }
  0xe2   : > { %6977 = vsyncadd (%p7799_p9), [#allocation13], 4294965216 }
  0xe3   : > { %6979 = dma.done.wait (%p7800_p10), [#allocation16], 16400   ;;  %p7801_p11 = pmov %p7796_p2 }
  0xe4   : > { %p7802_p13 = pmov %p7796_p2 }
  0xe5   : > { %6981 = vsyncadd (%p7801_p11), [#allocation16], 4294950896 }
  0xe6   : > { %6983 = dma.done.wait (%p7802_p13), [#allocation19], 4160   ;;  %p7803_p3 = pmov %p7796_p2 }
  0xe7   : > { %p7804_p12 = pmov %p7796_p2 }
  0xe8   : > { %6985 = vsyncadd (%p7803_p3), [#allocation19], 4294963136 }
  0xe9   : > { %6987 = dma.done.wait (%p7804_p12), [#allocation22], 16   ;;  %p7805_p4 = pmov %p7796_p2 }
  0xea   : > { %p7806_p1 = scmp.ne.s32.totalorder %s7129_s14, 0 }
  0xeb   : > { %6989 = vsyncadd (%p7805_p4), [#allocation22], 4294967280 }
  0xec   : > { %624 = sbr.rel (%p7806_p1) target bundleno = 246 (0xf6), region = 120 }
  0xf1   : > { %v7034_v0 = vmov 0.0  }
  0xf2   : > { %625 = vst [vmem:[#allocation2 + $0x30] sm:$0xff] %v7034_v0  ;;  %626 = vst [vmem:[#allocation2] sm:$0xff] %v7034_v0 }
  0xf3   : > { %627 = vst [vmem:[#allocation2 + $0x18] sm:$0xff] %v7034_v0  ;;  %628 = vst [vmem:[#allocation2 + $0x10] sm:$0xff] %v7034_v0 }
  0xf4   : > { %629 = vst [vmem:[#allocation2 + $0x8] sm:$0xff] %v7034_v0  ;;  %630 = vst [vmem:[#allocation2 + $0x20] sm:$0xff] %v7034_v0 }
  0xf5   : > { %631 = vst [vmem:[#allocation2 + $0x28] sm:$0xff] %v7034_v0  ;;  %632 = vst [vmem:[#allocation2 + $0x38] sm:$0xff] %v7034_v0 }
  0xf6 PF: > { %v699_v1 = vld [vmem:[%s7340_s6 + $0x1c0] sm:$0xff]  ;;  %v7404_v55 = vld [vmem:[%s7333_s20 + $0x8] sm:$0xff]  ;;  %p5583_p0 = scmp.ne.s32.totalorder %s7129_s14, 4 }
  0xf7   : > { %v703_v2 = vld [vmem:[%s7340_s6 + $0x1e0] sm:$0xff]  ;;  %v7414_v60 = vcombine.high %v7404_v55, %v7404_v55 }
  0xf8   : > { %v827_v3 = vld [vmem:[%s7340_s6 + $0x5c0] sm:$0xff]  ;;  %v5384_v4 = vcombine.high %v699_v1, %v703_v2  ;;  %v5383_v6 = vcombine.low %v699_v1, %v703_v2 }
  0xf9   : > { %v831_v5 = vld [vmem:[%s7340_s6 + $0x5e0] sm:$0xff]  ;;  %2266 = vmatprep.mubr.bf16.mxu1 %v7414_v60 }
  0xfa   : > { %v691_v7 = vld [vmem:[%s7340_s6 + $0x180] sm:$0xff]  ;;  %v5512_v9 = vcombine.high %v827_v3, %v831_v5  ;;  %v5511_v10 = vcombine.low %v827_v3, %v831_v5  ;;  %2193 = vmatprep.subr.bf16.mxu0 %v5384_v4 }
  0xfb   : > { %v695_v8 = vld [vmem:[%s7340_s6 + $0x1a0] sm:$0xff]  ;;  %2194 = vmatpush1.bf16.msra.mxu0 %v5383_v6 }
  0xfc   : > { %v5376_v11 = vcombine.high %v691_v7, %v695_v8  ;;  %v819_v12 = vld [vmem:[%s7340_s6 + $0x580] sm:$0xff]  ;;  %2234 = vmatprep.subr.bf16.mxu1 %v5512_v9  ;;  %v5375_v19 = vcombine.low %v691_v7, %v695_v8 }
  0xfd   : > { %v823_v13 = vld [vmem:[%s7340_s6 + $0x5a0] sm:$0xff]  ;;  %2235 = vmatpush1.bf16.msra.mxu1 %v5511_v10 }
  0xfe   : > { %v683_v14 = vld [vmem:[%s7340_s6 + $0x140] sm:$0xff]  ;;  %v5504_v15 = vcombine.high %v819_v12, %v823_v13  ;;  %2195 = vmatprep.subr.bf16.mxu0 %v5376_v11  ;;  %v5503_v20 = vcombine.low %v819_v12, %v823_v13 }
  0xff   : > { %v687_v16 = vld [vmem:[%s7340_s6 + $0x160] sm:$0xff]  ;;  %2196 = vmatpush1.bf16.msra.mxu0 %v5375_v19 }
 0x100   : > { %v811_v17 = vld [vmem:[%s7340_s6 + $0x540] sm:$0xff]  ;;  %v5368_v21 = vcombine.high %v683_v14, %v687_v16  ;;  %2236 = vmatprep.subr.bf16.mxu1 %v5504_v15  ;;  %v5367_v27 = vcombine.low %v683_v14, %v687_v16 }
 0x101   : > { %v815_v18 = vld [vmem:[%s7340_s6 + $0x560] sm:$0xff]  ;;  %2237 = vmatpush1.bf16.msra.mxu1 %v5503_v20 }
 0x102   : > { %v5496_v22 = vcombine.high %v811_v17, %v815_v18  ;;  %v675_v23 = vld [vmem:[%s7340_s6 + $0x100] sm:$0xff]  ;;  %2197 = vmatprep.subr.bf16.mxu0 %v5368_v21  ;;  %v5495_v28 = vcombine.low %v811_v17, %v815_v18 }
 0x103   : > { %v679_v24 = vld [vmem:[%s7340_s6 + $0x120] sm:$0xff]  ;;  %2198 = vmatpush1.bf16.msra.mxu0 %v5367_v27 }
 0x104   : > { %v803_v25 = vld [vmem:[%s7340_s6 + $0x500] sm:$0xff]  ;;  %v5360_v29 = vcombine.high %v675_v23, %v679_v24  ;;  %2238 = vmatprep.subr.bf16.mxu1 %v5496_v22  ;;  %v5359_v35 = vcombine.low %v675_v23, %v679_v24 }
 0x105   : > { %v807_v26 = vld [vmem:[%s7340_s6 + $0x520] sm:$0xff]  ;;  %2239 = vmatpush1.bf16.msra.mxu1 %v5495_v28 }
 0x106   : > { %v5488_v30 = vcombine.high %v803_v25, %v807_v26  ;;  %v667_v31 = vld [vmem:[%s7340_s6 + $0xc0] sm:$0xff]  ;;  %2199 = vmatprep.subr.bf16.mxu0 %v5360_v29  ;;  %v5487_v36 = vcombine.low %v803_v25, %v807_v26 }
 0x107   : > { %v671_v32 = vld [vmem:[%s7340_s6 + $0xe0] sm:$0xff]  ;;  %2200 = vmatpush1.bf16.msra.mxu0 %v5359_v35 }
 0x108   : > { %v795_v33 = vld [vmem:[%s7340_s6 + $0x4c0] sm:$0xff]  ;;  %v5352_v37 = vcombine.high %v667_v31, %v671_v32  ;;  %2240 = vmatprep.subr.bf16.mxu1 %v5488_v30  ;;  %v5351_v43 = vcombine.low %v667_v31, %v671_v32 }
 0x109   : > { %v799_v34 = vld [vmem:[%s7340_s6 + $0x4e0] sm:$0xff]  ;;  %2241 = vmatpush1.bf16.msra.mxu1 %v5487_v36 }
 0x10a   : > { %v5480_v38 = vcombine.high %v795_v33, %v799_v34  ;;  %v659_v39 = vld [vmem:[%s7340_s6 + $0x80] sm:$0xff]  ;;  %2201 = vmatprep.subr.bf16.mxu0 %v5352_v37  ;;  %v5479_v44 = vcombine.low %v795_v33, %v799_v34 }
 0x10b   : > { %v663_v40 = vld [vmem:[%s7340_s6 + $0xa0] sm:$0xff]  ;;  %2202 = vmatpush1.bf16.msra.mxu0 %v5351_v43 }
 0x10c   : > { %v787_v41 = vld [vmem:[%s7340_s6 + $0x480] sm:$0xff]  ;;  %v5344_v45 = vcombine.high %v659_v39, %v663_v40  ;;  %2242 = vmatprep.subr.bf16.mxu1 %v5480_v38  ;;  %v5343_v51 = vcombine.low %v659_v39, %v663_v40 }
 0x10d   : > { %v791_v42 = vld [vmem:[%s7340_s6 + $0x4a0] sm:$0xff]  ;;  %2243 = vmatpush1.bf16.msra.mxu1 %v5479_v44 }
 0x10e   : > { %v5472_v46 = vcombine.high %v787_v41, %v791_v42  ;;  %v651_v47 = vld [vmem:[%s7340_s6 + $0x40] sm:$0xff]  ;;  %2203 = vmatprep.subr.bf16.mxu0 %v5344_v45  ;;  %v5471_v52 = vcombine.low %v787_v41, %v791_v42 }
 0x10f   : > { %v655_v48 = vld [vmem:[%s7340_s6 + $0x60] sm:$0xff]  ;;  %2204 = vmatpush1.bf16.msra.mxu0 %v5343_v51 }
 0x110   : > { %v779_v49 = vld [vmem:[%s7340_s6 + $0x440] sm:$0xff]  ;;  %v5336_v53 = vcombine.high %v651_v47, %v655_v48  ;;  %2244 = vmatprep.subr.bf16.mxu1 %v5472_v46  ;;  %v5335_v63 = vcombine.low %v651_v47, %v655_v48 }
 0x111   : > { %v783_v50 = vld [vmem:[%s7340_s6 + $0x460] sm:$0xff]  ;;  %2245 = vmatpush1.bf16.msra.mxu1 %v5471_v52 }
 0x112   : > { %v7401_v54 = vld [vmem:[%s7333_s20] sm:$0xff]  ;;  %v5464_v56 = vcombine.high %v779_v49, %v783_v50  ;;  %2205 = vmatprep.subr.bf16.mxu0 %v5336_v53  ;;  %v5463_v0 = vcombine.low %v779_v49, %v783_v50 }
 0x113   : > { %v643_v57 = vld [vmem:[%s7340_s6] sm:$0xff]  ;;  %v7410_v59 = vcombine.high %v7401_v54, %v7401_v54  ;;  %2206 = vmatpush1.bf16.msra.mxu0 %v5335_v63 }
 0x114   : > { %v647_v58 = vld [vmem:[%s7340_s6 + $0x20] sm:$0xff]  ;;  %2246 = vmatprep.subr.bf16.mxu1 %v5464_v56 }
 0x115   : > { %v771_v61 = vld [vmem:[%s7340_s6 + $0x400] sm:$0xff]  ;;  %2225 = vmatprep.mubr.bf16.mxu0 %v7410_v59  ;;  %v5328_v1 = vcombine.high %v643_v57, %v647_v58  ;;  %v5327_v7 = vcombine.low %v643_v57, %v647_v58  ;;  %2247 = vmatpush1.bf16.msra.mxu1 %v5463_v0 }
 0x116   : > { %v775_v62 = vld [vmem:[%s7340_s6 + $0x420] sm:$0xff] }
 0x117   : > { %v5456_v2 = vcombine.high %v771_v61, %v775_v62  ;;  %v763_v3 = vld [vmem:[%s7340_s6 + $0x3c0] sm:$0xff]  ;;  %2207 = vmatprep.subr.bf16.mxu0 %v5328_v1  ;;  %v5455_v8 = vcombine.low %v771_v61, %v775_v62 }
 0x118   : > { %v767_v4 = vld [vmem:[%s7340_s6 + $0x3e0] sm:$0xff]  ;;  %2208 = vmatpush1.bf16.msra.mxu0 %v5327_v7  ;;  %v700_v7 = vld [vmem:[%s7340_s6 + $0x1c8] sm:$0xff] }
 0x119   : > { %v891_v5 = vld [vmem:[%s7340_s6 + $0x7c0] sm:$0xff]  ;;  %v5448_v9 = vcombine.high %v763_v3, %v767_v4  ;;  %2248 = vmatprep.subr.bf16.mxu1 %v5456_v2  ;;  %v5447_v15 = vcombine.low %v763_v3, %v767_v4 }
 0x11a   : > { %v895_v6 = vld [vmem:[%s7340_s6 + $0x7e0] sm:$0xff]  ;;  %2249 = vmatpush1.bf16.msra.mxu1 %v5455_v8  ;;  %v704_v8 = vld [vmem:[%s7340_s6 + $0x1e8] sm:$0xff] }
 0x11b   : > { %v5576_v10 = vcombine.high %v891_v5, %v895_v6  ;;  %v755_v11 = vld [vmem:[%s7340_s6 + $0x380] sm:$0xff]  ;;  %2209 = vmatprep.subr.bf16.mxu0 %v5448_v9  ;;  %v5575_v16 = vcombine.low %v891_v5, %v895_v6  ;;  %v828_v9 = vld [vmem:[%s7340_s6 + $0x5c8] sm:$0xff] }
 0x11c   : > { %v759_v12 = vld [vmem:[%s7340_s6 + $0x3a0] sm:$0xff]  ;;  %2210 = vmatpush2.bf16.msra.mxu0 %v5447_v15  ;;  %v692_v15 = vld [vmem:[%s7340_s6 + $0x188] sm:$0xff] }
 0x11d   : > { %v883_v13 = vld [vmem:[%s7340_s6 + $0x780] sm:$0xff]  ;;  %v5440_v17 = vcombine.high %v755_v11, %v759_v12  ;;  %2250 = vmatprep.subr.bf16.mxu1 %v5576_v10  ;;  %v5439_v23 = vcombine.low %v755_v11, %v759_v12  ;;  %v832_v10 = vld [vmem:[%s7340_s6 + $0x5e8] sm:$0xff] }
 0x11e   : > { %v887_v14 = vld [vmem:[%s7340_s6 + $0x7a0] sm:$0xff]  ;;  %2251 = vmatpush2.bf16.msra.mxu1 %v5575_v16  ;;  %v696_v16 = vld [vmem:[%s7340_s6 + $0x1a8] sm:$0xff] }
 0x11f   : > { %v5568_v18 = vcombine.high %v883_v13, %v887_v14  ;;  %v747_v19 = vld [vmem:[%s7340_s6 + $0x340] sm:$0xff]  ;;  %2211 = vmatprep.subr.bf16.mxu0 %v5440_v17  ;;  %v5567_v24 = vcombine.low %v883_v13, %v887_v14  ;;  %v5386_v13 = vcombine.high %v700_v7, %v704_v8  ;;  %v5514_v14 = vcombine.high %v828_v9, %v832_v10 }
 0x120   : > { %v751_v20 = vld [vmem:[%s7340_s6 + $0x360] sm:$0xff]  ;;  %2212 = vmatpush2.bf16.msra.mxu0 %v5439_v23  ;;  %v7460_v17 = vcombine.low %v7401_v54, %v7401_v54  ;;  %v5378_v23 = vcombine.high %v692_v15, %v696_v16  ;;  %v688_v54 = vld [vmem:[%s7340_s6 + $0x168] sm:$0xff] }
 0x121   : > { %v875_v21 = vld [vmem:[%s7340_s6 + $0x740] sm:$0xff]  ;;  %v5432_v25 = vcombine.high %v747_v19, %v751_v20  ;;  %2252 = vmatprep.subr.bf16.mxu1 %v5568_v18  ;;  %v5431_v31 = vcombine.low %v747_v19, %v751_v20  ;;  %v820_v18 = vld [vmem:[%s7340_s6 + $0x588] sm:$0xff]  ;;  %v7466_v20 = vcombine.low %v7404_v55, %v7404_v55  ;;  %v5377_v55 = vcombine.low %v692_v15, %v696_v16 }
 0x122   : > { %v879_v22 = vld [vmem:[%s7340_s6 + $0x760] sm:$0xff]  ;;  %2253 = vmatpush2.bf16.msra.mxu1 %v5567_v24  ;;  %v824_v19 = vld [vmem:[%s7340_s6 + $0x5a8] sm:$0xff] }
 0x123   : > { %v5560_v26 = vcombine.high %v875_v21, %v879_v22  ;;  %v739_v27 = vld [vmem:[%s7340_s6 + $0x300] sm:$0xff]  ;;  %2213 = vmatprep.subr.bf16.mxu0 %v5432_v25  ;;  %v5559_v32 = vcombine.low %v875_v21, %v879_v22  ;;  %v5385_v21 = vcombine.low %v700_v7, %v704_v8  ;;  %v5513_v22 = vcombine.low %v828_v9, %v832_v10  ;;  %v684_v25 = vld [vmem:[%s7340_s6 + $0x148] sm:$0xff] }
 0x124   : > { %v743_v28 = vld [vmem:[%s7340_s6 + $0x320] sm:$0xff]  ;;  %2214 = vmatpush2.bf16.msra.mxu0 %v5431_v31  ;;  %v5506_v24 = vcombine.high %v820_v18, %v824_v19  ;;  %v676_v31 = vld [vmem:[%s7340_s6 + $0x108] sm:$0xff] }
 0x125   : > { %v867_v29 = vld [vmem:[%s7340_s6 + $0x700] sm:$0xff]  ;;  %v5424_v33 = vcombine.high %v739_v27, %v743_v28  ;;  %2254 = vmatprep.subr.bf16.mxu1 %v5560_v26  ;;  %v5423_v39 = vcombine.low %v739_v27, %v743_v28  ;;  %v812_v26 = vld [vmem:[%s7340_s6 + $0x548] sm:$0xff]  ;;  %v5505_v28 = vcombine.low %v820_v18, %v824_v19 }
 0x126   : > { %v871_v30 = vld [vmem:[%s7340_s6 + $0x720] sm:$0xff]  ;;  %2255 = vmatpush2.bf16.msra.mxu1 %v5559_v32  ;;  %v816_v27 = vld [vmem:[%s7340_s6 + $0x568] sm:$0xff] }
 0x127   : > { %v5552_v34 = vcombine.high %v867_v29, %v871_v30  ;;  %v731_v35 = vld [vmem:[%s7340_s6 + $0x2c0] sm:$0xff]  ;;  %2215 = vmatprep.subr.bf16.mxu0 %v5424_v33  ;;  %v5551_v40 = vcombine.low %v867_v29, %v871_v30  ;;  %v5370_v29 = vcombine.high %v684_v25, %v688_v54  ;;  %v5498_v30 = vcombine.high %v812_v26, %v816_v27  ;;  %v680_v32 = vld [vmem:[%s7340_s6 + $0x128] sm:$0xff] }
 0x128   : > { %v735_v36 = vld [vmem:[%s7340_s6 + $0x2e0] sm:$0xff]  ;;  %2216 = vmatpush2.bf16.msra.mxu0 %v5423_v39  ;;  %v804_v33 = vld [vmem:[%s7340_s6 + $0x508] sm:$0xff] }
 0x129   : > { %v859_v37 = vld [vmem:[%s7340_s6 + $0x6c0] sm:$0xff]  ;;  %v5416_v41 = vcombine.high %v731_v35, %v735_v36  ;;  %2256 = vmatprep.subr.bf16.mxu1 %v5552_v34  ;;  %v5415_v47 = vcombine.low %v731_v35, %v735_v36  ;;  %v808_v34 = vld [vmem:[%s7340_s6 + $0x528] sm:$0xff]  ;;  %v5369_v35 = vcombine.low %v684_v25, %v688_v54  ;;  %v5497_v36 = vcombine.low %v812_v26, %v816_v27 }
 0x12a   : > { %v863_v38 = vld [vmem:[%s7340_s6 + $0x6e0] sm:$0xff]  ;;  %2257 = vmatpush2.bf16.msra.mxu1 %v5551_v40  ;;  %v668_v39 = vld [vmem:[%s7340_s6 + $0xc8] sm:$0xff] }
 0x12b   : > { %v5544_v42 = vcombine.high %v859_v37, %v863_v38  ;;  %v723_v43 = vld [vmem:[%s7340_s6 + $0x280] sm:$0xff]  ;;  %2217 = vmatprep.subr.bf16.mxu0 %v5416_v41  ;;  %v5543_v48 = vcombine.low %v859_v37, %v863_v38  ;;  %v5362_v37 = vcombine.high %v676_v31, %v680_v32  ;;  %v5490_v38 = vcombine.high %v804_v33, %v808_v34  ;;  %v672_v40 = vld [vmem:[%s7340_s6 + $0xe8] sm:$0xff] }
 0x12c   : > { %v727_v44 = vld [vmem:[%s7340_s6 + $0x2a0] sm:$0xff]  ;;  %2218 = vmatpush2.bf16.msra.mxu0 %v5415_v47  ;;  %v796_v41 = vld [vmem:[%s7340_s6 + $0x4c8] sm:$0xff] }
 0x12d   : > { %v851_v45 = vld [vmem:[%s7340_s6 + $0x680] sm:$0xff]  ;;  %v5408_v49 = vcombine.high %v723_v43, %v727_v44  ;;  %2258 = vmatprep.subr.bf16.mxu1 %v5544_v42  ;;  %v5407_v57 = vcombine.low %v723_v43, %v727_v44  ;;  %v800_v42 = vld [vmem:[%s7340_s6 + $0x4e8] sm:$0xff]  ;;  %v5361_v43 = vcombine.low %v676_v31, %v680_v32  ;;  %v5489_v44 = vcombine.low %v804_v33, %v808_v34 }
 0x12e   : > { %v855_v46 = vld [vmem:[%s7340_s6 + $0x6a0] sm:$0xff]  ;;  %2259 = vmatpush2.bf16.msra.mxu1 %v5543_v48  ;;  %v660_v47 = vld [vmem:[%s7340_s6 + $0x88] sm:$0xff] }
 0x12f   : > { %v5536_v50 = vcombine.high %v851_v45, %v855_v46  ;;  %v715_v51 = vld [vmem:[%s7340_s6 + $0x240] sm:$0xff]  ;;  %2219 = vmatprep.subr.bf16.mxu0 %v5408_v49  ;;  %v5535_v58 = vcombine.low %v851_v45, %v855_v46  ;;  %v5354_v45 = vcombine.high %v668_v39, %v672_v40  ;;  %v5482_v46 = vcombine.high %v796_v41, %v800_v42  ;;  %v664_v48 = vld [vmem:[%s7340_s6 + $0xa8] sm:$0xff] }
 0x130   : > { %v719_v52 = vld [vmem:[%s7340_s6 + $0x260] sm:$0xff]  ;;  %2220 = vmatpush2.bf16.msra.mxu0 %v5407_v57  ;;  %v788_v49 = vld [vmem:[%s7340_s6 + $0x488] sm:$0xff] }
 0x131   : > { %v843_v53 = vld [vmem:[%s7340_s6 + $0x640] sm:$0xff]  ;;  %v5400_v61 = vcombine.high %v715_v51, %v719_v52  ;;  %2260 = vmatprep.subr.bf16.mxu1 %v5536_v50  ;;  %v5399_v3 = vcombine.low %v715_v51, %v719_v52  ;;  %v792_v50 = vld [vmem:[%s7340_s6 + $0x4a8] sm:$0xff]  ;;  %v5353_v51 = vcombine.low %v668_v39, %v672_v40  ;;  %v5481_v52 = vcombine.low %v796_v41, %v800_v42 }
 0x132   : > { %v847_v56 = vld [vmem:[%s7340_s6 + $0x660] sm:$0xff]  ;;  %2261 = vmatpush2.bf16.msra.mxu1 %v5535_v58  ;;  %v652_v57 = vld [vmem:[%s7340_s6 + $0x48] sm:$0xff] }
 0x133   : > { %v5528_v62 = vcombine.high %v843_v53, %v847_v56  ;;  %v707_v63 = vld [vmem:[%s7340_s6 + $0x200] sm:$0xff]  ;;  %2221 = vmatprep.subr.bf16.mxu0 %v5400_v61  ;;  %v5527_v4 = vcombine.low %v843_v53, %v847_v56  ;;  %v5346_v53 = vcombine.high %v660_v47, %v664_v48  ;;  %v5474_v56 = vcombine.high %v788_v49, %v792_v50  ;;  %v656_v58 = vld [vmem:[%s7340_s6 + $0x68] sm:$0xff] }
 0x134   : > { %v711_v0 = vld [vmem:[%s7340_s6 + $0x220] sm:$0xff]  ;;  %2222 = vmatpush2.bf16.msra.mxu0 %v5399_v3  ;;  %v780_v61 = vld [vmem:[%s7340_s6 + $0x448] sm:$0xff]  ;;  %v5337_v7 = vcombine.low %v652_v57, %v656_v58 }
 0x135   : > { %v835_v1 = vld [vmem:[%s7340_s6 + $0x600] sm:$0xff]  ;;  %v5392_v5 = vcombine.high %v707_v63, %v711_v0  ;;  %2262 = vmatprep.subr.bf16.mxu1 %v5528_v62  ;;  %v5391_v11 = vcombine.low %v707_v63, %v711_v0  ;;  %v784_v62 = vld [vmem:[%s7340_s6 + $0x468] sm:$0xff]  ;;  %v5345_v63 = vcombine.low %v660_v47, %v664_v48  ;;  %v5473_v0 = vcombine.low %v788_v49, %v792_v50 }
 0x136   : > { %v839_v2 = vld [vmem:[%s7340_s6 + $0x620] sm:$0xff]  ;;  %2263 = vmatpush2.bf16.msra.mxu1 %v5527_v4  ;;  %v644_v3 = vld [vmem:[%s7340_s6 + $0x8] sm:$0xff]  ;;  %v5465_v8 = vcombine.low %v780_v61, %v784_v62 }
 0x137   : > { %v5520_v6 = vcombine.high %v835_v1, %v839_v2  ;;  %2223 = vmatprep.subr.bf16.mxu0 %v5392_v5  ;;  %v5519_v12 = vcombine.low %v835_v1, %v839_v2  ;;  %v5338_v1 = vcombine.high %v652_v57, %v656_v58  ;;  %v5466_v2 = vcombine.high %v780_v61, %v784_v62  ;;  %v648_v4 = vld [vmem:[%s7340_s6 + $0x28] sm:$0xff] }
 0x138   : > { %2224 = vmatpush2.bf16.msra.mxu0 %v5391_v11  ;;  %v772_v5 = vld [vmem:[%s7340_s6 + $0x408] sm:$0xff]  ;;  %v5330_v9 = vcombine.high %v644_v3, %v648_v4  ;;  %v5329_v15 = vcombine.low %v644_v3, %v648_v4 }
 0x139   : > { %2264 = vmatprep.subr.bf16.mxu1 %v5520_v6  ;;  %2275 = vmatprep.subr.bf16.mxu0 %v5386_v13  ;;  %v776_v6 = vld [vmem:[%s7340_s6 + $0x428] sm:$0xff] }
 0x13a   : > { %2265 = vmatpush2.bf16.msra.mxu1 %v5519_v12  ;;  %v5458_v10 = vcombine.high %v772_v5, %v776_v6  ;;  %v764_v11 = vld [vmem:[%s7340_s6 + $0x3c8] sm:$0xff]  ;;  %v5457_v16 = vcombine.low %v772_v5, %v776_v6 }
 0x13b   : > { %2316 = vmatprep.subr.bf16.mxu1 %v5514_v14  ;;  %2226 = vmatmul.mubr.bf16.vlgmr.msra.gmra.mxu0 %v7460_v17  ;;  %v768_v12 = vld [vmem:[%s7340_s6 + $0x3e8] sm:$0xff] }
 0x13c   : > { %2276 = vmatpush1.bf16.msra.mxu0 %v5385_v21  ;;  %2307 = vmatprep.mubr.bf16.mxu0 %v7410_v59  ;;  %v892_v13 = vld [vmem:[%s7340_s6 + $0x7c8] sm:$0xff]  ;;  %v5450_v18 = vcombine.high %v764_v11, %v768_v12  ;;  %v5449_v25 = vcombine.low %v764_v11, %v768_v12 }
 0x13d   : > { %2267 = vmatmul.mubr.bf16.vlgmr.msra.gmra.mxu1 %v7466_v20  ;;  %2277 = vmatprep.subr.bf16.mxu0 %v5378_v23  ;;  %v896_v14 = vld [vmem:[%s7340_s6 + $0x7e8] sm:$0xff] }
 0x13e   : > { %2317 = vmatpush1.bf16.msra.mxu1 %v5513_v22  ;;  %2348 = vmatprep.mubr.bf16.mxu1 %v7414_v60  ;;  %v5578_v19 = vcombine.high %v892_v13, %v896_v14  ;;  %v756_v21 = vld [vmem:[%s7340_s6 + $0x388] sm:$0xff]  ;;  %v5577_v54 = vcombine.low %v892_v13, %v896_v14 }
 0x13f   : > { %2318 = vmatprep.subr.bf16.mxu1 %v5506_v24  ;;  %v760_v22 = vld [vmem:[%s7340_s6 + $0x3a8] sm:$0xff] }
 0x140   : > { %2278 = vmatpush1.bf16.msra.mxu0 %v5377_v55  ;;  %v884_v23 = vld [vmem:[%s7340_s6 + $0x788] sm:$0xff]  ;;  %v5442_v26 = vcombine.high %v756_v21, %v760_v22  ;;  %v5441_v31 = vcombine.low %v756_v21, %v760_v22 }
 0x141   : > { %2279 = vmatprep.subr.bf16.mxu0 %v5370_v29  ;;  %v888_v24 = vld [vmem:[%s7340_s6 + $0x7a8] sm:$0xff] }
 0x142   : > { %2319 = vmatpush1.bf16.msra.mxu1 %v5505_v28  ;;  %v5570_v27 = vcombine.high %v884_v23, %v888_v24  ;;  %v748_v55 = vld [vmem:[%s7340_s6 + $0x348] sm:$0xff]  ;;  %v5569_v32 = vcombine.low %v884_v23, %v888_v24 }
 0x143   : > { %2320 = vmatprep.subr.bf16.mxu1 %v5498_v30  ;;  %v752_v28 = vld [vmem:[%s7340_s6 + $0x368] sm:$0xff] }
 0x144   : > { %2280 = vmatpush1.bf16.msra.mxu0 %v5369_v35  ;;  %v876_v29 = vld [vmem:[%s7340_s6 + $0x748] sm:$0xff]  ;;  %v5434_v33 = vcombine.high %v748_v55, %v752_v28  ;;  %v5433_v39 = vcombine.low %v748_v55, %v752_v28 }
 0x145   : > { %2281 = vmatprep.subr.bf16.mxu0 %v5362_v37  ;;  %v880_v30 = vld [vmem:[%s7340_s6 + $0x768] sm:$0xff] }
 0x146   : > { %2321 = vmatpush1.bf16.msra.mxu1 %v5497_v36  ;;  %v5562_v34 = vcombine.high %v876_v29, %v880_v30  ;;  %v740_v35 = vld [vmem:[%s7340_s6 + $0x308] sm:$0xff]  ;;  %v5561_v40 = vcombine.low %v876_v29, %v880_v30 }
 0x147   : > { %2322 = vmatprep.subr.bf16.mxu1 %v5490_v38  ;;  %v744_v36 = vld [vmem:[%s7340_s6 + $0x328] sm:$0xff] }
 0x148   : > { %2282 = vmatpush1.bf16.msra.mxu0 %v5361_v43  ;;  %v868_v37 = vld [vmem:[%s7340_s6 + $0x708] sm:$0xff]  ;;  %v5426_v41 = vcombine.high %v740_v35, %v744_v36  ;;  %v5425_v47 = vcombine.low %v740_v35, %v744_v36 }
 0x149   : > { %2283 = vmatprep.subr.bf16.mxu0 %v5354_v45  ;;  %v872_v38 = vld [vmem:[%s7340_s6 + $0x728] sm:$0xff] }
 0x14a   : > { %2323 = vmatpush1.bf16.msra.mxu1 %v5489_v44  ;;  %v5554_v42 = vcombine.high %v868_v37, %v872_v38  ;;  %v732_v43 = vld [vmem:[%s7340_s6 + $0x2c8] sm:$0xff]  ;;  %v5553_v48 = vcombine.low %v868_v37, %v872_v38 }
 0x14b   : > { %2324 = vmatprep.subr.bf16.mxu1 %v5482_v46  ;;  %v736_v44 = vld [vmem:[%s7340_s6 + $0x2e8] sm:$0xff] }
 0x14c   : > { %2284 = vmatpush1.bf16.msra.mxu0 %v5353_v51  ;;  %v860_v45 = vld [vmem:[%s7340_s6 + $0x6c8] sm:$0xff]  ;;  %v5418_v49 = vcombine.high %v732_v43, %v736_v44  ;;  %v5417_v57 = vcombine.low %v732_v43, %v736_v44 }
 0x14d   : > { %2285 = vmatprep.subr.bf16.mxu0 %v5346_v53  ;;  %v864_v46 = vld [vmem:[%s7340_s6 + $0x6e8] sm:$0xff] }
 0x14e   : > { %2325 = vmatpush1.bf16.msra.mxu1 %v5481_v52  ;;  %v5546_v50 = vcombine.high %v860_v45, %v864_v46  ;;  %v724_v51 = vld [vmem:[%s7340_s6 + $0x288] sm:$0xff]  ;;  %v5545_v58 = vcombine.low %v860_v45, %v864_v46 }
 0x14f   : > { %2326 = vmatprep.subr.bf16.mxu1 %v5474_v56  ;;  %v728_v52 = vld [vmem:[%s7340_s6 + $0x2a8] sm:$0xff] }
 0x150   : > { %2286 = vmatpush1.bf16.msra.mxu0 %v5345_v63  ;;  %v852_v53 = vld [vmem:[%s7340_s6 + $0x688] sm:$0xff]  ;;  %v5410_v61 = vcombine.high %v724_v51, %v728_v52  ;;  %v5409_v3 = vcombine.low %v724_v51, %v728_v52 }
 0x151   : > { %2287 = vmatprep.subr.bf16.mxu0 %v5338_v1  ;;  %v856_v56 = vld [vmem:[%s7340_s6 + $0x6a8] sm:$0xff] }
 0x152   : > { %2327 = vmatpush1.bf16.msra.mxu1 %v5473_v0  ;;  %v5538_v62 = vcombine.high %v852_v53, %v856_v56  ;;  %v716_v63 = vld [vmem:[%s7340_s6 + $0x248] sm:$0xff]  ;;  %v5537_v4 = vcombine.low %v852_v53, %v856_v56 }
 0x153   : > { %2328 = vmatprep.subr.bf16.mxu1 %v5466_v2  ;;  %v720_v0 = vld [vmem:[%s7340_s6 + $0x268] sm:$0xff] }
 0x154   : > { %2288 = vmatpush1.bf16.msra.mxu0 %v5337_v7  ;;  %v844_v1 = vld [vmem:[%s7340_s6 + $0x648] sm:$0xff]  ;;  %v5402_v5 = vcombine.high %v716_v63, %v720_v0  ;;  %v5401_v11 = vcombine.low %v716_v63, %v720_v0 }
 0x155   : > { %2289 = vmatprep.subr.bf16.mxu0 %v5330_v9  ;;  %v848_v2 = vld [vmem:[%s7340_s6 + $0x668] sm:$0xff] }
 0x156   : > { %2329 = vmatpush1.bf16.msra.mxu1 %v5465_v8  ;;  %v5530_v6 = vcombine.high %v844_v1, %v848_v2  ;;  %v708_v7 = vld [vmem:[%s7340_s6 + $0x208] sm:$0xff]  ;;  %v5529_v12 = vcombine.low %v844_v1, %v848_v2 }
 0x157   : > { %2330 = vmatprep.subr.bf16.mxu1 %v5458_v10  ;;  %v712_v8 = vld [vmem:[%s7340_s6 + $0x228] sm:$0xff] }
 0x158   : > { %2290 = vmatpush1.bf16.msra.mxu0 %v5329_v15  ;;  %v836_v9 = vld [vmem:[%s7340_s6 + $0x608] sm:$0xff]  ;;  %v5394_v13 = vcombine.high %v708_v7, %v712_v8  ;;  %v701_v15 = vld [vmem:[%s7340_s6 + $0x1d0] sm:$0xff]  ;;  %v5393_v21 = vcombine.low %v708_v7, %v712_v8 }
 0x159   : > { %2291 = vmatprep.subr.bf16.mxu0 %v5450_v18  ;;  %v840_v10 = vld [vmem:[%s7340_s6 + $0x628] sm:$0xff]  ;;  %v829_v18 = vld [vmem:[%s7340_s6 + $0x5d0] sm:$0xff] }
 0x15a   : > { %2331 = vmatpush1.bf16.msra.mxu1 %v5457_v16  ;;  %v5522_v14 = vcombine.high %v836_v9, %v840_v10  ;;  %v705_v16 = vld [vmem:[%s7340_s6 + $0x1f0] sm:$0xff]  ;;  %v5521_v22 = vcombine.low %v836_v9, %v840_v10 }
 0x15b   : > { %2332 = vmatprep.subr.bf16.mxu1 %v5578_v19  ;;  %v833_v19 = vld [vmem:[%s7340_s6 + $0x5f0] sm:$0xff]  ;;  %v5388_v23 = vcombine.high %v701_v15, %v705_v16  ;;  %v5387_v55 = vcombine.low %v701_v15, %v705_v16 }
 0x15c   : > { %2292 = vmatpush2.bf16.msra.mxu0 %v5449_v25  ;;  %v5516_v24 = vcombine.high %v829_v18, %v833_v19  ;;  %v693_v25 = vld [vmem:[%s7340_s6 + $0x190] sm:$0xff]  ;;  %v5515_v28 = vcombine.low %v829_v18, %v833_v19 }
 0x15d   : > { %2293 = vmatprep.subr.bf16.mxu0 %v5442_v26  ;;  %v821_v26 = vld [vmem:[%s7340_s6 + $0x590] sm:$0xff] }
 0x15e   : > { %2333 = vmatpush2.bf16.msra.mxu1 %v5577_v54  ;;  %v697_v54 = vld [vmem:[%s7340_s6 + $0x1b0] sm:$0xff] }
 0x15f   : > { %2334 = vmatprep.subr.bf16.mxu1 %v5570_v27  ;;  %v825_v27 = vld [vmem:[%s7340_s6 + $0x5b0] sm:$0xff]  ;;  %v5380_v29 = vcombine.high %v693_v25, %v697_v54  ;;  %v5379_v35 = vcombine.low %v693_v25, %v697_v54 }
 0x160   : > { %2294 = vmatpush2.bf16.msra.mxu0 %v5441_v31  ;;  %v5508_v30 = vcombine.high %v821_v26, %v825_v27  ;;  %v685_v31 = vld [vmem:[%s7340_s6 + $0x150] sm:$0xff]  ;;  %v5507_v36 = vcombine.low %v821_v26, %v825_v27 }
 0x161   : > { %2295 = vmatprep.subr.bf16.mxu0 %v5434_v33  ;;  %v813_v33 = vld [vmem:[%s7340_s6 + $0x550] sm:$0xff] }
 0x162   : > { %2335 = vmatpush2.bf16.msra.mxu1 %v5569_v32  ;;  %v689_v32 = vld [vmem:[%s7340_s6 + $0x170] sm:$0xff] }
 0x163   : > { %2336 = vmatprep.subr.bf16.mxu1 %v5562_v34  ;;  %v817_v34 = vld [vmem:[%s7340_s6 + $0x570] sm:$0xff]  ;;  %v5372_v37 = vcombine.high %v685_v31, %v689_v32  ;;  %v5371_v43 = vcombine.low %v685_v31, %v689_v32 }
 0x164   : > { %2296 = vmatpush2.bf16.msra.mxu0 %v5433_v39  ;;  %v5500_v38 = vcombine.high %v813_v33, %v817_v34  ;;  %v677_v39 = vld [vmem:[%s7340_s6 + $0x110] sm:$0xff]  ;;  %v5499_v44 = vcombine.low %v813_v33, %v817_v34 }
 0x165   : > { %2297 = vmatprep.subr.bf16.mxu0 %v5426_v41  ;;  %v805_v41 = vld [vmem:[%s7340_s6 + $0x510] sm:$0xff] }
 0x166   : > { %2337 = vmatpush2.bf16.msra.mxu1 %v5561_v40  ;;  %v681_v40 = vld [vmem:[%s7340_s6 + $0x130] sm:$0xff] }
 0x167   : > { %2338 = vmatprep.subr.bf16.mxu1 %v5554_v42  ;;  %v809_v42 = vld [vmem:[%s7340_s6 + $0x530] sm:$0xff]  ;;  %v5364_v45 = vcombine.high %v677_v39, %v681_v40  ;;  %v5363_v51 = vcombine.low %v677_v39, %v681_v40 }
 0x168   : > { %2298 = vmatpush2.bf16.msra.mxu0 %v5425_v47  ;;  %v5492_v46 = vcombine.high %v805_v41, %v809_v42  ;;  %v669_v47 = vld [vmem:[%s7340_s6 + $0xd0] sm:$0xff]  ;;  %v5491_v52 = vcombine.low %v805_v41, %v809_v42 }
 0x169   : > { %2299 = vmatprep.subr.bf16.mxu0 %v5418_v49  ;;  %v797_v49 = vld [vmem:[%s7340_s6 + $0x4d0] sm:$0xff] }
 0x16a   : > { %2339 = vmatpush2.bf16.msra.mxu1 %v5553_v48  ;;  %v673_v48 = vld [vmem:[%s7340_s6 + $0xf0] sm:$0xff] }
 0x16b   : > { %2340 = vmatprep.subr.bf16.mxu1 %v5546_v50  ;;  %v801_v50 = vld [vmem:[%s7340_s6 + $0x4f0] sm:$0xff]  ;;  %v5356_v53 = vcombine.high %v669_v47, %v673_v48  ;;  %v5355_v63 = vcombine.low %v669_v47, %v673_v48 }
 0x16c   : > { %2300 = vmatpush2.bf16.msra.mxu0 %v5417_v57  ;;  %v5484_v56 = vcombine.high %v797_v49, %v801_v50  ;;  %v661_v57 = vld [vmem:[%s7340_s6 + $0x90] sm:$0xff]  ;;  %v5483_v0 = vcombine.low %v797_v49, %v801_v50 }
 0x16d   : > { %2301 = vmatprep.subr.bf16.mxu0 %v5410_v61  ;;  %v789_v61 = vld [vmem:[%s7340_s6 + $0x490] sm:$0xff] }
 0x16e   : > { %2341 = vmatpush2.bf16.msra.mxu1 %v5545_v58  ;;  %v665_v58 = vld [vmem:[%s7340_s6 + $0xb0] sm:$0xff] }
 0x16f   : > { %2342 = vmatprep.subr.bf16.mxu1 %v5538_v62  ;;  %v793_v62 = vld [vmem:[%s7340_s6 + $0x4b0] sm:$0xff]  ;;  %v5348_v1 = vcombine.high %v661_v57, %v665_v58  ;;  %v5347_v7 = vcombine.low %v661_v57, %v665_v58 }
 0x170   : > { %2302 = vmatpush2.bf16.msra.mxu0 %v5409_v3  ;;  %v5476_v2 = vcombine.high %v789_v61, %v793_v62  ;;  %v653_v3 = vld [vmem:[%s7340_s6 + $0x50] sm:$0xff]  ;;  %v5475_v8 = vcombine.low %v789_v61, %v793_v62 }
 0x171   : > { %2303 = vmatprep.subr.bf16.mxu0 %v5402_v5  ;;  %v781_v5 = vld [vmem:[%s7340_s6 + $0x450] sm:$0xff] }
 0x172   : > { %2343 = vmatpush2.bf16.msra.mxu1 %v5537_v4  ;;  %v657_v4 = vld [vmem:[%s7340_s6 + $0x70] sm:$0xff] }
 0x173   : > { %2344 = vmatprep.subr.bf16.mxu1 %v5530_v6  ;;  %v785_v6 = vld [vmem:[%s7340_s6 + $0x470] sm:$0xff]  ;;  %v5340_v9 = vcombine.high %v653_v3, %v657_v4  ;;  %v5339_v15 = vcombine.low %v653_v3, %v657_v4 }
 0x174   : > { %2304 = vmatpush2.bf16.msra.mxu0 %v5401_v11  ;;  %v5468_v10 = vcombine.high %v781_v5, %v785_v6  ;;  %v645_v11 = vld [vmem:[%s7340_s6 + $0x10] sm:$0xff]  ;;  %v5467_v16 = vcombine.low %v781_v5, %v785_v6 }
 0x175   : > { %2305 = vmatprep.subr.bf16.mxu0 %v5394_v13  ;;  %v773_v13 = vld [vmem:[%s7340_s6 + $0x410] sm:$0xff] }
 0x176   : > { %2345 = vmatpush2.bf16.msra.mxu1 %v5529_v12  ;;  %v649_v12 = vld [vmem:[%s7340_s6 + $0x30] sm:$0xff] }
 0x177   : > { %2346 = vmatprep.subr.bf16.mxu1 %v5522_v14  ;;  %v777_v14 = vld [vmem:[%s7340_s6 + $0x430] sm:$0xff]  ;;  %v5332_v18 = vcombine.high %v645_v11, %v649_v12  ;;  %v5331_v25 = vcombine.low %v645_v11, %v649_v12 }
 0x178   : > { %2306 = vmatpush2.bf16.msra.mxu0 %v5393_v21  ;;  %v5460_v19 = vcombine.high %v773_v13, %v777_v14  ;;  %v765_v21 = vld [vmem:[%s7340_s6 + $0x3d0] sm:$0xff]  ;;  %v5459_v54 = vcombine.low %v773_v13, %v777_v14 }
 0x179   : > { %2357 = vmatprep.subr.bf16.mxu0 %v5388_v23  ;;  %v893_v23 = vld [vmem:[%s7340_s6 + $0x7d0] sm:$0xff] }
 0x17a   : > { %2347 = vmatpush2.bf16.msra.mxu1 %v5521_v22  ;;  %v769_v22 = vld [vmem:[%s7340_s6 + $0x3f0] sm:$0xff] }
 0x17b   : > { %2398 = vmatprep.subr.bf16.mxu1 %v5516_v24  ;;  %2308 = vmatmul.mubr.bf16.vlgmr.msra.gmra.mxu0 %v7460_v17  ;;  %v897_v24 = vld [vmem:[%s7340_s6 + $0x7f0] sm:$0xff]  ;;  %v5452_v26 = vcombine.high %v765_v21, %v769_v22  ;;  %v5451_v31 = vcombine.low %v765_v21, %v769_v22 }
 0x17c   : > { %2358 = vmatpush1.bf16.msra.mxu0 %v5387_v55  ;;  %2389 = vmatprep.mubr.bf16.mxu0 %v7410_v59  ;;  %v5580_v27 = vcombine.high %v893_v23, %v897_v24  ;;  %v757_v55 = vld [vmem:[%s7340_s6 + $0x390] sm:$0xff]  ;;  %v5579_v32 = vcombine.low %v893_v23, %v897_v24 }
 0x17d   : > { %2349 = vmatmul.mubr.bf16.vlgmr.msra.gmra.mxu1 %v7466_v20  ;;  %2359 = vmatprep.subr.bf16.mxu0 %v5380_v29  ;;  %v885_v29 = vld [vmem:[%s7340_s6 + $0x790] sm:$0xff] }
 0x17e   : > { %2399 = vmatpush1.bf16.msra.mxu1 %v5515_v28  ;;  %2430 = vmatprep.mubr.bf16.mxu1 %v7414_v60  ;;  %v761_v28 = vld [vmem:[%s7340_s6 + $0x3b0] sm:$0xff] }
 0x17f   : > { %2400 = vmatprep.subr.bf16.mxu1 %v5508_v30  ;;  %v889_v30 = vld [vmem:[%s7340_s6 + $0x7b0] sm:$0xff]  ;;  %v5444_v33 = vcombine.high %v757_v55, %v761_v28  ;;  %v5443_v39 = vcombine.low %v757_v55, %v761_v28 }
 0x180   : > { %2360 = vmatpush1.bf16.msra.mxu0 %v5379_v35  ;;  %v5572_v34 = vcombine.high %v885_v29, %v889_v30  ;;  %v749_v35 = vld [vmem:[%s7340_s6 + $0x350] sm:$0xff]  ;;  %v5571_v40 = vcombine.low %v885_v29, %v889_v30 }
 0x181   : > { %2361 = vmatprep.subr.bf16.mxu0 %v5372_v37  ;;  %v877_v37 = vld [vmem:[%s7340_s6 + $0x750] sm:$0xff] }
 0x182   : > { %2401 = vmatpush1.bf16.msra.mxu1 %v5507_v36  ;;  %v753_v36 = vld [vmem:[%s7340_s6 + $0x370] sm:$0xff] }
 0x183   : > { %2402 = vmatprep.subr.bf16.mxu1 %v5500_v38  ;;  %v881_v38 = vld [vmem:[%s7340_s6 + $0x770] sm:$0xff]  ;;  %v5436_v41 = vcombine.high %v749_v35, %v753_v36  ;;  %v5435_v47 = vcombine.low %v749_v35, %v753_v36 }
 0x184   : > { %2362 = vmatpush1.bf16.msra.mxu0 %v5371_v43  ;;  %v5564_v42 = vcombine.high %v877_v37, %v881_v38  ;;  %v741_v43 = vld [vmem:[%s7340_s6 + $0x310] sm:$0xff]  ;;  %v5563_v48 = vcombine.low %v877_v37, %v881_v38 }
 0x185   : > { %2363 = vmatprep.subr.bf16.mxu0 %v5364_v45  ;;  %v869_v45 = vld [vmem:[%s7340_s6 + $0x710] sm:$0xff] }
 0x186   : > { %2403 = vmatpush1.bf16.msra.mxu1 %v5499_v44  ;;  %v745_v44 = vld [vmem:[%s7340_s6 + $0x330] sm:$0xff] }
 0x187   : > { %2404 = vmatprep.subr.bf16.mxu1 %v5492_v46  ;;  %v873_v46 = vld [vmem:[%s7340_s6 + $0x730] sm:$0xff]  ;;  %v5428_v49 = vcombine.high %v741_v43, %v745_v44  ;;  %v5427_v57 = vcombine.low %v741_v43, %v745_v44 }
 0x188   : > { %2364 = vmatpush1.bf16.msra.mxu0 %v5363_v51  ;;  %v5556_v50 = vcombine.high %v869_v45, %v873_v46  ;;  %v733_v51 = vld [vmem:[%s7340_s6 + $0x2d0] sm:$0xff]  ;;  %v5555_v58 = vcombine.low %v869_v45, %v873_v46 }
 0x189   : > { %2365 = vmatprep.subr.bf16.mxu0 %v5356_v53  ;;  %v861_v53 = vld [vmem:[%s7340_s6 + $0x6d0] sm:$0xff] }
 0x18a   : > { %2405 = vmatpush1.bf16.msra.mxu1 %v5491_v52  ;;  %v737_v52 = vld [vmem:[%s7340_s6 + $0x2f0] sm:$0xff] }
 0x18b   : > { %2406 = vmatprep.subr.bf16.mxu1 %v5484_v56  ;;  %v865_v56 = vld [vmem:[%s7340_s6 + $0x6f0] sm:$0xff]  ;;  %v5420_v61 = vcombine.high %v733_v51, %v737_v52  ;;  %v5419_v3 = vcombine.low %v733_v51, %v737_v52 }
 0x18c   : > { %2366 = vmatpush1.bf16.msra.mxu0 %v5355_v63  ;;  %v5548_v62 = vcombine.high %v861_v53, %v865_v56  ;;  %v725_v63 = vld [vmem:[%s7340_s6 + $0x290] sm:$0xff]  ;;  %v5547_v4 = vcombine.low %v861_v53, %v865_v56 }
 0x18d   : > { %2367 = vmatprep.subr.bf16.mxu0 %v5348_v1  ;;  %v853_v1 = vld [vmem:[%s7340_s6 + $0x690] sm:$0xff] }
 0x18e   : > { %2407 = vmatpush1.bf16.msra.mxu1 %v5483_v0  ;;  %v729_v0 = vld [vmem:[%s7340_s6 + $0x2b0] sm:$0xff] }
 0x18f   : > { %2408 = vmatprep.subr.bf16.mxu1 %v5476_v2  ;;  %v857_v2 = vld [vmem:[%s7340_s6 + $0x6b0] sm:$0xff]  ;;  %v5412_v5 = vcombine.high %v725_v63, %v729_v0  ;;  %v5411_v11 = vcombine.low %v725_v63, %v729_v0 }
 0x190   : > { %2368 = vmatpush1.bf16.msra.mxu0 %v5347_v7  ;;  %v5540_v6 = vcombine.high %v853_v1, %v857_v2  ;;  %v717_v7 = vld [vmem:[%s7340_s6 + $0x250] sm:$0xff]  ;;  %v5539_v12 = vcombine.low %v853_v1, %v857_v2  ;;  %v662_v1 = vld [vmem:[%s7340_s6 + $0x98] sm:$0xff] }
 0x191   : > { %2369 = vmatprep.subr.bf16.mxu0 %v5340_v9  ;;  %v845_v9 = vld [vmem:[%s7340_s6 + $0x650] sm:$0xff]  ;;  %v666_v2 = vld [vmem:[%s7340_s6 + $0xb8] sm:$0xff] }
 0x192   : > { %2409 = vmatpush1.bf16.msra.mxu1 %v5475_v8  ;;  %v721_v8 = vld [vmem:[%s7340_s6 + $0x270] sm:$0xff] }
 0x193   : > { %2410 = vmatprep.subr.bf16.mxu1 %v5468_v10  ;;  %v849_v10 = vld [vmem:[%s7340_s6 + $0x670] sm:$0xff]  ;;  %v5404_v13 = vcombine.high %v717_v7, %v721_v8  ;;  %v5403_v21 = vcombine.low %v717_v7, %v721_v8  ;;  %v5350_v7 = vcombine.high %v662_v1, %v666_v2 }
 0x194   : > { %2370 = vmatpush1.bf16.msra.mxu0 %v5339_v15  ;;  %v5532_v14 = vcombine.high %v845_v9, %v849_v10  ;;  %v709_v15 = vld [vmem:[%s7340_s6 + $0x210] sm:$0xff]  ;;  %v5531_v22 = vcombine.low %v845_v9, %v849_v10  ;;  %v654_v9 = vld [vmem:[%s7340_s6 + $0x58] sm:$0xff] }
 0x195   : > { %2371 = vmatprep.subr.bf16.mxu0 %v5332_v18  ;;  %v837_v18 = vld [vmem:[%s7340_s6 + $0x610] sm:$0xff]  ;;  %v658_v10 = vld [vmem:[%s7340_s6 + $0x78] sm:$0xff] }
 0x196   : > { %2411 = vmatpush1.bf16.msra.mxu1 %v5467_v16  ;;  %v713_v16 = vld [vmem:[%s7340_s6 + $0x230] sm:$0xff] }
 0x197   : > { %2412 = vmatprep.subr.bf16.mxu1 %v5460_v19  ;;  %v841_v19 = vld [vmem:[%s7340_s6 + $0x630] sm:$0xff]  ;;  %v5396_v23 = vcombine.high %v709_v15, %v713_v16  ;;  %v5395_v55 = vcombine.low %v709_v15, %v713_v16  ;;  %v5342_v15 = vcombine.high %v654_v9, %v658_v10 }
 0x198   : > { %2372 = vmatpush1.bf16.msra.mxu0 %v5331_v25  ;;  %v5524_v24 = vcombine.high %v837_v18, %v841_v19  ;;  %v702_v25 = vld [vmem:[%s7340_s6 + $0x1d8] sm:$0xff]  ;;  %v5523_v28 = vcombine.low %v837_v18, %v841_v19 }
 0x199   : > { %2373 = vmatprep.subr.bf16.mxu0 %v5452_v26  ;;  %v830_v26 = vld [vmem:[%s7340_s6 + $0x5d8] sm:$0xff] }
 0x19a   : > { %2413 = vmatpush1.bf16.msra.mxu1 %v5459_v54  ;;  %v706_v54 = vld [vmem:[%s7340_s6 + $0x1f8] sm:$0xff] }
 0x19b   : > { %2414 = vmatprep.subr.bf16.mxu1 %v5580_v27  ;;  %v834_v27 = vld [vmem:[%s7340_s6 + $0x5f8] sm:$0xff]  ;;  %v5390_v29 = vcombine.high %v702_v25, %v706_v54  ;;  %v5389_v35 = vcombine.low %v702_v25, %v706_v54 }
 0x19c   : > { %2374 = vmatpush2.bf16.msra.mxu0 %v5451_v31  ;;  %v5518_v30 = vcombine.high %v830_v26, %v834_v27  ;;  %v694_v31 = vld [vmem:[%s7340_s6 + $0x198] sm:$0xff]  ;;  %v5517_v36 = vcombine.low %v830_v26, %v834_v27 }
 0x19d   : > { %2375 = vmatprep.subr.bf16.mxu0 %v5444_v33  ;;  %v822_v33 = vld [vmem:[%s7340_s6 + $0x598] sm:$0xff] }
 0x19e   : > { %2415 = vmatpush2.bf16.msra.mxu1 %v5579_v32  ;;  %v698_v32 = vld [vmem:[%s7340_s6 + $0x1b8] sm:$0xff] }
 0x19f   : > { %2416 = vmatprep.subr.bf16.mxu1 %v5572_v34  ;;  %v826_v34 = vld [vmem:[%s7340_s6 + $0x5b8] sm:$0xff]  ;;  %v5382_v37 = vcombine.high %v694_v31, %v698_v32  ;;  %v5381_v43 = vcombine.low %v694_v31, %v698_v32 }
 0x1a0   : > { %2376 = vmatpush2.bf16.msra.mxu0 %v5443_v39  ;;  %v5510_v38 = vcombine.high %v822_v33, %v826_v34  ;;  %v686_v39 = vld [vmem:[%s7340_s6 + $0x158] sm:$0xff]  ;;  %v5509_v44 = vcombine.low %v822_v33, %v826_v34 }
 0x1a1   : > { %2377 = vmatprep.subr.bf16.mxu0 %v5436_v41  ;;  %v814_v41 = vld [vmem:[%s7340_s6 + $0x558] sm:$0xff] }
 0x1a2   : > { %2417 = vmatpush2.bf16.msra.mxu1 %v5571_v40  ;;  %v690_v40 = vld [vmem:[%s7340_s6 + $0x178] sm:$0xff] }
 0x1a3   : > { %2418 = vmatprep.subr.bf16.mxu1 %v5564_v42  ;;  %v818_v42 = vld [vmem:[%s7340_s6 + $0x578] sm:$0xff]  ;;  %v5374_v45 = vcombine.high %v686_v39, %v690_v40  ;;  %v5373_v51 = vcombine.low %v686_v39, %v690_v40 }
 0x1a4   : > { %2378 = vmatpush2.bf16.msra.mxu0 %v5435_v47  ;;  %v5502_v46 = vcombine.high %v814_v41, %v818_v42  ;;  %v678_v47 = vld [vmem:[%s7340_s6 + $0x118] sm:$0xff]  ;;  %v5501_v52 = vcombine.low %v814_v41, %v818_v42 }
 0x1a5   : > { %2379 = vmatprep.subr.bf16.mxu0 %v5428_v49  ;;  %v806_v49 = vld [vmem:[%s7340_s6 + $0x518] sm:$0xff] }
 0x1a6   : > { %2419 = vmatpush2.bf16.msra.mxu1 %v5563_v48  ;;  %v682_v48 = vld [vmem:[%s7340_s6 + $0x138] sm:$0xff] }
 0x1a7   : > { %2420 = vmatprep.subr.bf16.mxu1 %v5556_v50  ;;  %v810_v50 = vld [vmem:[%s7340_s6 + $0x538] sm:$0xff]  ;;  %v5366_v53 = vcombine.high %v678_v47, %v682_v48 }
 0x1a8   : > { %2380 = vmatpush2.bf16.msra.mxu0 %v5427_v57  ;;  %v5494_v56 = vcombine.high %v806_v49, %v810_v50  ;;  %v670_v57 = vld [vmem:[%s7340_s6 + $0xd8] sm:$0xff] }
 0x1a9   : > { %2381 = vmatprep.subr.bf16.mxu0 %v5420_v61  ;;  %v798_v61 = vld [vmem:[%s7340_s6 + $0x4d8] sm:$0xff] }
 0x1aa   : > { %2421 = vmatpush2.bf16.msra.mxu1 %v5555_v58  ;;  %v674_v58 = vld [vmem:[%s7340_s6 + $0xf8] sm:$0xff] }
 0x1ab   : > { %2422 = vmatprep.subr.bf16.mxu1 %v5548_v62  ;;  %v5365_v62 = vcombine.low %v678_v47, %v682_v48  ;;  %v5358_v63 = vcombine.high %v670_v57, %v674_v58  ;;  %v646_v18 = vld [vmem:[%s7340_s6 + $0x18] sm:$0xff] }
 0x1ac   : > { %2382 = vmatpush2.bf16.msra.mxu0 %v5419_v3  ;;  %v790_v3 = vld [vmem:[%s7340_s6 + $0x498] sm:$0xff] }
 0x1ad   : > { %2383 = vmatprep.subr.bf16.mxu0 %v5412_v5  ;;  %v5357_v5 = vcombine.low %v670_v57, %v674_v58  ;;  %v650_v19 = vld [vmem:[%s7340_s6 + $0x38] sm:$0xff] }
 0x1ae   : > { %2423 = vmatpush2.bf16.msra.mxu1 %v5547_v4  ;;  %v794_v4 = vld [vmem:[%s7340_s6 + $0x4b8] sm:$0xff]  ;;  %v5334_v25 = vcombine.high %v646_v18, %v650_v19 }
 0x1af   : > { %2424 = vmatprep.subr.bf16.mxu1 %v5540_v6  ;;  %v5478_v8 = vcombine.high %v790_v3, %v794_v4  ;;  %v766_v26 = vld [vmem:[%s7340_s6 + $0x3d8] sm:$0xff] }
 0x1b0   : > { %2384 = vmatpush2.bf16.msra.mxu0 %v5411_v11  ;;  %v782_v11 = vld [vmem:[%s7340_s6 + $0x458] sm:$0xff] }
 0x1b1   : > { %2385 = vmatprep.subr.bf16.mxu0 %v5404_v13  ;;  %v5349_v13 = vcombine.low %v662_v1, %v666_v2  ;;  %v770_v27 = vld [vmem:[%s7340_s6 + $0x3f8] sm:$0xff] }
 0x1b2   : > { %2425 = vmatpush2.bf16.msra.mxu1 %v5539_v12  ;;  %v786_v12 = vld [vmem:[%s7340_s6 + $0x478] sm:$0xff]  ;;  %v5454_v31 = vcombine.high %v766_v26, %v770_v27 }
 0x1b3   : > { %2426 = vmatprep.subr.bf16.mxu1 %v5532_v14  ;;  %v5477_v14 = vcombine.low %v790_v3, %v794_v4  ;;  %v5470_v16 = vcombine.high %v782_v11, %v786_v12  ;;  %v758_v33 = vld [vmem:[%s7340_s6 + $0x398] sm:$0xff] }
 0x1b4   : > { %2386 = vmatpush2.bf16.msra.mxu0 %v5403_v21  ;;  %v774_v21 = vld [vmem:[%s7340_s6 + $0x418] sm:$0xff] }
 0x1b5   : > { %2387 = vmatprep.subr.bf16.mxu0 %v5396_v23  ;;  %v5341_v23 = vcombine.low %v654_v9, %v658_v10  ;;  %v762_v34 = vld [vmem:[%s7340_s6 + $0x3b8] sm:$0xff] }
 0x1b6   : > { %2427 = vmatpush2.bf16.msra.mxu1 %v5531_v22  ;;  %v778_v22 = vld [vmem:[%s7340_s6 + $0x438] sm:$0xff]  ;;  %v5446_v39 = vcombine.high %v758_v33, %v762_v34 }
 0x1b7   : > { %2428 = vmatprep.subr.bf16.mxu1 %v5524_v24  ;;  %v5469_v24 = vcombine.low %v782_v11, %v786_v12  ;;  %v5462_v54 = vcombine.high %v774_v21, %v778_v22  ;;  %v750_v41 = vld [vmem:[%s7340_s6 + $0x358] sm:$0xff] }
 0x1b8   : > { %2388 = vmatpush2.bf16.msra.mxu0 %v5395_v55  ;;  %v894_v55 = vld [vmem:[%s7340_s6 + $0x7d8] sm:$0xff] }
 0x1b9   : > { %2439 = vmatprep.subr.bf16.mxu0 %v5390_v29  ;;  %v5333_v29 = vcombine.low %v646_v18, %v650_v19  ;;  %v754_v42 = vld [vmem:[%s7340_s6 + $0x378] sm:$0xff] }
 0x1ba   : > { %2429 = vmatpush2.bf16.msra.mxu1 %v5523_v28  ;;  %v898_v28 = vld [vmem:[%s7340_s6 + $0x7f8] sm:$0xff]  ;;  %v5438_v47 = vcombine.high %v750_v41, %v754_v42 }
 0x1bb   : > { %2480 = vmatprep.subr.bf16.mxu1 %v5518_v30  ;;  %2390 = vmatmul.mubr.bf16.vlgmr.msra.gmra.mxu0 %v7460_v17  ;;  %v5461_v30 = vcombine.low %v774_v21, %v778_v22  ;;  %v5582_v32 = vcombine.high %v894_v55, %v898_v28  ;;  %v726_v3 = vld [vmem:[%s7340_s6 + $0x298] sm:$0xff] }
 0x1bc   : > { %2440 = vmatpush1.bf16.msra.mxu0 %v5389_v35  ;;  %2471 = vmatprep.mubr.bf16.mxu0 %v7410_v59  ;;  %v802_v59 = vld [vmem:[%s7340_s6 + $0x4f8] sm:$0xff] }
 0x1bd   : > { %2431 = vmatmul.mubr.bf16.vlgmr.msra.gmra.mxu1 %v7466_v20  ;;  %2441 = vmatprep.subr.bf16.mxu0 %v5382_v37  ;;  %v5486_v0 = vcombine.high %v798_v61, %v802_v59  ;;  %v5485_v6 = vcombine.low %v798_v61, %v802_v59  ;;  %v886_v35 = vld [vmem:[%s7340_s6 + $0x798] sm:$0xff]  ;;  %v5453_v37 = vcombine.low %v766_v26, %v770_v27 }
 0x1be   : > { %2481 = vmatpush1.bf16.msra.mxu1 %v5517_v36  ;;  %2512 = vmatprep.mubr.bf16.mxu1 %v7414_v60  ;;  %v5493_v60 = vcombine.low %v806_v49, %v810_v50  ;;  %v890_v36 = vld [vmem:[%s7340_s6 + $0x7b8] sm:$0xff] }
 0x1bf   : > { %2482 = vmatprep.subr.bf16.mxu1 %v5510_v38  ;;  %v5581_v38 = vcombine.low %v894_v55, %v898_v28  ;;  %v5574_v40 = vcombine.high %v886_v35, %v890_v36  ;;  %v742_v49 = vld [vmem:[%s7340_s6 + $0x318] sm:$0xff] }
 0x1c0   : > { %2442 = vmatpush1.bf16.msra.mxu0 %v5381_v43  ;;  %v878_v43 = vld [vmem:[%s7340_s6 + $0x758] sm:$0xff] }
 0x1c1   : > { %2443 = vmatprep.subr.bf16.mxu0 %v5374_v45  ;;  %v5445_v45 = vcombine.low %v758_v33, %v762_v34  ;;  %v746_v50 = vld [vmem:[%s7340_s6 + $0x338] sm:$0xff]  ;;  %v634_v34 = vld [vmem:[#allocation2] sm:$0xff] }
 0x1c2   : > { %2483 = vmatpush1.bf16.msra.mxu1 %v5509_v44  ;;  %v882_v44 = vld [vmem:[%s7340_s6 + $0x778] sm:$0xff]  ;;  %v5430_v57 = vcombine.high %v742_v49, %v746_v50 }
 0x1c3   : > { %2484 = vmatprep.subr.bf16.mxu1 %v5502_v46  ;;  %v5573_v46 = vcombine.low %v886_v35, %v890_v36  ;;  %v5566_v48 = vcombine.high %v878_v43, %v882_v44  ;;  %v734_v61 = vld [vmem:[%s7340_s6 + $0x2d8] sm:$0xff] }
 0x1c4   : > { %2444 = vmatpush1.bf16.msra.mxu0 %v5373_v51  ;;  %v870_v51 = vld [vmem:[%s7340_s6 + $0x718] sm:$0xff] }
 0x1c5   : > { %2445 = vmatprep.subr.bf16.mxu0 %v5366_v53  ;;  %v5437_v53 = vcombine.low %v750_v41, %v754_v42  ;;  %v738_v59 = vld [vmem:[%s7340_s6 + $0x2f8] sm:$0xff] }
 0x1c6   : > { %2485 = vmatpush1.bf16.msra.mxu1 %v5501_v52  ;;  %v874_v52 = vld [vmem:[%s7340_s6 + $0x738] sm:$0xff]  ;;  %v5422_v1 = vcombine.high %v734_v61, %v738_v59 }
 0x1c7   : > { %2486 = vmatprep.subr.bf16.mxu1 %v5494_v56  ;;  %v5565_v56 = vcombine.low %v878_v43, %v882_v44  ;;  %v5558_v58 = vcombine.high %v870_v51, %v874_v52  ;;  %v730_v4 = vld [vmem:[%s7340_s6 + $0x2b8] sm:$0xff] }
 0x1c8   : > { %2446 = vmatpush1.bf16.msra.mxu0 %v5365_v62  ;;  %v862_v62 = vld [vmem:[%s7340_s6 + $0x6d8] sm:$0xff]  ;;  %v5414_v9 = vcombine.high %v726_v3, %v730_v4 }
 0x1c9   : > { %2447 = vmatprep.subr.bf16.mxu0 %v5358_v63  ;;  %v5429_v63 = vcombine.low %v742_v49, %v746_v50  ;;  %v718_v11 = vld [vmem:[%s7340_s6 + $0x258] sm:$0xff] }
 0x1ca   : > { %2487 = vmatpush1.bf16.msra.mxu1 %v5493_v60  ;;  %v866_v60 = vld [vmem:[%s7340_s6 + $0x6f8] sm:$0xff] }
 0x1cb   : > { %2488 = vmatprep.subr.bf16.mxu1 %v5486_v0  ;;  %v5557_v0 = vcombine.low %v870_v51, %v874_v52  ;;  %v5550_v2 = vcombine.high %v862_v62, %v866_v60  ;;  %v722_v12 = vld [vmem:[%s7340_s6 + $0x278] sm:$0xff] }
 0x1cc   : > { %2448 = vmatpush1.bf16.msra.mxu0 %v5357_v5  ;;  %v854_v5 = vld [vmem:[%s7340_s6 + $0x698] sm:$0xff]  ;;  %v5406_v18 = vcombine.high %v718_v11, %v722_v12 }
 0x1cd   : > { %2449 = vmatprep.subr.bf16.mxu0 %v5350_v7  ;;  %v5421_v7 = vcombine.low %v734_v61, %v738_v59  ;;  %v710_v21 = vld [vmem:[%s7340_s6 + $0x218] sm:$0xff] }
 0x1ce   : > { %2489 = vmatpush1.bf16.msra.mxu1 %v5485_v6  ;;  %v858_v6 = vld [vmem:[%s7340_s6 + $0x6b8] sm:$0xff] }
 0x1cf   : > { %2490 = vmatprep.subr.bf16.mxu1 %v5478_v8  ;;  %v5549_v8 = vcombine.low %v862_v62, %v866_v60  ;;  %v5542_v10 = vcombine.high %v854_v5, %v858_v6  ;;  %v714_v22 = vld [vmem:[%s7340_s6 + $0x238] sm:$0xff]  ;;  %v638_v60 = vld [vmem:[#allocation2 + $0x20] sm:$0xff] }
 0x1d0   : > { %2450 = vmatpush1.bf16.msra.mxu0 %v5349_v13  ;;  %v846_v13 = vld [vmem:[%s7340_s6 + $0x658] sm:$0xff]  ;;  %v5398_v26 = vcombine.high %v710_v21, %v714_v22  ;;  %v5397_v55 = vcombine.low %v710_v21, %v714_v22 }
 0x1d1   : > { %2451 = vmatprep.subr.bf16.mxu0 %v5342_v15  ;;  %v5413_v15 = vcombine.low %v726_v3, %v730_v4  ;;  %v635_v44 = vld [vmem:[#allocation2 + $0x18] sm:$0xff] }
 0x1d2   : > { %2491 = vmatpush1.bf16.msra.mxu1 %v5477_v14  ;;  %v850_v14 = vld [vmem:[%s7340_s6 + $0x678] sm:$0xff] }
 0x1d3   : > { %2492 = vmatprep.subr.bf16.mxu1 %v5470_v16  ;;  %v5541_v16 = vcombine.low %v854_v5, %v858_v6  ;;  %v5534_v19 = vcombine.high %v846_v13, %v850_v14 }
 0x1d4   : > { %2452 = vmatpush1.bf16.msra.mxu0 %v5341_v23  ;;  %v838_v23 = vld [vmem:[%s7340_s6 + $0x618] sm:$0xff] }
 0x1d5   : > { %2453 = vmatprep.subr.bf16.mxu0 %v5334_v25  ;;  %v5405_v25 = vcombine.low %v718_v11, %v722_v12  ;;  %v640_v12 = vld [vmem:[#allocation2 + $0x38] sm:$0xff] }
 0x1d6   : > { %2493 = vmatpush1.bf16.msra.mxu1 %v5469_v24  ;;  %v842_v24 = vld [vmem:[%s7340_s6 + $0x638] sm:$0xff] }
 0x1d7   : > { %2494 = vmatprep.subr.bf16.mxu1 %v5462_v54  ;;  %v5533_v54 = vcombine.low %v846_v13, %v850_v14  ;;  %v5526_v27 = vcombine.high %v838_v23, %v842_v24  ;;  %v5525_v28 = vcombine.low %v838_v23, %v842_v24 }
 0x1d8   : > { %2454 = vmatpush1.bf16.msra.mxu0 %v5333_v29 }
 0x1d9   : > { %2455 = vmatprep.subr.bf16.mxu0 %v5454_v31 }
 0x1da   : > { %2495 = vmatpush1.bf16.msra.mxu1 %v5461_v30  ;;  %v633_v30 = vld [vmem:[#allocation2 + $0x30] sm:$0xff] }
 0x1db   : > { %2496 = vmatprep.subr.bf16.mxu1 %v5582_v32 }
 0x1dc   : > { %2456 = vmatpush2.bf16.msra.mxu0 %v5453_v37 }
 0x1dd   : > { %2457 = vmatprep.subr.bf16.mxu0 %v5446_v39 }
 0x1de   : > { %2497 = vmatpush2.bf16.msra.mxu1 %v5581_v38 }
 0x1df   : > { %2498 = vmatprep.subr.bf16.mxu1 %v5574_v40 }
 0x1e0   : > { %2458 = vmatpush2.bf16.msra.mxu0 %v5445_v45 }
 0x1e1   : > { %2459 = vmatprep.subr.bf16.mxu0 %v5438_v47  ;;  %v636_v47 = vld [vmem:[#allocation2 + $0x10] sm:$0xff] }
 0x1e2   : > { %2499 = vmatpush2.bf16.msra.mxu1 %v5573_v46 }
 0x1e3   : > { %2500 = vmatprep.subr.bf16.mxu1 %v5566_v48 }
 0x1e4   : > { %2460 = vmatpush2.bf16.msra.mxu0 %v5437_v53 }
 0x1e5   : > { %2461 = vmatprep.subr.bf16.mxu0 %v5430_v57 }
 0x1e6   : > { %2501 = vmatpush2.bf16.msra.mxu1 %v5565_v56 }
 0x1e7   : > { %2502 = vmatprep.subr.bf16.mxu1 %v5558_v58  ;;  %v637_v58 = vld [vmem:[#allocation2 + $0x8] sm:$0xff] }
 0x1e8   : > { %2462 = vmatpush2.bf16.msra.mxu0 %v5429_v63 }
 0x1e9   : > { %2463 = vmatprep.subr.bf16.mxu0 %v5422_v1 }
 0x1ea   : > { %2503 = vmatpush2.bf16.msra.mxu1 %v5557_v0 }
 0x1eb   : > { %2504 = vmatprep.subr.bf16.mxu1 %v5550_v2 }
 0x1ec   : > { %2464 = vmatpush2.bf16.msra.mxu0 %v5421_v7 }
 0x1ed   : > { %2465 = vmatprep.subr.bf16.mxu0 %v5414_v9 }
 0x1ee   : > { %2505 = vmatpush2.bf16.msra.mxu1 %v5549_v8  ;;  %v639_v8 = vld [vmem:[#allocation2 + $0x28] sm:$0xff] }
 0x1ef   : > { %2506 = vmatprep.subr.bf16.mxu1 %v5542_v10 }
 0x1f0   : > { %2466 = vmatpush2.bf16.msra.mxu0 %v5413_v15 }
 0x1f1   : > { %2467 = vmatprep.subr.bf16.mxu0 %v5406_v18 }
 0x1f2   : > { %2507 = vmatpush2.bf16.msra.mxu1 %v5541_v16 }
 0x1f3   : > { %2508 = vmatprep.subr.bf16.mxu1 %v5534_v19 }
 0x1f4   : > { %2468 = vmatpush2.bf16.msra.mxu0 %v5405_v25 }
 0x1f5   : > { %2469 = vmatprep.subr.bf16.mxu0 %v5398_v26 }
 0x1f6   : > { %2509 = vmatpush2.bf16.msra.mxu1 %v5533_v54 }
 0x1f7   : > { %2510 = vmatprep.subr.bf16.mxu1 %v5526_v27 }
 0x1f8   : > { %2470 = vmatpush2.bf16.msra.mxu0 %v5397_v55 }
 0x1fa   : > { %2511 = vmatpush2.bf16.msra.mxu1 %v5525_v28 }
 0x1fb   : > { %v2227_v29 = vpop.f32.mrf.mxu0  ;;  %2472 = vmatmul.mubr.bf16.vlgmr.msra.gmra.mxu0 %v7460_v17 }
 0x1fd   : > { %v2268_v31 = vpop.f32.mrf.mxu1  ;;  %2513 = vmatmul.mubr.bf16.vlgmr.msra.gmra.mxu1 %v7466_v20  ;;  %v2229_v33 = vpop.f32.mrf.mxu0 }
 0x1fe   : > { %v2269_v32 = vadd.f32 %v2268_v31, %v2227_v29 }
 0x1ff   : > { %v2270_v35 = vpop.f32.mrf.mxu1  ;;  %v2231_v38 = vpop.f32.mrf.mxu0 }
 0x200   : > { %v2521_v36 = vadd.f32 %v2269_v32, %v633_v30  ;;  %v2271_v37 = vadd.f32 %v2270_v35, %v2229_v33 }
 0x201   : > { %v2272_v39 = vpop.f32.mrf.mxu1  ;;  %v2232_v41 = vpop.f32.mrf.mxu0 }
 0x202   : > { %2529 = vst [vmem:[#allocation2 + $0x30] sm:$0xff] %v2521_v36  ;;  %v2522_v40 = vadd.f32 %v2271_v37, %v634_v34 }
 0x203   : > { %v2273_v42 = vpop.f32.mrf.mxu1 }
 0x204   : > { %2530 = vst [vmem:[#allocation2] sm:$0xff] %v2522_v40 }
 0x23b   : > { %v2309_v43 = vpop.f32.mrf.mxu0 }
 0x23d   : > { %v2350_v17 = vpop.f32.mrf.mxu1  ;;  %v2311_v46 = vpop.f32.mrf.mxu0 }
 0x23e   : > { %v2351_v45 = vadd.f32 %v2350_v17, %v2309_v43 }
 0x23f   : > { %v2352_v20 = vpop.f32.mrf.mxu1  ;;  %v2313_v50 = vpop.f32.mrf.mxu0 }
 0x240   : > { %v2523_v48 = vadd.f32 %v2351_v45, %v635_v44  ;;  %v2353_v49 = vadd.f32 %v2352_v20, %v2311_v46 }
 0x241   : > { %v2354_v51 = vpop.f32.mrf.mxu1  ;;  %v2314_v53 = vpop.f32.mrf.mxu0 }
 0x242   : > { %2531 = vst [vmem:[#allocation2 + $0x18] sm:$0xff] %v2523_v48  ;;  %v2524_v52 = vadd.f32 %v2353_v49, %v636_v47 }
 0x243   : > { %v2355_v56 = vpop.f32.mrf.mxu1 }
 0x244   : > { %2532 = vst [vmem:[#allocation2 + $0x10] sm:$0xff] %v2524_v52 }
 0x27b   : > { %v2391_v57 = vpop.f32.mrf.mxu0 }
 0x27d   : > { %v2432_v61 = vpop.f32.mrf.mxu1  ;;  %v2393_v62 = vpop.f32.mrf.mxu0 }
 0x27e   : > { %v2433_v59 = vadd.f32 %v2432_v61, %v2391_v57 }
 0x27f   : > { %v2434_v63 = vpop.f32.mrf.mxu1  ;;  %v2395_v2 = vpop.f32.mrf.mxu0 }
 0x280   : > { %v2525_v0 = vadd.f32 %v2433_v59, %v637_v58  ;;  %v2435_v1 = vadd.f32 %v2434_v63, %v2393_v62 }
 0x281   : > { %v2436_v3 = vpop.f32.mrf.mxu1  ;;  %v2396_v5 = vpop.f32.mrf.mxu0 }
 0x282   : > { %2533 = vst [vmem:[#allocation2 + $0x8] sm:$0xff] %v2525_v0  ;;  %v2526_v4 = vadd.f32 %v2435_v1, %v638_v60 }
 0x283   : > { %v2437_v6 = vpop.f32.mrf.mxu1 }
 0x284   : > { %2534 = vst [vmem:[#allocation2 + $0x20] sm:$0xff] %v2526_v4 }
 0x2bb   : > { %v2473_v7 = vpop.f32.mrf.mxu0 }
 0x2bd   : > { %v2514_v9 = vpop.f32.mrf.mxu1  ;;  %v2475_v11 = vpop.f32.mrf.mxu0 }
 0x2be   : > { %v2515_v10 = vadd.f32 %v2514_v9, %v2473_v7 }
 0x2bf   : > { %v2516_v13 = vpop.f32.mrf.mxu1  ;;  %v2477_v16 = vpop.f32.mrf.mxu0 }
 0x2c0   : > { %v2527_v14 = vadd.f32 %v2515_v10, %v639_v8  ;;  %v2517_v15 = vadd.f32 %v2516_v13, %v2475_v11  ;;  %2540 = sbr.rel (%p5583_p0) target bundleno = 1918 (0x77e), region = 124 }
 0x2c1   : > { %v2518_v18 = vpop.f32.mrf.mxu1  ;;  %v2478_v21 = vpop.f32.mrf.mxu0 }
 0x2c2   : > { %2535 = vst [vmem:[#allocation2 + $0x28] sm:$0xff] %v2527_v14  ;;  %v2528_v19 = vadd.f32 %v2517_v15, %v640_v12 }
 0x2c3   : > { %v2519_v22 = vpop.f32.mrf.mxu1 }
 0x2c4   : > { %2536 = vst [vmem:[#allocation2 + $0x38] sm:$0xff] %v2528_v19 }
 0x2c5   : > { %v6138_v23 = vld [vmem:[#allocation11 + $0x74] ss:$8 sps:$4 sm:$0xff]   ;;  %v6142_v25 = vld [vmem:[#allocation11 + $0x70] ss:$8 sps:$4 sm:$0xff]   ;;  %v6144_v26 = vld [vmem:[#allocation11 + $0x64] ss:$8 sps:$4 sm:$0xff]   ;;  %v2551_v58 = vlaneseq }
 0x2c6   : > { %v6140_v24 = vld [vmem:[#allocation11 + $0x174] ss:$8 sps:$4 sm:$0xff]   ;;  %3395 = vmatprep.subr.bf16.mxu0 %v6138_v23  ;;  %v6143_v54 = vld [vmem:[#allocation11 + $0x170] ss:$8 sps:$4 sm:$0xff]   ;;  %v6146_v27 = vld [vmem:[#allocation11 + $0x164] ss:$8 sps:$4 sm:$0xff]  }
 0x2c7   : > { %3436 = vmatprep.subr.bf16.mxu1 %v6140_v24  ;;  %3396 = vmatpush1.bf16.msra.mxu0 %v6142_v25  ;;  %v6148_v55 = vld [vmem:[#allocation11 + $0x60] ss:$8 sps:$4 sm:$0xff]   ;;  %v6150_v29 = vld [vmem:[#allocation11 + $0x54] ss:$8 sps:$4 sm:$0xff]   ;;  %v6154_v31 = vld [vmem:[#allocation11 + $0x50] ss:$8 sps:$4 sm:$0xff]  }
 0x2c8   : > { %3437 = vmatpush1.bf16.msra.mxu1 %v6143_v54  ;;  %3397 = vmatprep.subr.bf16.mxu0 %v6144_v26  ;;  %v6149_v28 = vld [vmem:[#allocation11 + $0x160] ss:$8 sps:$4 sm:$0xff]   ;;  %v6152_v30 = vld [vmem:[#allocation11 + $0x154] ss:$8 sps:$4 sm:$0xff]   ;;  %v6155_v32 = vld [vmem:[#allocation11 + $0x150] ss:$8 sps:$4 sm:$0xff]  }
 0x2c9   : > { %3438 = vmatprep.subr.bf16.mxu1 %v6146_v27  ;;  %v6156_v33 = vld [vmem:[#allocation11 + $0x44] ss:$8 sps:$4 sm:$0xff]   ;;  %v6160_v35 = vld [vmem:[#allocation11 + $0x40] ss:$8 sps:$4 sm:$0xff]   ;;  %v6162_v37 = vld [vmem:[#allocation11 + $0x34] ss:$8 sps:$4 sm:$0xff]  }
 0x2ca   : > { %v6158_v34 = vld [vmem:[#allocation11 + $0x144] ss:$8 sps:$4 sm:$0xff]   ;;  %v6161_v36 = vld [vmem:[#allocation11 + $0x140] ss:$8 sps:$4 sm:$0xff]   ;;  %v6164_v38 = vld [vmem:[#allocation11 + $0x134] ss:$8 sps:$4 sm:$0xff]  }
 0x2cb   : > { %3398 = vmatpush1.bf16.msra.mxu0 %v6148_v55  ;;  %v6166_v39 = vld [vmem:[#allocation11 + $0x30] ss:$8 sps:$4 sm:$0xff]   ;;  %v6168_v41 = vld [vmem:[#allocation11 + $0x24] ss:$8 sps:$4 sm:$0xff]   ;;  %v6172_v43 = vld [vmem:[#allocation11 + $0x20] ss:$8 sps:$4 sm:$0xff]  }
 0x2cc   : > { %3439 = vmatpush1.bf16.msra.mxu1 %v6149_v28  ;;  %3399 = vmatprep.subr.bf16.mxu0 %v6150_v29  ;;  %v6167_v40 = vld [vmem:[#allocation11 + $0x130] ss:$8 sps:$4 sm:$0xff]   ;;  %v6170_v42 = vld [vmem:[#allocation11 + $0x124] ss:$8 sps:$4 sm:$0xff]   ;;  %v6173_v44 = vld [vmem:[#allocation11 + $0x120] ss:$8 sps:$4 sm:$0xff]  }
 0x2cd   : > { %3440 = vmatprep.subr.bf16.mxu1 %v6152_v30  ;;  %v6174_v17 = vld [vmem:[#allocation11 + $0x14] ss:$8 sps:$4 sm:$0xff]   ;;  %v6178_v46 = vld [vmem:[#allocation11 + $0x10] ss:$8 sps:$4 sm:$0xff]   ;;  %v6180_v20 = vld [vmem:[#allocation11 + $0x4] ss:$8 sps:$4 sm:$0xff]  }
 0x2ce   : > { %v6176_v45 = vld [vmem:[#allocation11 + $0x114] ss:$8 sps:$4 sm:$0xff]   ;;  %v6179_v47 = vld [vmem:[#allocation11 + $0x110] ss:$8 sps:$4 sm:$0xff]   ;;  %v6182_v48 = vld [vmem:[#allocation11 + $0x104] ss:$8 sps:$4 sm:$0xff]  }
 0x2cf   : > { %3400 = vmatpush1.bf16.msra.mxu0 %v6154_v31  ;;  %v6184_v49 = vld [vmem:[#allocation11] ss:$8 sps:$4 sm:$0xff]   ;;  %v6186_v51 = vld [vmem:[#allocation11 + $0xf4] ss:$8 sps:$4 sm:$0xff]   ;;  %v6190_v53 = vld [vmem:[#allocation11 + $0xf0] ss:$8 sps:$4 sm:$0xff]  }
 0x2d0   : > { %3441 = vmatpush1.bf16.msra.mxu1 %v6155_v32  ;;  %3401 = vmatprep.subr.bf16.mxu0 %v6156_v33  ;;  %v6185_v50 = vld [vmem:[#allocation11 + $0x100] ss:$8 sps:$4 sm:$0xff]   ;;  %v6188_v52 = vld [vmem:[#allocation11 + $0x1f4] ss:$8 sps:$4 sm:$0xff]   ;;  %v6191_v56 = vld [vmem:[#allocation11 + $0x1f0] ss:$8 sps:$4 sm:$0xff]  }
 0x2d1   : > { %3442 = vmatprep.subr.bf16.mxu1 %v6158_v34  ;;  %v6192_v57 = vld [vmem:[#allocation11 + $0xe4] ss:$8 sps:$4 sm:$0xff]   ;;  %v6196_v59 = vld [vmem:[#allocation11 + $0xe0] ss:$8 sps:$4 sm:$0xff]   ;;  %v6198_v60 = vld [vmem:[#allocation11 + $0xd4] ss:$8 sps:$4 sm:$0xff]  }
 0x2d2   : > { %v6194_v61 = vld [vmem:[#allocation11 + $0x1e4] ss:$8 sps:$4 sm:$0xff]   ;;  %v6197_v62 = vld [vmem:[#allocation11 + $0x1e0] ss:$8 sps:$4 sm:$0xff]   ;;  %v7667_v63 = vshrl.u32 %v2551_v58, 7  ;;  %v2542_v9 = vld [vmem:[#allocation2] sm:$0xff] }
 0x2d3   : > { %3402 = vmatpush1.bf16.msra.mxu0 %v6160_v35  ;;  %v6200_v0 = vld [vmem:[#allocation11 + $0x1d4] ss:$8 sps:$4 sm:$0xff]   ;;  %v6202_v1 = vld [vmem:[#allocation11 + $0xd0] ss:$8 sps:$4 sm:$0xff]   ;;  %v6204_v3 = vld [vmem:[#allocation11 + $0xc4] ss:$8 sps:$4 sm:$0xff]  }
 0x2d4   : > { %3443 = vmatpush1.bf16.msra.mxu1 %v6161_v36  ;;  %3403 = vmatprep.subr.bf16.mxu0 %v6162_v37  ;;  %v6203_v2 = vld [vmem:[#allocation11 + $0x1d0] ss:$8 sps:$4 sm:$0xff]   ;;  %v7670_v4 = vsub.s32 1, %v7667_v63  ;;  %v2565_v5 = vsub.s32 3, %v7667_v63  ;;  %v6206_v6 = vld [vmem:[#allocation11 + $0x1c4] ss:$8 sps:$4 sm:$0xff]  }
 0x2d5   : > { %3444 = vmatprep.subr.bf16.mxu1 %v6164_v38  ;;  %v6208_v7 = vld [vmem:[#allocation11 + $0xc0] ss:$8 sps:$4 sm:$0xff]   ;;  %v2569_v8 = vsub.s32 4, %v7667_v63  ;;  %v7674_v10 = vld [vmem:[#allocation9] sm:$0xff]  ;;  %v2577_v12 = vsub.s32 6, %v7667_v63  ;;  %v7686_v24 = vsub.s32 0, %v7667_v63 }
 0x2d6   : > { %v2544_v11 = vld [vmem:[#allocation2 + $0x10] sm:$0xff]  ;;  %v2558_v14 = vrot.slane %v7674_v10, %v7670_v4  ;;  %v2566_v15 = vrot.slane %v7674_v10, %v2565_v5  ;;  %v6210_v16 = vld [vmem:[#allocation11 + $0xb4] ss:$8 sps:$4 sm:$0xff]   ;;  %v6214_v23 = vld [vmem:[#allocation11 + $0xb0] ss:$8 sps:$4 sm:$0xff]   ;;  %v2561_v25 = vsub.s32 2, %v7667_v63 }
 0x2d7   : > { %3404 = vmatpush1.bf16.msra.mxu0 %v6166_v39  ;;  %v6209_v13 = vld [vmem:[#allocation11 + $0x1c0] ss:$8 sps:$4 sm:$0xff]   ;;  %v6212_v18 = vld [vmem:[#allocation11 + $0x1b4] ss:$8 sps:$4 sm:$0xff]   ;;  %v7683_v22 = vrot.slane %v7674_v10, %v2569_v8  ;;  %v7690_v54 = vrot.slane %v7674_v10, %v2577_v12  ;;  %v6215_v26 = vld [vmem:[#allocation11 + $0x1b0] ss:$8 sps:$4 sm:$0xff]   ;;  %v2554_v34 = vrot.slane %v7674_v10, %v7686_v24 }
 0x2d8   : > { %3445 = vmatpush1.bf16.msra.mxu1 %v6167_v40  ;;  %3405 = vmatprep.subr.bf16.mxu0 %v6168_v41  ;;  %v2592_v19 = vadd.f32 %v2558_v14, %v2542_v9  ;;  %v2594_v21 = vadd.f32 %v2566_v15, %v2544_v11  ;;  %v6216_v28 = vld [vmem:[#allocation11 + $0xa4] ss:$8 sps:$4 sm:$0xff]   ;;  %v6220_v30 = vld [vmem:[#allocation11 + $0xa0] ss:$8 sps:$4 sm:$0xff]   ;;  %v2562_v35 = vrot.slane %v7674_v10, %v2561_v25  ;;  %v2543_v37 = vld [vmem:[#allocation2 + $0x18] sm:$0xff]  ;;  %v2573_v9 = vsub.s32 5, %v7667_v63 }
 0x2d9   : > { %3446 = vmatprep.subr.bf16.mxu1 %v6170_v42  ;;  %v6218_v29 = vld [vmem:[#allocation11 + $0x1a4] ss:$8 sps:$4 sm:$0xff]   ;;  %v6221_v33 = vld [vmem:[#allocation11 + $0x1a0] ss:$8 sps:$4 sm:$0xff]   ;;  %v6222_v38 = vld [vmem:[#allocation11 + $0x94] ss:$8 sps:$4 sm:$0xff]  }
 0x2da   : > { %v2600_v27 = vmax.f32 %v2592_v19, 0.0  ;;  %v2602_v55 = vmax.f32 %v2594_v21, 0.0  ;;  %v2541_v36 = vld [vmem:[#allocation2 + $0x30] sm:$0xff]  ;;  %v6224_v39 = vld [vmem:[#allocation11 + $0x194] ss:$8 sps:$4 sm:$0xff]   ;;  %v2593_v41 = vadd.f32 %v2562_v35, %v2543_v37  ;;  %v2574_v19 = vrot.slane %v7674_v10, %v2573_v9 }
 0x2db   : > { %3406 = vmatpush1.bf16.msra.mxu0 %v6172_v43  ;;  %v2591_v40 = vadd.f32 %v2554_v34, %v2541_v36  ;;  %v6226_v42 = vld [vmem:[#allocation11 + $0x90] ss:$8 sps:$4 sm:$0xff]   ;;  %v6240_v58 = vld [vmem:[#allocation11 + $0x260] ss:$8 sps:$4 sm:$0xff]   ;;  %v6263_v8 = vld [vmem:[#allocation11 + $0x334] ss:$8 sps:$4 sm:$0xff]  }
 0x2dc   : > { %3447 = vmatpush1.bf16.msra.mxu1 %v6173_v44  ;;  %3407 = vmatprep.subr.bf16.mxu0 %v6174_v17  ;;  %v2608_v31 = vpack.c.bf16 %v2600_v27, %v2600_v27  ;;  %v2610_v32 = vpack.c.bf16 %v2602_v55, %v2602_v55  ;;  %v6227_v43 = vld [vmem:[#allocation11 + $0x190] ss:$8 sps:$4 sm:$0xff]   ;;  %v6228_v44 = vld [vmem:[#allocation11 + $0x84] ss:$8 sps:$4 sm:$0xff]   ;;  %v6276_v34 = vld [vmem:[#allocation11 + $0x200] ss:$8 sps:$4 sm:$0xff]  }
 0x2dd   : > { %3448 = vmatprep.subr.bf16.mxu1 %v6176_v45  ;;  %v6230_v17 = vld [vmem:[#allocation11 + $0x184] ss:$8 sps:$4 sm:$0xff]   ;;  %v2599_v45 = vmax.f32 %v2591_v40, 0.0  ;;  %v6258_v11 = vld [vmem:[#allocation11 + $0x230] ss:$8 sps:$4 sm:$0xff]  }
 0x2de   : > { %3427 = vmatprep.mubr.bf16.mxu0 %v2608_v31  ;;  %3468 = vmatprep.mubr.bf16.mxu1 %v2610_v32  ;;  %v6261_v12 = vld [vmem:[#allocation11 + $0x330] ss:$8 sps:$4 sm:$0xff]   ;;  %v6266_v14 = vld [vmem:[#allocation11 + $0x224] ss:$8 sps:$4 sm:$0xff]   ;;  %v6279_v35 = vld [vmem:[#allocation11 + $0x300] ss:$8 sps:$4 sm:$0xff]  }
 0x2df   : > { %3408 = vmatpush1.bf16.msra.mxu0 %v6178_v46  ;;  %v2601_v46 = vmax.f32 %v2593_v41, 0.0  ;;  %v6269_v15 = vld [vmem:[#allocation11 + $0x324] ss:$8 sps:$4 sm:$0xff]   ;;  %v6270_v27 = vld [vmem:[#allocation11 + $0x210] ss:$8 sps:$4 sm:$0xff]  }
 0x2e0   : > { %3449 = vmatpush1.bf16.msra.mxu1 %v6179_v47  ;;  %3409 = vmatprep.subr.bf16.mxu0 %v6180_v20  ;;  %v6232_v47 = vld [vmem:[#allocation11 + $0x80] ss:$8 sps:$4 sm:$0xff]   ;;  %v2546_v55 = vld [vmem:[#allocation2 + $0x20] sm:$0xff]  ;;  %v6281_v31 = vld [vmem:[#allocation11 + $0x304] ss:$8 sps:$4 sm:$0xff]  }
 0x2e1   : > { %3450 = vmatprep.subr.bf16.mxu1 %v6182_v48  ;;  %v6233_v20 = vld [vmem:[#allocation11 + $0x180] ss:$8 sps:$4 sm:$0xff]   ;;  %v6236_v48 = vld [vmem:[#allocation11 + $0x274] ss:$8 sps:$4 sm:$0xff]   ;;  %v2596_v32 = vadd.f32 %v2574_v19, %v2546_v55  ;;  %v6282_v41 = vld [vmem:[#allocation11 + $0x2f0] ss:$8 sps:$4 sm:$0xff]  }
 0x2e2   : > { %v6284_v37 = vld [vmem:[#allocation11 + $0x2f4] ss:$8 sps:$4 sm:$0xff]   ;;  %v6329_v9 = vld [vmem:[#allocation11 + $0x384] ss:$8 sps:$4 sm:$0xff]  }
 0x2e3   : > { %3410 = vmatpush1.bf16.msra.mxu0 %v6184_v49  ;;  %v6239_v49 = vld [vmem:[#allocation11 + $0x374] ss:$8 sps:$4 sm:$0xff]   ;;  %v2604_v36 = vmax.f32 %v2596_v32, 0.0  ;;  %v6336_v55 = vld [vmem:[#allocation14 + $0x60] sm:$0xff]  }
 0x2e4   : > { %3451 = vmatpush1.bf16.msra.mxu1 %v6185_v50  ;;  %3411 = vmatprep.subr.bf16.mxu0 %v6186_v51  ;;  %v2607_v50 = vpack.c.bf16 %v2599_v45, %v2599_v45  ;;  %v2609_v51 = vpack.c.bf16 %v2601_v46, %v2601_v46  ;;  %v6291_v45 = vld [vmem:[#allocation11 + $0x3e0] ss:$8 sps:$4 sm:$0xff]   ;;  %v6296_v46 = vld [vmem:[#allocation11 + $0x2d4] ss:$8 sps:$4 sm:$0xff]  }
 0x2e5   : > { %3452 = vmatprep.subr.bf16.mxu1 %v6188_v52  ;;  %v6234_v52 = vld [vmem:[#allocation11 + $0x270] ss:$8 sps:$4 sm:$0xff]  }
 0x2e6   : > { %v6341_v32 = vld [vmem:[#allocation14 + $0x10] sm:$0xff]  }
 0x2e7   : > { %3412 = vmatpush2.bf16.msra.mxu0 %v6190_v53  ;;  %v6237_v53 = vld [vmem:[#allocation11 + $0x370] ss:$8 sps:$4 sm:$0xff]  }
 0x2e8   : > { %3453 = vmatpush2.bf16.msra.mxu1 %v6191_v56  ;;  %3413 = vmatprep.subr.bf16.mxu0 %v6192_v57  ;;  %v6242_v56 = vld [vmem:[#allocation11 + $0x264] ss:$8 sps:$4 sm:$0xff]  }
 0x2e9   : > { %3454 = vmatprep.subr.bf16.mxu1 %v6194_v61  ;;  %v6245_v57 = vld [vmem:[#allocation11 + $0x364] ss:$8 sps:$4 sm:$0xff]   ;;  %v6243_v61 = vld [vmem:[#allocation11 + $0x360] ss:$8 sps:$4 sm:$0xff]  }
 0x2eb   : > { %3414 = vmatpush2.bf16.msra.mxu0 %v6196_v59  ;;  %v6248_v59 = vld [vmem:[#allocation11 + $0x254] ss:$8 sps:$4 sm:$0xff]  }
 0x2ec   : > { %3455 = vmatpush2.bf16.msra.mxu1 %v6197_v62  ;;  %3415 = vmatprep.subr.bf16.mxu0 %v6198_v60  ;;  %v6251_v62 = vld [vmem:[#allocation11 + $0x354] ss:$8 sps:$4 sm:$0xff]   ;;  %v6246_v60 = vld [vmem:[#allocation11 + $0x250] ss:$8 sps:$4 sm:$0xff]  }
 0x2ed   : > { %3456 = vmatprep.subr.bf16.mxu1 %v6200_v0  ;;  %v6249_v0 = vld [vmem:[#allocation11 + $0x350] ss:$8 sps:$4 sm:$0xff]  }
 0x2ef   : > { %3416 = vmatpush2.bf16.msra.mxu0 %v6202_v1  ;;  %v6254_v1 = vld [vmem:[#allocation11 + $0x244] ss:$8 sps:$4 sm:$0xff]  }
 0x2f0   : > { %3457 = vmatpush2.bf16.msra.mxu1 %v6203_v2  ;;  %3417 = vmatprep.subr.bf16.mxu0 %v6204_v3  ;;  %v6257_v2 = vld [vmem:[#allocation11 + $0x344] ss:$8 sps:$4 sm:$0xff]   ;;  %v6252_v3 = vld [vmem:[#allocation11 + $0x240] ss:$8 sps:$4 sm:$0xff]  }
 0x2f1   : > { %3458 = vmatprep.subr.bf16.mxu1 %v6206_v6  ;;  %v6255_v6 = vld [vmem:[#allocation11 + $0x340] ss:$8 sps:$4 sm:$0xff]  }
 0x2f3   : > { %3418 = vmatpush2.bf16.msra.mxu0 %v6208_v7  ;;  %v6260_v7 = vld [vmem:[#allocation11 + $0x234] ss:$8 sps:$4 sm:$0xff]  }
 0x2f4   : > { %3459 = vmatpush2.bf16.msra.mxu1 %v6209_v13  ;;  %3419 = vmatprep.subr.bf16.mxu0 %v6210_v16  ;;  %v2581_v13 = vsub.s32 7, %v7667_v63  ;;  %v6264_v16 = vld [vmem:[#allocation11 + $0x220] ss:$8 sps:$4 sm:$0xff]  }
 0x2f5   : > { %3460 = vmatprep.subr.bf16.mxu1 %v6212_v18  ;;  %v6267_v18 = vld [vmem:[#allocation11 + $0x320] ss:$8 sps:$4 sm:$0xff]  }
 0x2f6   : > { %v2582_v21 = vrot.slane %v7674_v10, %v2581_v13  ;;  %v6324_v13 = vld [vmem:[#allocation11 + $0x280] ss:$8 sps:$4 sm:$0xff]  }
 0x2f7   : > { %3420 = vmatpush2.bf16.msra.mxu0 %v6214_v23  ;;  %v6272_v23 = vld [vmem:[#allocation11 + $0x214] ss:$8 sps:$4 sm:$0xff]  }
 0x2f8   : > { %3461 = vmatpush2.bf16.msra.mxu1 %v6215_v26  ;;  %3421 = vmatprep.subr.bf16.mxu0 %v6216_v28  ;;  %v6275_v26 = vld [vmem:[#allocation11 + $0x314] ss:$8 sps:$4 sm:$0xff]  }
 0x2f9   : > { %3462 = vmatprep.subr.bf16.mxu1 %v6218_v29  ;;  %v2548_v28 = vld [vmem:[#allocation2 + $0x38] sm:$0xff] }
 0x2fa   : > { %v6273_v29 = vld [vmem:[#allocation11 + $0x310] ss:$8 sps:$4 sm:$0xff]  }
 0x2fb   : > { %3422 = vmatpush2.bf16.msra.mxu0 %v6220_v30  ;;  %v6278_v30 = vld [vmem:[#allocation11 + $0x204] ss:$8 sps:$4 sm:$0xff]  }
 0x2fc   : > { %3463 = vmatpush2.bf16.msra.mxu1 %v6221_v33  ;;  %3423 = vmatprep.subr.bf16.mxu0 %v6222_v38  ;;  %v2598_v33 = vadd.f32 %v2582_v21, %v2548_v28  ;;  %v6287_v38 = vld [vmem:[#allocation11 + $0x3f4] ss:$8 sps:$4 sm:$0xff]   ;;  %v6337_v28 = vld [vmem:[#allocation14 + $0x20] sm:$0xff]  }
 0x2fd   : > { %3464 = vmatprep.subr.bf16.mxu1 %v6224_v39  ;;  %v2612_v39 = vpack.c.bf16 %v2604_v36, %v2604_v36  ;;  %v6332_v21 = vld [vmem:[#allocation14 + $0x70] sm:$0xff]   ;;  %v6345_v36 = vld [vmem:[#allocation14] sm:$0xff]  }
 0x2fe   : > { %v2606_v10 = vmax.f32 %v2598_v33, 0.0  ;;  %v6342_v33 = vld [vmem:[#allocation14 + $0x48] sm:$0xff]  }
 0x2ff   : > { %3424 = vmatpush2.bf16.msra.mxu0 %v6226_v42  ;;  %v6285_v42 = vld [vmem:[#allocation11 + $0x3f0] ss:$8 sps:$4 sm:$0xff]  }
 0x300   : > { %3465 = vmatpush2.bf16.msra.mxu1 %v6227_v43  ;;  %3425 = vmatprep.subr.bf16.mxu0 %v6228_v44  ;;  %v2614_v40 = vpack.c.bf16 %v2606_v10, %v2606_v10  ;;  %v6290_v43 = vld [vmem:[#allocation11 + $0x2e4] ss:$8 sps:$4 sm:$0xff]  }
 0x301   : > { %3466 = vmatprep.subr.bf16.mxu1 %v6230_v17  ;;  %v6293_v44 = vld [vmem:[#allocation11 + $0x3e4] ss:$8 sps:$4 sm:$0xff]   ;;  %v6288_v17 = vld [vmem:[#allocation11 + $0x2e0] ss:$8 sps:$4 sm:$0xff]  }
 0x303   : > { %3426 = vmatpush2.bf16.msra.mxu0 %v6232_v47  ;;  %v6299_v47 = vld [vmem:[#allocation11 + $0x3d4] ss:$8 sps:$4 sm:$0xff]  }
 0x304   : > { %3467 = vmatpush2.bf16.msra.mxu1 %v6233_v20  ;;  %3477 = vmatprep.subr.bf16.mxu0 %v6236_v48  ;;  %v6294_v20 = vld [vmem:[#allocation11 + $0x2d0] ss:$8 sps:$4 sm:$0xff]  }
 0x305   : > { %3518 = vmatprep.subr.bf16.mxu1 %v6239_v49  ;;  %v6297_v48 = vld [vmem:[#allocation11 + $0x3d0] ss:$8 sps:$4 sm:$0xff]   ;;  %v6302_v49 = vld [vmem:[#allocation11 + $0x2c4] ss:$8 sps:$4 sm:$0xff]  }
 0x306   : > { %3428 = vmatmul.mubr.bf16.vlgmr.msra.gmra.mxu0 %v2607_v50  ;;  %v6305_v50 = vld [vmem:[#allocation11 + $0x3c4] ss:$8 sps:$4 sm:$0xff]  }
 0x307   : > { %3469 = vmatmul.mubr.bf16.vlgmr.msra.gmra.mxu1 %v2609_v51  ;;  %3478 = vmatpush1.bf16.msra.mxu0 %v6234_v52  ;;  %v6300_v51 = vld [vmem:[#allocation11 + $0x2c0] ss:$8 sps:$4 sm:$0xff]  }
 0x308   : > { %3519 = vmatpush1.bf16.msra.mxu1 %v6237_v53  ;;  %3479 = vmatprep.subr.bf16.mxu0 %v6242_v56  ;;  %v6303_v52 = vld [vmem:[#allocation11 + $0x3c0] ss:$8 sps:$4 sm:$0xff]   ;;  %v6308_v53 = vld [vmem:[#allocation11 + $0x2b4] ss:$8 sps:$4 sm:$0xff]  }
 0x309   : > { %3520 = vmatprep.subr.bf16.mxu1 %v6245_v57  ;;  %3509 = vmatprep.mubr.bf16.mxu0 %v2612_v39  ;;  %v6311_v56 = vld [vmem:[#allocation11 + $0x3b4] ss:$8 sps:$4 sm:$0xff]   ;;  %v6306_v57 = vld [vmem:[#allocation11 + $0x2b0] ss:$8 sps:$4 sm:$0xff]  }
 0x30a   : > { %3550 = vmatprep.mubr.bf16.mxu1 %v2614_v40 }
 0x30b   : > { %3480 = vmatpush1.bf16.msra.mxu0 %v6240_v58  ;;  %v6309_v58 = vld [vmem:[#allocation11 + $0x3b0] ss:$8 sps:$4 sm:$0xff]  }
 0x30c   : > { %3521 = vmatpush1.bf16.msra.mxu1 %v6243_v61  ;;  %3481 = vmatprep.subr.bf16.mxu0 %v6248_v59  ;;  %v6314_v61 = vld [vmem:[#allocation11 + $0x2a4] ss:$8 sps:$4 sm:$0xff]  }
 0x30d   : > { %3522 = vmatprep.subr.bf16.mxu1 %v6251_v62  ;;  %v6317_v59 = vld [vmem:[#allocation11 + $0x3a4] ss:$8 sps:$4 sm:$0xff]   ;;  %v6312_v62 = vld [vmem:[#allocation11 + $0x2a0] ss:$8 sps:$4 sm:$0xff]  }
 0x30f   : > { %3482 = vmatpush1.bf16.msra.mxu0 %v6246_v60  ;;  %v6315_v60 = vld [vmem:[#allocation11 + $0x3a0] ss:$8 sps:$4 sm:$0xff]  }
 0x310   : > { %3523 = vmatpush1.bf16.msra.mxu1 %v6249_v0  ;;  %3483 = vmatprep.subr.bf16.mxu0 %v6254_v1  ;;  %v2545_v0 = vld [vmem:[#allocation2 + $0x8] sm:$0xff] }
 0x311   : > { %3524 = vmatprep.subr.bf16.mxu1 %v6257_v2  ;;  %v2547_v1 = vld [vmem:[#allocation2 + $0x28] sm:$0xff]  ;;  %v6320_v2 = vld [vmem:[#allocation11 + $0x294] ss:$8 sps:$4 sm:$0xff]  }
 0x313   : > { %3484 = vmatpush1.bf16.msra.mxu0 %v6252_v3  ;;  %v6323_v3 = vld [vmem:[#allocation11 + $0x394] ss:$8 sps:$4 sm:$0xff]  }
 0x314   : > { %3525 = vmatpush1.bf16.msra.mxu1 %v6255_v6  ;;  %3485 = vmatprep.subr.bf16.mxu0 %v6260_v7  ;;  %v6318_v6 = vld [vmem:[#allocation11 + $0x290] ss:$8 sps:$4 sm:$0xff]  }
 0x315   : > { %3526 = vmatprep.subr.bf16.mxu1 %v6263_v8  ;;  %v6321_v7 = vld [vmem:[#allocation11 + $0x390] ss:$8 sps:$4 sm:$0xff]   ;;  %v6326_v8 = vld [vmem:[#allocation11 + $0x284] ss:$8 sps:$4 sm:$0xff]  }
 0x317   : > { %3486 = vmatpush1.bf16.msra.mxu0 %v6258_v11  ;;  %v2595_v11 = vadd.f32 %v7683_v22, %v2545_v0  ;;  %v6330_v22 = vld [vmem:[#allocation14 + $0x78] sm:$0xff]  }
 0x318   : > { %3527 = vmatpush1.bf16.msra.mxu1 %v6261_v12  ;;  %3487 = vmatprep.subr.bf16.mxu0 %v6266_v14  ;;  %v2597_v12 = vadd.f32 %v7690_v54, %v2547_v1  ;;  %v6327_v14 = vld [vmem:[#allocation11 + $0x380] ss:$8 sps:$4 sm:$0xff]  }
 0x319   : > { %3528 = vmatprep.subr.bf16.mxu1 %v6269_v15  ;;  %v2603_v15 = vmax.f32 %v2595_v11, 0.0  ;;  %v6331_v54 = vld [vmem:[#allocation14 + $0x38] sm:$0xff]  }
 0x31a   : > { %v6351_v11 = vld [vmem:[#allocation17 + $0x2e4] ss:$16 sps:$4 sm:$0xff]  }
 0x31b   : > { %3488 = vmatpush1.bf16.msra.mxu0 %v6264_v16  ;;  %v2605_v16 = vmax.f32 %v2597_v12, 0.0  ;;  %v6354_v12 = vld [vmem:[#allocation17 + $0xc4] ss:$16 sps:$4 sm:$0xff]  }
 0x31c   : > { %3529 = vmatpush1.bf16.msra.mxu1 %v6267_v18  ;;  %3489 = vmatprep.subr.bf16.mxu0 %v6272_v23  ;;  %v2611_v18 = vpack.c.bf16 %v2603_v15, %v2603_v15  ;;  %v6333_v23 = vld [vmem:[#allocation14 + $0x30] sm:$0xff]  }
 0x31d   : > { %3530 = vmatprep.subr.bf16.mxu1 %v6275_v26  ;;  %v2613_v19 = vpack.c.bf16 %v2605_v16, %v2605_v16  ;;  %v6334_v26 = vld [vmem:[#allocation14 + $0x68] sm:$0xff]   ;;  %v6355_v15 = vld [vmem:[#allocation17 + $0x2c0] ss:$16 sps:$4 sm:$0xff]  }
 0x31e   : > { %v6360_v16 = vld [vmem:[#allocation17 + $0xa4] ss:$16 sps:$4 sm:$0xff]  }
 0x31f   : > { %3490 = vmatpush1.bf16.msra.mxu0 %v6270_v27  ;;  %v6335_v27 = vld [vmem:[#allocation14 + $0x28] sm:$0xff]  }
 0x320   : > { %3531 = vmatpush1.bf16.msra.mxu1 %v6273_v29  ;;  %3491 = vmatprep.subr.bf16.mxu0 %v6278_v30  ;;  %v6338_v29 = vld [vmem:[#allocation14 + $0x58] sm:$0xff]  }
 0x321   : > { %3532 = vmatprep.subr.bf16.mxu1 %v6281_v31  ;;  %v6339_v30 = vld [vmem:[#allocation14 + $0x18] sm:$0xff]   ;;  %v6340_v31 = vld [vmem:[#allocation14 + $0x50] sm:$0xff]  }
 0x323   : > { %3492 = vmatpush1.bf16.msra.mxu0 %v6276_v34  ;;  %v6343_v34 = vld [vmem:[#allocation14 + $0x8] sm:$0xff]  }
 0x324   : > { %3533 = vmatpush1.bf16.msra.mxu1 %v6279_v35  ;;  %3493 = vmatprep.subr.bf16.mxu0 %v6284_v37  ;;  %v6344_v35 = vld [vmem:[#allocation14 + $0x40] sm:$0xff]  }
 0x325   : > { %3534 = vmatprep.subr.bf16.mxu1 %v6287_v38 }
 0x327   : > { %3494 = vmatpush2.bf16.msra.mxu0 %v6282_v41 }
 0x328   : > { %3535 = vmatpush2.bf16.msra.mxu1 %v6285_v42  ;;  %3495 = vmatprep.subr.bf16.mxu0 %v6290_v43 }
 0x329   : > { %3536 = vmatprep.subr.bf16.mxu1 %v6293_v44  ;;  %v2743_v44 = vld [vmem:[#allocation12] sm:$0x3] }
 0x32b   : > { %3496 = vmatpush2.bf16.msra.mxu0 %v6288_v17  ;;  %v2748_v17 = vrot.slane %v2743_v44, %v7686_v24 }
 0x32c   : > { %3537 = vmatpush2.bf16.msra.mxu1 %v6291_v45  ;;  %3497 = vmatprep.subr.bf16.mxu0 %v6296_v46  ;;  %v2752_v45 = vrot.slane %v2743_v44, %v7670_v4  ;;  %v6397_v44 = vld [vmem:[#allocation17 + $0x3e0] ss:$16 sps:$4 sm:$0xff]  }
 0x32d   : > { %3538 = vmatprep.subr.bf16.mxu1 %v6299_v47 }
 0x32f   : > { %3498 = vmatpush2.bf16.msra.mxu0 %v6294_v20 }
 0x330   : > { %3539 = vmatpush2.bf16.msra.mxu1 %v6297_v48  ;;  %3499 = vmatprep.subr.bf16.mxu0 %v6302_v49 }
 0x331   : > { %3540 = vmatprep.subr.bf16.mxu1 %v6305_v50 }
 0x333   : > { %3500 = vmatpush2.bf16.msra.mxu0 %v6300_v51 }
 0x334   : > { %3541 = vmatpush2.bf16.msra.mxu1 %v6303_v52  ;;  %3501 = vmatprep.subr.bf16.mxu0 %v6308_v53 }
 0x335   : > { %3542 = vmatprep.subr.bf16.mxu1 %v6311_v56 }
 0x337   : > { %3502 = vmatpush2.bf16.msra.mxu0 %v6306_v57 }
 0x338   : > { %3543 = vmatpush2.bf16.msra.mxu1 %v6309_v58  ;;  %3503 = vmatprep.subr.bf16.mxu0 %v6314_v61 }
 0x339   : > { %3544 = vmatprep.subr.bf16.mxu1 %v6317_v59 }
 0x33b   : > { %3504 = vmatpush2.bf16.msra.mxu0 %v6312_v62 }
 0x33c   : > { %3545 = vmatpush2.bf16.msra.mxu1 %v6315_v60  ;;  %3505 = vmatprep.subr.bf16.mxu0 %v6320_v2 }
 0x33d   : > { %3546 = vmatprep.subr.bf16.mxu1 %v6323_v3 }
 0x33f   : > { %3506 = vmatpush2.bf16.msra.mxu0 %v6318_v6  ;;  %v7035_v6 = vmov 0  }
 0x340   : > { %3547 = vmatpush2.bf16.msra.mxu1 %v6321_v7  ;;  %3507 = vmatprep.subr.bf16.mxu0 %v6326_v8  ;;  %v6346_v7 = vld [vmem:[#allocation17 + $0xe0] ss:$16 sps:$4 sm:$0xff]   ;;  %v6348_v8 = vld [vmem:[#allocation17 + $0xe4] ss:$16 sps:$4 sm:$0xff]  }
 0x341   : > { %3548 = vmatprep.subr.bf16.mxu1 %v6329_v9  ;;  %6137 = vset.pattern.permute.xlu0 %v7035_v6  ;;  %v6349_v9 = vld [vmem:[#allocation17 + $0x2e0] ss:$16 sps:$4 sm:$0xff]  }
 0x343   : > { %3508 = vmatpush2.bf16.msra.mxu0 %v6324_v13  ;;  %v6357_v13 = vld [vmem:[#allocation17 + $0x2c4] ss:$16 sps:$4 sm:$0xff]  }
 0x344   : > { %3549 = vmatpush2.bf16.msra.mxu1 %v6327_v14  ;;  %5898 = vmatprep.subr.bf16.mxu0 %v6330_v22  ;;  %v6352_v14 = vld [vmem:[#allocation17 + $0xc0] ss:$16 sps:$4 sm:$0xff]  }
 0x345   : > { %4576 = vmatprep.subr.bf16.mxu1 %v6348_v8  ;;  %v6361_v22 = vld [vmem:[#allocation17 + $0x2a0] ss:$16 sps:$4 sm:$0xff]   ;;  %v6423_v8 = vld [vmem:[#allocation17 + $0x364] ss:$16 sps:$4 sm:$0xff]  }
 0x346   : > { %3510 = vmatmul.mubr.bf16.vlgmr.msra.gmra.mxu0 %v2611_v18  ;;  %v6363_v18 = vld [vmem:[#allocation17 + $0x2a4] ss:$16 sps:$4 sm:$0xff]  }
 0x347   : > { %3551 = vmatmul.mubr.bf16.vlgmr.msra.gmra.mxu1 %v2613_v19  ;;  %5899 = vmatpush3.bf16.msra.mxu0 %v6331_v54  ;;  %v6358_v19 = vld [vmem:[#allocation17 + $0xa0] ss:$16 sps:$4 sm:$0xff]   ;;  %v6366_v54 = vld [vmem:[#allocation17 + $0x84] ss:$16 sps:$4 sm:$0xff]  }
 0x348   : > { %5900 = vmatprep.subr.bf16.mxu0 %v6332_v21  ;;  %4577 = vmatpush1.bf16.msra.mxu1 %v6346_v7  ;;  %v6369_v21 = vld [vmem:[#allocation17 + $0x284] ss:$16 sps:$4 sm:$0xff]  }
 0x349   : > { %4578 = vmatprep.subr.bf16.mxu1 %v6354_v12  ;;  %v6420_v7 = vld [vmem:[#allocation17 + $0x164] ss:$16 sps:$4 sm:$0xff]  }
 0x34a   : > { %v6426_v12 = vld [vmem:[#allocation17 + $0x144] ss:$16 sps:$4 sm:$0xff]  }
 0x34b   : > { %5901 = vmatpush3.bf16.msra.mxu0 %v6333_v23  ;;  %v6364_v23 = vld [vmem:[#allocation17 + $0x80] ss:$16 sps:$4 sm:$0xff]  }
 0x34c   : > { %5902 = vmatprep.subr.bf16.mxu0 %v6334_v26  ;;  %4579 = vmatpush1.bf16.msra.mxu1 %v6352_v14  ;;  %v6367_v26 = vld [vmem:[#allocation17 + $0x280] ss:$16 sps:$4 sm:$0xff]  }
 0x34d   : > { %4580 = vmatprep.subr.bf16.mxu1 %v6360_v16  ;;  %v6427_v16 = vld [vmem:[#allocation17 + $0x340] ss:$16 sps:$4 sm:$0xff]  }
 0x34f   : > { %5903 = vmatpush3.bf16.msra.mxu0 %v6335_v27  ;;  %v6372_v27 = vld [vmem:[#allocation17 + $0x64] ss:$16 sps:$4 sm:$0xff]  }
 0x350   : > { %5904 = vmatprep.subr.bf16.mxu0 %v6336_v55  ;;  %4581 = vmatpush1.bf16.msra.mxu1 %v6358_v19  ;;  %v6375_v55 = vld [vmem:[#allocation17 + $0x264] ss:$16 sps:$4 sm:$0xff]  }
 0x351   : > { %4582 = vmatprep.subr.bf16.mxu1 %v6366_v54  ;;  %v6435_v19 = vld [vmem:[#allocation17 + $0x324] ss:$16 sps:$4 sm:$0xff]   ;;  %v6433_v54 = vld [vmem:[#allocation17 + $0x320] ss:$16 sps:$4 sm:$0xff]  }
 0x353   : > { %5905 = vmatpush3.bf16.msra.mxu0 %v6337_v28  ;;  %v6370_v28 = vld [vmem:[#allocation17 + $0x60] ss:$16 sps:$4 sm:$0xff]  }
 0x354   : > { %5906 = vmatprep.subr.bf16.mxu0 %v6338_v29  ;;  %4583 = vmatpush1.bf16.msra.mxu1 %v6364_v23  ;;  %v6373_v29 = vld [vmem:[#allocation17 + $0x260] ss:$16 sps:$4 sm:$0xff]   ;;  %v6438_v23 = vld [vmem:[#allocation17 + $0x104] ss:$16 sps:$4 sm:$0xff]  }
 0x355   : > { %4584 = vmatprep.subr.bf16.mxu1 %v6372_v27  ;;  %v6441_v27 = vld [vmem:[#allocation17 + $0x304] ss:$16 sps:$4 sm:$0xff]  }
 0x357   : > { %5907 = vmatpush3.bf16.msra.mxu0 %v6339_v30  ;;  %v6378_v30 = vld [vmem:[#allocation17 + $0x44] ss:$16 sps:$4 sm:$0xff]  }
 0x358   : > { %5908 = vmatprep.subr.bf16.mxu0 %v6340_v31  ;;  %v6381_v31 = vld [vmem:[#allocation17 + $0x244] ss:$16 sps:$4 sm:$0xff]   ;;  %4585 = vmatpush1.bf16.msra.mxu1 %v6370_v28  ;;  %v6447_v28 = vld [vmem:[#allocation17 + $0x2ec] ss:$16 sps:$4 sm:$0xff]  }
 0x359   : > { %4586 = vmatprep.subr.bf16.mxu1 %v6378_v30  ;;  %v3746_v30 = vld [vmem:[#allocation8 + $0x8] sm:$0xff] }
 0x35b   : > { %5909 = vmatpush3.bf16.msra.mxu0 %v6341_v32  ;;  %v6376_v32 = vld [vmem:[#allocation17 + $0x40] ss:$16 sps:$4 sm:$0xff]  }
 0x35c   : > { %5910 = vmatprep.subr.bf16.mxu0 %v6342_v33  ;;  %v6379_v33 = vld [vmem:[#allocation17 + $0x240] ss:$16 sps:$4 sm:$0xff]   ;;  %4587 = vmatpush1.bf16.msra.mxu1 %v6376_v32 }
 0x35d   : > { %v3748_v32 = vld [vmem:[#allocation8 + $0x18] sm:$0xff] }
 0x35f   : > { %5911 = vmatpush3.bf16.msra.mxu0 %v6343_v34  ;;  %v6384_v34 = vld [vmem:[#allocation17 + $0x24] ss:$16 sps:$4 sm:$0xff]  }
 0x360   : > { %5912 = vmatprep.subr.bf16.mxu0 %v6344_v35  ;;  %v6387_v35 = vld [vmem:[#allocation17 + $0x224] ss:$16 sps:$4 sm:$0xff]   ;;  %4588 = vmatprep.subr.bf16.mxu1 %v6384_v34 }
 0x363   : > { %5913 = vmatpush3.bf16.msra.mxu0 %v6345_v36  ;;  %v6382_v36 = vld [vmem:[#allocation17 + $0x20] ss:$16 sps:$4 sm:$0xff]  }
 0x364   : > { %4617 = vmatprep.subr.bf16.mxu0 %v6351_v11  ;;  %4589 = vmatpush1.bf16.msra.mxu1 %v6382_v36  ;;  %v6421_v11 = vld [vmem:[#allocation17 + $0x360] ss:$16 sps:$4 sm:$0xff]  }
 0x3c6   : > { %v3429_v10 = vpop.f32.mrf.mxu0 }
 0x3c7   : > { %v3470_v37 = vpop.f32.mrf.mxu1  ;;  %v3430_v46 = vadd.f32 %v3429_v10, %v2748_v17  ;;  %v6385_v10 = vld [vmem:[#allocation17 + $0x220] ss:$16 sps:$4 sm:$0xff]   ;;  %v6402_v17 = vld [vmem:[#allocation17 + $0x1c4] ss:$16 sps:$4 sm:$0xff]  }
 0x3c8   : > { %v3431_v38 = vpop.f32.mrf.mxu0 }
 0x3c9   : > { %v3472_v39 = vpop.f32.mrf.mxu1  ;;  %v3432_v47 = vadd.f32 %v3431_v38, %v2752_v45  ;;  %v3471_v20 = vadd.f32 %v3470_v37, %v3430_v46  ;;  %v6390_v37 = vld [vmem:[#allocation17 + $0x4] ss:$16 sps:$4 sm:$0xff]   ;;  %v6400_v46 = vld [vmem:[#allocation17 + $0x1c0] ss:$16 sps:$4 sm:$0xff]  }
 0x3ca   : > { %v3433_v40 = vpop.f32.mrf.mxu0  ;;  %v6393_v38 = vld [vmem:[#allocation17 + $0x204] ss:$16 sps:$4 sm:$0xff]   ;;  %4590 = vmatprep.subr.bf16.mxu1 %v6390_v37 }
 0x3cb   : > { %v3474_v41 = vpop.f32.mrf.mxu1  ;;  %v3473_v50 = vadd.f32 %v3472_v39, %v3432_v47  ;;  %v6388_v39 = vld [vmem:[#allocation17] ss:$16 sps:$4 sm:$0xff]   ;;  %v6405_v45 = vld [vmem:[#allocation17 + $0x3c4] ss:$16 sps:$4 sm:$0xff]  }
 0x3cc   : > { %v3434_v42 = vpop.f32.mrf.mxu0  ;;  %v6391_v40 = vld [vmem:[#allocation17 + $0x200] ss:$16 sps:$4 sm:$0xff]   ;;  %v6396_v41 = vld [vmem:[#allocation17 + $0x1e4] ss:$16 sps:$4 sm:$0xff]   ;;  %4591 = vmatpush1.bf16.msra.mxu1 %v6388_v39 }
 0x3cd   : > { %v3475_v43 = vpop.f32.mrf.mxu1  ;;  %v6399_v42 = vld [vmem:[#allocation17 + $0x3e4] ss:$16 sps:$4 sm:$0xff]   ;;  %4592 = vmatprep.subr.bf16.mxu1 %v6396_v41  ;;  %v6403_v47 = vld [vmem:[#allocation17 + $0x3c0] ss:$16 sps:$4 sm:$0xff]  }
 0x3ce   : > { %v6394_v43 = vld [vmem:[#allocation17 + $0x1e0] ss:$16 sps:$4 sm:$0xff]  }
 0x3d0   : > { %4593 = vmatpush2.bf16.msra.mxu1 %v6394_v43 }
 0x3d1   : > { %4594 = vmatprep.subr.bf16.mxu1 %v6402_v17 }
 0x3d4   : > { %4595 = vmatpush2.bf16.msra.mxu1 %v6400_v46 }
 0x406   : > { %v3511_v48 = vpop.f32.mrf.mxu0 }
 0x407   : > { %v3552_v49 = vpop.f32.mrf.mxu1  ;;  %v3512_v51 = vadd.f32 %v3511_v48, %v3471_v20  ;;  %v6408_v20 = vld [vmem:[#allocation17 + $0x1a4] ss:$16 sps:$4 sm:$0xff]  }
 0x408   : > { %v3513_v52 = vpop.f32.mrf.mxu0  ;;  %v6411_v48 = vld [vmem:[#allocation17 + $0x3a4] ss:$16 sps:$4 sm:$0xff]   ;;  %4596 = vmatprep.subr.bf16.mxu1 %v6408_v20 }
 0x409   : > { %v3554_v53 = vpop.f32.mrf.mxu1  ;;  %v3553_v56 = vadd.f32 %v3552_v49, %v3512_v51  ;;  %v3514_v57 = vadd.f32 %v3513_v52, %v3473_v50  ;;  %v6406_v49 = vld [vmem:[#allocation17 + $0x1a0] ss:$16 sps:$4 sm:$0xff]   ;;  %v6414_v51 = vld [vmem:[#allocation17 + $0x184] ss:$16 sps:$4 sm:$0xff]  }
 0x40a   : > { %v3515_v58 = vpop.f32.mrf.mxu0  ;;  %v6409_v50 = vld [vmem:[#allocation17 + $0x3a0] ss:$16 sps:$4 sm:$0xff]   ;;  %v6417_v52 = vld [vmem:[#allocation17 + $0x384] ss:$16 sps:$4 sm:$0xff]   ;;  %4597 = vmatpush2.bf16.msra.mxu1 %v6406_v49 }
 0x40b   : > { %v3556_v61 = vpop.f32.mrf.mxu1  ;;  %v3555_v59 = vadd.f32 %v3554_v53, %v3514_v57  ;;  %v3559_v62 = vmax.f32 %v3553_v56, 0.0  ;;  %v6412_v53 = vld [vmem:[#allocation17 + $0x180] ss:$16 sps:$4 sm:$0xff]   ;;  %4598 = vmatprep.subr.bf16.mxu1 %v6414_v51  ;;  %v5712_v58 = vld [vmem:[#allocation15] ss:$0 sm:$0xff] }
 0x40c   : > { %v3516_v60 = vpop.f32.mrf.mxu0  ;;  %v6415_v56 = vld [vmem:[#allocation17 + $0x380] ss:$16 sps:$4 sm:$0xff]  }
 0x40d   : > { %v3557_v0 = vpop.f32.mrf.mxu1  ;;  %v3560_v1 = vmax.f32 %v3555_v59, 0.0  ;;  %v3561_v3 = vpack.c.bf16 %v3559_v62, %v3559_v62 }
 0x40e   : > { %4599 = vmatpush2.bf16.msra.mxu1 %v6412_v53 }
 0x40f   : > { %v3562_v2 = vpack.c.bf16 %v3560_v1, %v3560_v1  ;;  %4600 = vmatprep.subr.bf16.mxu1 %v6420_v7  ;;  %v6453_v7 = vld [vmem:[#allocation17 + $0x2cc] ss:$16 sps:$4 sm:$0xff]  }
 0x411   : > { %3730 = vmatprep.mubr.bf16.mxu0 %v3562_v2 }
 0x412   : > { %3731 = vmatmul.mubr.bf16.vlgmr.msra.gmra.mxu0 %v3561_v3 }
 0x413   : > { %4618 = vmatpush1.bf16.msra.mxu0 %v6349_v9  ;;  %v6418_v9 = vld [vmem:[#allocation17 + $0x160] ss:$16 sps:$4 sm:$0xff]  }
 0x414   : > { %4619 = vmatprep.subr.bf16.mxu0 %v6357_v13  ;;  %4601 = vmatpush2.bf16.msra.mxu1 %v6418_v9  ;;  %v6429_v13 = vld [vmem:[#allocation17 + $0x344] ss:$16 sps:$4 sm:$0xff]   ;;  %v6451_v9 = vld [vmem:[#allocation17 + $0x2c8] ss:$16 sps:$4 sm:$0xff]  }
 0x415   : > { %4602 = vmatprep.subr.bf16.mxu1 %v6426_v12  ;;  %v6459_v12 = vld [vmem:[#allocation17 + $0x2ac] ss:$16 sps:$4 sm:$0xff]  }
 0x417   : > { %4620 = vmatpush1.bf16.msra.mxu0 %v6355_v15  ;;  %v6424_v15 = vld [vmem:[#allocation17 + $0x140] ss:$16 sps:$4 sm:$0xff]  }
 0x418   : > { %4621 = vmatprep.subr.bf16.mxu0 %v6363_v18  ;;  %4603 = vmatpush2.bf16.msra.mxu1 %v6424_v15  ;;  %v6432_v18 = vld [vmem:[#allocation17 + $0x124] ss:$16 sps:$4 sm:$0xff]   ;;  %v6462_v15 = vld [vmem:[#allocation17 + $0x8c] ss:$16 sps:$4 sm:$0xff]  }
 0x419   : > { %4604 = vmatprep.subr.bf16.mxu1 %v6432_v18  ;;  %v6460_v18 = vld [vmem:[#allocation17 + $0x88] ss:$16 sps:$4 sm:$0xff]  }
 0x41b   : > { %4622 = vmatpush1.bf16.msra.mxu0 %v6361_v22  ;;  %v6430_v22 = vld [vmem:[#allocation17 + $0x120] ss:$16 sps:$4 sm:$0xff]  }
 0x41c   : > { %4623 = vmatprep.subr.bf16.mxu0 %v6369_v21  ;;  %4605 = vmatpush2.bf16.msra.mxu1 %v6430_v22  ;;  %v6436_v21 = vld [vmem:[#allocation17 + $0x100] ss:$16 sps:$4 sm:$0xff]   ;;  %v6468_v22 = vld [vmem:[#allocation17 + $0x6c] ss:$16 sps:$4 sm:$0xff]  }
 0x41d   : > { %4606 = vmatprep.subr.bf16.mxu1 %v6438_v23  ;;  %v6469_v23 = vld [vmem:[#allocation17 + $0x268] ss:$16 sps:$4 sm:$0xff]  }
 0x41f   : > { %4624 = vmatpush1.bf16.msra.mxu0 %v6367_v26  ;;  %v6439_v26 = vld [vmem:[#allocation17 + $0x300] ss:$16 sps:$4 sm:$0xff]  }
 0x420   : > { %4625 = vmatprep.subr.bf16.mxu0 %v6375_v55  ;;  %4607 = vmatpush2.bf16.msra.mxu1 %v6436_v21  ;;  %v6444_v55 = vld [vmem:[#allocation17 + $0xec] ss:$16 sps:$4 sm:$0xff]   ;;  %v6466_v21 = vld [vmem:[#allocation17 + $0x68] ss:$16 sps:$4 sm:$0xff]  }
 0x421   : > { %4658 = vmatprep.subr.bf16.mxu1 %v6444_v55  ;;  %v6472_v55 = vld [vmem:[#allocation17 + $0x48] ss:$16 sps:$4 sm:$0xff]  }
 0x423   : > { %4626 = vmatpush1.bf16.msra.mxu0 %v6373_v29  ;;  %v3745_v29 = vld [vmem:[#allocation8] sm:$0xff] }
 0x424   : > { %4627 = vmatprep.subr.bf16.mxu0 %v6381_v31  ;;  %v3747_v31 = vld [vmem:[#allocation8 + $0x10] sm:$0xff] }
 0x427   : > { %4628 = vmatpush1.bf16.msra.mxu0 %v6379_v33 }
 0x428   : > { %4629 = vmatprep.subr.bf16.mxu0 %v6387_v35 }
 0x42b   : > { %4630 = vmatpush1.bf16.msra.mxu0 %v6385_v10 }
 0x42c   : > { %4631 = vmatprep.subr.bf16.mxu0 %v6393_v38 }
 0x42f   : > { %4632 = vmatpush1.bf16.msra.mxu0 %v6391_v40 }
 0x430   : > { %4633 = vmatprep.subr.bf16.mxu0 %v6399_v42 }
 0x433   : > { %4634 = vmatpush2.bf16.msra.mxu0 %v6397_v44 }
 0x434   : > { %4635 = vmatprep.subr.bf16.mxu0 %v6405_v45 }
 0x437   : > { %4636 = vmatpush2.bf16.msra.mxu0 %v6403_v47 }
 0x438   : > { %4637 = vmatprep.subr.bf16.mxu0 %v6411_v48 }
 0x43b   : > { %4638 = vmatpush2.bf16.msra.mxu0 %v6409_v50 }
 0x43c   : > { %4639 = vmatprep.subr.bf16.mxu0 %v6417_v52 }
 0x43f   : > { %4640 = vmatpush2.bf16.msra.mxu0 %v6415_v56 }
 0x440   : > { %4641 = vmatprep.subr.bf16.mxu0 %v6423_v8  ;;  %v6448_v8 = vld [vmem:[#allocation17 + $0xc8] ss:$16 sps:$4 sm:$0xff]  }
 0x443   : > { %4642 = vmatpush2.bf16.msra.mxu0 %v6421_v11  ;;  %v6456_v11 = vld [vmem:[#allocation17 + $0xac] ss:$16 sps:$4 sm:$0xff]  }
 0x444   : > { %4643 = vmatprep.subr.bf16.mxu0 %v6429_v13  ;;  %v6454_v13 = vld [vmem:[#allocation17 + $0xa8] ss:$16 sps:$4 sm:$0xff]  }
 0x447   : > { %4644 = vmatpush2.bf16.msra.mxu0 %v6427_v16  ;;  %v6465_v16 = vld [vmem:[#allocation17 + $0x28c] ss:$16 sps:$4 sm:$0xff]  }
 0x448   : > { %4645 = vmatprep.subr.bf16.mxu0 %v6435_v19  ;;  %v6463_v19 = vld [vmem:[#allocation17 + $0x288] ss:$16 sps:$4 sm:$0xff]  }
 0x44b   : > { %4646 = vmatpush2.bf16.msra.mxu0 %v6433_v54  ;;  %v6471_v54 = vld [vmem:[#allocation17 + $0x26c] ss:$16 sps:$4 sm:$0xff]  }
 0x44c   : > { %4647 = vmatprep.subr.bf16.mxu0 %v6441_v27  ;;  %v6477_v27 = vld [vmem:[#allocation17 + $0x24c] ss:$16 sps:$4 sm:$0xff]  }
 0x44f   : > { %4648 = vmatpush2.bf16.msra.mxu0 %v6439_v26  ;;  %v6474_v26 = vld [vmem:[#allocation17 + $0x4c] ss:$16 sps:$4 sm:$0xff]  }
 0x450   : > { %4699 = vmatprep.subr.bf16.mxu0 %v6447_v28  ;;  %v6475_v28 = vld [vmem:[#allocation17 + $0x248] ss:$16 sps:$4 sm:$0xff]  }
 0x4d2   : > { %v5914_v57 = vpop.f32.mrf.mxu0 }
 0x4d4   : > { %v5915_v61 = vpop.f32.mrf.mxu0 }
 0x4d5   : > { %v5916_v59 = vadd.f32 %v5915_v61, %v5914_v57 }
 0x4d6   : > { %v5917_v62 = vpop.f32.mrf.mxu0 }
 0x4d7   : > { %v3733_v60 = vadd.f32 %v5916_v59, %v5712_v58 }
 0x4d8   : > { %v5918_v0 = vpop.f32.mrf.mxu0 }
 0x4d9   : > { %v3738_v1 = vsub.f32 0.0, %v3733_v60  ;;  %v6442_v0 = vld [vmem:[#allocation17 + $0xe8] ss:$16 sps:$4 sm:$0xff]  }
 0x4db   : > { %v3739_v2 = vmul.f32 1.442695, %v3738_v1  ;;  %v6445_v1 = vld [vmem:[#allocation17 + $0x2e8] ss:$16 sps:$4 sm:$0xff]  }
 0x4dd   : > { %6570 = vpow2.f32 %v3739_v2 }
 0x4ea   : > { %v6571_v3 = vpop.eup %6570 }
 0x4eb   : > { %v3741_v6 = vadd.f32 1.0, %v6571_v3 }
 0x4ed   : > { %6572 = vrcp.f32 %v3741_v6  ;;  %v6450_v6 = vld [vmem:[#allocation17 + $0xcc] ss:$16 sps:$4 sm:$0xff]  }
 0x4fa   : > { %v6573_v14 = vpop.eup %6572 }
 0x4fb   : > { %3744 = vst [vmem:[#allocation23] sm:$0xff] %v6573_v14  ;;  %3751 = vperm.xlu0 %6137, %v6573_v14   ;;  %v6457_v14 = vld [vmem:[#allocation17 + $0x2a8] ss:$16 sps:$4 sm:$0xff]  }
 0x576   : > { %v3752_v33 = vpop.permute.xlu0 %3751 }
 0x577   : > { %v3754_v34 = vmul.f32 %v3752_v33, %v3745_v29  ;;  %v3755_v35 = vmul.f32 %v3752_v33, %v3746_v30  ;;  %v3756_v36 = vmul.f32 %v3752_v33, %v3747_v31  ;;  %v3757_v10 = vmul.f32 %v3752_v33, %v3748_v32  ;;  %v6480_v29 = vld [vmem:[#allocation17 + $0x2c] ss:$16 sps:$4 sm:$0xff]   ;;  %v6478_v31 = vld [vmem:[#allocation17 + $0x28] ss:$16 sps:$4 sm:$0xff]  }
 0x578   : > { %v6483_v30 = vld [vmem:[#allocation17 + $0x22c] ss:$16 sps:$4 sm:$0xff]   ;;  %v6481_v32 = vld [vmem:[#allocation17 + $0x228] ss:$16 sps:$4 sm:$0xff]  }
 0x579   : > { %v3758_v37 = vrot.slane %v3754_v34, 4  ;;  %v3764_v38 = vrot.slane %v3755_v35, 4  ;;  %v3770_v39 = vrot.slane %v3756_v36, 4  ;;  %v3776_v40 = vrot.slane %v3757_v10, 4  ;;  %v6486_v33 = vld [vmem:[#allocation17 + $0xc] ss:$16 sps:$4 sm:$0xff]  }
 0x57b   : > { %v3759_v41 = vadd.f32 %v3758_v37, %v3754_v34  ;;  %v3765_v42 = vadd.f32 %v3764_v38, %v3755_v35  ;;  %v3771_v43 = vadd.f32 %v3770_v39, %v3756_v36  ;;  %v3777_v44 = vadd.f32 %v3776_v40, %v3757_v10  ;;  %v6489_v34 = vld [vmem:[#allocation17 + $0x20c] ss:$16 sps:$4 sm:$0xff]   ;;  %v6484_v35 = vld [vmem:[#allocation17 + $0x8] ss:$16 sps:$4 sm:$0xff]  }
 0x57c   : > { %v6487_v36 = vld [vmem:[#allocation17 + $0x208] ss:$16 sps:$4 sm:$0xff]   ;;  %v6492_v10 = vld [vmem:[#allocation17 + $0x1ec] ss:$16 sps:$4 sm:$0xff]  }
 0x57d   : > { %v3760_v17 = vrot.slane %v3759_v41, 2  ;;  %v3766_v45 = vrot.slane %v3765_v42, 2  ;;  %v3772_v46 = vrot.slane %v3771_v43, 2  ;;  %v3778_v47 = vrot.slane %v3777_v44, 2  ;;  %v6495_v37 = vld [vmem:[#allocation17 + $0x3ec] ss:$16 sps:$4 sm:$0xff]  }
 0x57e   : > { %v6490_v38 = vld [vmem:[#allocation17 + $0x1e8] ss:$16 sps:$4 sm:$0xff]   ;;  %v6498_v40 = vld [vmem:[#allocation17 + $0x1cc] ss:$16 sps:$4 sm:$0xff]  }
 0x57f   : > { %v3761_v20 = vadd.f32 %v3760_v17, %v3759_v41  ;;  %v3773_v48 = vadd.f32 %v3772_v46, %v3771_v43  ;;  %v3767_v49 = vadd.f32 %v3766_v45, %v3765_v42  ;;  %v3779_v50 = vadd.f32 %v3778_v47, %v3777_v44  ;;  %v6493_v39 = vld [vmem:[#allocation17 + $0x3e8] ss:$16 sps:$4 sm:$0xff]   ;;  %v6501_v41 = vld [vmem:[#allocation17 + $0x3cc] ss:$16 sps:$4 sm:$0xff]  }
 0x580   : > { %v6496_v42 = vld [vmem:[#allocation17 + $0x1c8] ss:$16 sps:$4 sm:$0xff]   ;;  %v6504_v44 = vld [vmem:[#allocation17 + $0x1ac] ss:$16 sps:$4 sm:$0xff]  }
 0x581   : > { %v3762_v51 = vrot.slane %v3761_v20, 1  ;;  %v3774_v52 = vrot.slane %v3773_v48, 1  ;;  %v3768_v53 = vrot.slane %v3767_v49, 1  ;;  %v3780_v56 = vrot.slane %v3779_v50, 1  ;;  %v6499_v43 = vld [vmem:[#allocation17 + $0x3c8] ss:$16 sps:$4 sm:$0xff]  }
 0x582   : > { %v6507_v17 = vld [vmem:[#allocation17 + $0x3ac] ss:$16 sps:$4 sm:$0xff]   ;;  %v6502_v45 = vld [vmem:[#allocation17 + $0x1a8] ss:$16 sps:$4 sm:$0xff]  }
 0x583   : > { %v3769_v57 = vadd.f32 %v3768_v53, %v3767_v49  ;;  %v3781_v58 = vadd.f32 %v3780_v56, %v3779_v50  ;;  %v3763_v61 = vadd.f32 %v3762_v51, %v3761_v20  ;;  %v3775_v59 = vadd.f32 %v3774_v52, %v3773_v48  ;;  %v6505_v46 = vld [vmem:[#allocation17 + $0x3a8] ss:$16 sps:$4 sm:$0xff]   ;;  %v6510_v47 = vld [vmem:[#allocation17 + $0x18c] ss:$16 sps:$4 sm:$0xff]  }
 0x584   : > { %v6513_v20 = vld [vmem:[#allocation17 + $0x38c] ss:$16 sps:$4 sm:$0xff]   ;;  %v6508_v48 = vld [vmem:[#allocation17 + $0x188] ss:$16 sps:$4 sm:$0xff]  }
 0x585   : > { %v3783_v62 = vpack.c.bf16 %v3769_v57, %v3769_v57  ;;  %v3785_v60 = vpack.c.bf16 %v3781_v58, %v3781_v58  ;;  %v7705_v2 = vpack.c.bf16 %v3763_v61, %v3763_v61  ;;  %v7707_v3 = vpack.c.bf16 %v3775_v59, %v3775_v59  ;;  %v6511_v49 = vld [vmem:[#allocation17 + $0x388] ss:$16 sps:$4 sm:$0xff]   ;;  %v6516_v50 = vld [vmem:[#allocation17 + $0x16c] ss:$16 sps:$4 sm:$0xff]  }
 0x586   : > { %v6519_v51 = vld [vmem:[#allocation17 + $0x36c] ss:$16 sps:$4 sm:$0xff]   ;;  %v6514_v52 = vld [vmem:[#allocation17 + $0x168] ss:$16 sps:$4 sm:$0xff]  }
 0x587   : > { %4608 = vmatprep.mubr.bf16.mxu1 %v3783_v62  ;;  %4649 = vmatprep.mubr.bf16.mxu0 %v3785_v60  ;;  %v6517_v53 = vld [vmem:[#allocation17 + $0x368] ss:$16 sps:$4 sm:$0xff]   ;;  %v6522_v56 = vld [vmem:[#allocation17 + $0x14c] ss:$16 sps:$4 sm:$0xff]  }
 0x588   : > { %4609 = vmatmul.mubr.bf16.vlgmr.msra.gmra.mxu1 %v7705_v2  ;;  %4650 = vmatmul.mubr.bf16.vlgmr.msra.gmra.mxu0 %v7707_v3  ;;  %v6525_v57 = vld [vmem:[#allocation17 + $0x34c] ss:$16 sps:$4 sm:$0xff]   ;;  %v6520_v58 = vld [vmem:[#allocation17 + $0x148] ss:$16 sps:$4 sm:$0xff]  }
 0x589   : > { %4659 = vmatpush1.bf16.msra.mxu1 %v6442_v0  ;;  %4700 = vmatpush1.bf16.msra.mxu0 %v6445_v1  ;;  %v6523_v61 = vld [vmem:[#allocation17 + $0x348] ss:$16 sps:$4 sm:$0xff]   ;;  %v6528_v59 = vld [vmem:[#allocation17 + $0x12c] ss:$16 sps:$4 sm:$0xff]  }
 0x58a   : > { %4690 = vmatprep.mubr.bf16.mxu1 %v3783_v62  ;;  %4731 = vmatprep.mubr.bf16.mxu0 %v3785_v60  ;;  %v6531_v62 = vld [vmem:[#allocation17 + $0x32c] ss:$16 sps:$4 sm:$0xff]   ;;  %v6526_v60 = vld [vmem:[#allocation17 + $0x128] ss:$16 sps:$4 sm:$0xff]  }
 0x58b   : > { %4660 = vmatprep.subr.bf16.mxu1 %v6450_v6  ;;  %4701 = vmatprep.subr.bf16.mxu0 %v6453_v7  ;;  %v6529_v0 = vld [vmem:[#allocation17 + $0x328] ss:$16 sps:$4 sm:$0xff]   ;;  %v6534_v1 = vld [vmem:[#allocation17 + $0x10c] ss:$16 sps:$4 sm:$0xff]  }
 0x58c   : > { %v6537_v6 = vld [vmem:[#allocation17 + $0x30c] ss:$16 sps:$4 sm:$0xff]   ;;  %v6532_v7 = vld [vmem:[#allocation17 + $0x108] ss:$16 sps:$4 sm:$0xff]  }
 0x58d   : > { %4661 = vmatpush1.bf16.msra.mxu1 %v6448_v8  ;;  %4702 = vmatpush1.bf16.msra.mxu0 %v6451_v9  ;;  %v6535_v8 = vld [vmem:[#allocation17 + $0x308] ss:$16 sps:$4 sm:$0xff]   ;;  %v6538_v9 = vld [vmem:[#allocation20 + $0x78] sm:$0xff]  }
 0x58e   : > { %4662 = vmatprep.subr.bf16.mxu1 %v6456_v11  ;;  %4703 = vmatprep.subr.bf16.mxu0 %v6459_v12  ;;  %v6539_v11 = vld [vmem:[#allocation20 + $0x38] sm:$0xff]   ;;  %v6540_v12 = vld [vmem:[#allocation20 + $0x70] sm:$0xff]  }
 0x591   : > { %4663 = vmatpush1.bf16.msra.mxu1 %v6454_v13  ;;  %4704 = vmatpush1.bf16.msra.mxu0 %v6457_v14  ;;  %v6541_v13 = vld [vmem:[#allocation20 + $0x30] sm:$0xff]   ;;  %v6542_v14 = vld [vmem:[#allocation20 + $0x68] sm:$0xff]  }
 0x592   : > { %4664 = vmatprep.subr.bf16.mxu1 %v6462_v15  ;;  %4705 = vmatprep.subr.bf16.mxu0 %v6465_v16  ;;  %v6543_v15 = vld [vmem:[#allocation20 + $0x28] sm:$0xff]   ;;  %v6544_v16 = vld [vmem:[#allocation20 + $0x60] sm:$0xff]  }
 0x595   : > { %4665 = vmatpush1.bf16.msra.mxu1 %v6460_v18  ;;  %4706 = vmatpush1.bf16.msra.mxu0 %v6463_v19  ;;  %v6545_v18 = vld [vmem:[#allocation20 + $0x20] sm:$0xff]   ;;  %v6546_v19 = vld [vmem:[#allocation20 + $0x58] sm:$0xff]  }
 0x596   : > { %4666 = vmatprep.subr.bf16.mxu1 %v6468_v22  ;;  %4707 = vmatprep.subr.bf16.mxu0 %v6471_v54  ;;  %v6554_v22 = vld [vmem:[#allocation20 + $0xf8] sm:$0xff]  }
 0x597   : > { %v6555_v54 = vld [vmem:[#allocation20 + $0xb8] sm:$0xff]  }
 0x599   : > { %4667 = vmatpush1.bf16.msra.mxu1 %v6466_v21  ;;  %4708 = vmatpush1.bf16.msra.mxu0 %v6469_v23  ;;  %v6556_v21 = vld [vmem:[#allocation20 + $0xf0] sm:$0xff]   ;;  %v6547_v23 = vld [vmem:[#allocation20 + $0x18] sm:$0xff]  }
 0x59a   : > { %4668 = vmatprep.subr.bf16.mxu1 %v6474_v26  ;;  %4709 = vmatprep.subr.bf16.mxu0 %v6477_v27  ;;  %v6558_v26 = vld [vmem:[#allocation20 + $0xe8] sm:$0xff]   ;;  %v6549_v27 = vld [vmem:[#allocation20 + $0x10] sm:$0xff]  }
 0x59d   : > { %4669 = vmatpush1.bf16.msra.mxu1 %v6472_v55  ;;  %4710 = vmatpush1.bf16.msra.mxu0 %v6475_v28  ;;  %v6550_v55 = vld [vmem:[#allocation20 + $0x48] sm:$0xff]  }
 0x59e   : > { %4670 = vmatprep.subr.bf16.mxu1 %v6480_v29  ;;  %4711 = vmatprep.subr.bf16.mxu0 %v6483_v30  ;;  %v6559_v28 = vld [vmem:[#allocation20 + $0xa8] sm:$0xff]   ;;  %v6560_v29 = vld [vmem:[#allocation20 + $0xe0] sm:$0xff]  }
 0x59f   : > { %v6551_v30 = vld [vmem:[#allocation20 + $0x8] sm:$0xff]  }
 0x5a1   : > { %4671 = vmatpush1.bf16.msra.mxu1 %v6478_v31  ;;  %4712 = vmatpush1.bf16.msra.mxu0 %v6481_v32  ;;  %v6552_v31 = vld [vmem:[#allocation20 + $0x40] sm:$0xff]  }
 0x5a2   : > { %4672 = vmatprep.subr.bf16.mxu1 %v6486_v33  ;;  %4713 = vmatprep.subr.bf16.mxu0 %v6489_v34  ;;  %v6561_v32 = vld [vmem:[#allocation20 + $0xa0] sm:$0xff]   ;;  %v6562_v33 = vld [vmem:[#allocation20 + $0xd8] sm:$0xff]  }
 0x5a3   : > { %v6553_v34 = vld [vmem:[#allocation20] sm:$0xff]  }
 0x5a5   : > { %4673 = vmatpush1.bf16.msra.mxu1 %v6484_v35  ;;  %4714 = vmatpush1.bf16.msra.mxu0 %v6487_v36  ;;  %v6563_v35 = vld [vmem:[#allocation20 + $0x98] sm:$0xff]   ;;  %v6564_v36 = vld [vmem:[#allocation20 + $0xd0] sm:$0xff]  }
 0x5a6   : > { %4674 = vmatprep.subr.bf16.mxu1 %v6492_v10  ;;  %4715 = vmatprep.subr.bf16.mxu0 %v6495_v37  ;;  %v6565_v10 = vld [vmem:[#allocation20 + $0x90] sm:$0xff]   ;;  %v6566_v37 = vld [vmem:[#allocation20 + $0xc8] sm:$0xff]  }
 0x5a9   : > { %4675 = vmatpush2.bf16.msra.mxu1 %v6490_v38  ;;  %4716 = vmatpush2.bf16.msra.mxu0 %v6493_v39  ;;  %v6567_v38 = vld [vmem:[#allocation20 + $0x88] sm:$0xff]   ;;  %v6568_v39 = vld [vmem:[#allocation20 + $0xc0] sm:$0xff]  }
 0x5aa   : > { %4676 = vmatprep.subr.bf16.mxu1 %v6498_v40  ;;  %4717 = vmatprep.subr.bf16.mxu0 %v6501_v41  ;;  %v6569_v40 = vld [vmem:[#allocation20 + $0x80] sm:$0xff]   ;;  %v3914_v41 = vld [vmem:[#allocation18] sm:$0xf] }
 0x5ad   : > { %4677 = vmatpush2.bf16.msra.mxu1 %v6496_v42  ;;  %4718 = vmatpush2.bf16.msra.mxu0 %v6499_v43  ;;  %v4559_v42 = vrot.slane %v3914_v41, %v7686_v24  ;;  %v4563_v43 = vrot.slane %v3914_v41, %v7670_v4  ;;  %v4567_v4 = vrot.slane %v3914_v41, %v2561_v25 }
 0x5ae   : > { %4678 = vmatprep.subr.bf16.mxu1 %v6504_v44  ;;  %4719 = vmatprep.subr.bf16.mxu0 %v6507_v17  ;;  %v4571_v24 = vrot.slane %v3914_v41, %v2565_v5 }
 0x5b1   : > { %4679 = vmatpush2.bf16.msra.mxu1 %v6502_v45  ;;  %4720 = vmatpush2.bf16.msra.mxu0 %v6505_v46 }
 0x5b2   : > { %4680 = vmatprep.subr.bf16.mxu1 %v6510_v47  ;;  %4721 = vmatprep.subr.bf16.mxu0 %v6513_v20 }
 0x5b5   : > { %4681 = vmatpush2.bf16.msra.mxu1 %v6508_v48  ;;  %4722 = vmatpush2.bf16.msra.mxu0 %v6511_v49 }
 0x5b6   : > { %4682 = vmatprep.subr.bf16.mxu1 %v6516_v50  ;;  %4723 = vmatprep.subr.bf16.mxu0 %v6519_v51 }
 0x5b9   : > { %4683 = vmatpush2.bf16.msra.mxu1 %v6514_v52  ;;  %4724 = vmatpush2.bf16.msra.mxu0 %v6517_v53 }
 0x5ba   : > { %4684 = vmatprep.subr.bf16.mxu1 %v6522_v56  ;;  %4725 = vmatprep.subr.bf16.mxu0 %v6525_v57 }
 0x5bd   : > { %4685 = vmatpush2.bf16.msra.mxu1 %v6520_v58  ;;  %4726 = vmatpush2.bf16.msra.mxu0 %v6523_v61 }
 0x5be   : > { %4686 = vmatprep.subr.bf16.mxu1 %v6528_v59  ;;  %4727 = vmatprep.subr.bf16.mxu0 %v6531_v62 }
 0x5c1   : > { %4687 = vmatpush2.bf16.msra.mxu1 %v6526_v60  ;;  %4728 = vmatpush2.bf16.msra.mxu0 %v6529_v0 }
 0x5c2   : > { %4688 = vmatprep.subr.bf16.mxu1 %v6534_v1  ;;  %4729 = vmatprep.subr.bf16.mxu0 %v6537_v6 }
 0x5c5   : > { %4689 = vmatpush2.bf16.msra.mxu1 %v6532_v7  ;;  %4730 = vmatpush2.bf16.msra.mxu0 %v6535_v8 }
 0x5c6   : > { %5920 = vmatprep.subr.bf16.mxu1 %v6538_v9  ;;  %5942 = vmatprep.subr.bf16.mxu0 %v6554_v22 }
 0x5c8   : > { %4691 = vmatmul.mubr.bf16.vlgmr.msra.gmra.mxu1 %v7705_v2  ;;  %4732 = vmatmul.mubr.bf16.vlgmr.msra.gmra.mxu0 %v7707_v3  ;;  %v6548_v2 = vld [vmem:[#allocation20 + $0x50] sm:$0xff]  }
 0x5c9   : > { %5921 = vmatpush3.bf16.msra.mxu1 %v6539_v11  ;;  %5943 = vmatpush3.bf16.msra.mxu0 %v6555_v54  ;;  %v6557_v3 = vld [vmem:[#allocation20 + $0xb0] sm:$0xff]   ;;  %v4812_v54 = vld [vmem:[#allocation21] sm:$0x1] }
 0x5ca   : > { %5922 = vmatprep.subr.bf16.mxu1 %v6540_v12  ;;  %5944 = vmatprep.subr.bf16.mxu0 %v6556_v21 }
 0x5cd   : > { %5923 = vmatpush3.bf16.msra.mxu1 %v6541_v13  ;;  %5945 = vmatpush3.bf16.msra.mxu0 %v6557_v3 }
 0x5ce   : > { %5924 = vmatprep.subr.bf16.mxu1 %v6542_v14  ;;  %5946 = vmatprep.subr.bf16.mxu0 %v6558_v26 }
 0x5d1   : > { %5925 = vmatpush3.bf16.msra.mxu1 %v6543_v15  ;;  %5947 = vmatpush3.bf16.msra.mxu0 %v6559_v28 }
 0x5d2   : > { %5926 = vmatprep.subr.bf16.mxu1 %v6544_v16  ;;  %5948 = vmatprep.subr.bf16.mxu0 %v6560_v29 }
 0x5d5   : > { %5927 = vmatpush3.bf16.msra.mxu1 %v6545_v18  ;;  %5949 = vmatpush3.bf16.msra.mxu0 %v6561_v32 }
 0x5d6   : > { %5928 = vmatprep.subr.bf16.mxu1 %v6546_v19  ;;  %5950 = vmatprep.subr.bf16.mxu0 %v6562_v33 }
 0x5d9   : > { %5929 = vmatpush3.bf16.msra.mxu1 %v6547_v23  ;;  %5951 = vmatpush3.bf16.msra.mxu0 %v6563_v35 }
 0x5da   : > { %5930 = vmatprep.subr.bf16.mxu1 %v6548_v2  ;;  %5952 = vmatprep.subr.bf16.mxu0 %v6564_v36 }
 0x5dd   : > { %5931 = vmatpush3.bf16.msra.mxu1 %v6549_v27  ;;  %5953 = vmatpush3.bf16.msra.mxu0 %v6565_v10 }
 0x5de   : > { %5932 = vmatprep.subr.bf16.mxu1 %v6550_v55  ;;  %5954 = vmatprep.subr.bf16.mxu0 %v6566_v37 }
 0x5e1   : > { %5933 = vmatpush3.bf16.msra.mxu1 %v6551_v30  ;;  %5955 = vmatpush3.bf16.msra.mxu0 %v6567_v38 }
 0x5e2   : > { %5934 = vmatprep.subr.bf16.mxu1 %v6552_v31  ;;  %5956 = vmatprep.subr.bf16.mxu0 %v6568_v39 }
 0x5e5   : > { %5935 = vmatpush3.bf16.msra.mxu1 %v6553_v34  ;;  %5957 = vmatpush3.bf16.msra.mxu0 %v6569_v40 }
 0x648   : > { %v4610_v44 = vpop.f32.mrf.mxu1  ;;  %v4651_v17 = vpop.f32.mrf.mxu0 }
 0x649   : > { %v4611_v45 = vadd.f32 %v4610_v44, %v4559_v42 }
 0x64a   : > { %v4612_v46 = vpop.f32.mrf.mxu1  ;;  %v4653_v47 = vpop.f32.mrf.mxu0 }
 0x64b   : > { %v4652_v20 = vadd.f32 %v4651_v17, %v4611_v45  ;;  %v4613_v48 = vadd.f32 %v4612_v46, %v4563_v43 }
 0x64c   : > { %v4614_v49 = vpop.f32.mrf.mxu1  ;;  %v4655_v50 = vpop.f32.mrf.mxu0 }
 0x64d   : > { %v4654_v51 = vadd.f32 %v4653_v47, %v4613_v48  ;;  %v4740_v52 = vmax.f32 %v4652_v20, 0.0 }
 0x64e   : > { %v4615_v53 = vpop.f32.mrf.mxu1  ;;  %v4656_v56 = vpop.f32.mrf.mxu0 }
 0x64f   : > { %v4741_v57 = vmax.f32 %v4654_v51, 0.0  ;;  %v4744_v61 = vpack.c.bf16 %v4740_v52, %v4740_v52 }
 0x651   : > { %v4745_v58 = vpack.c.bf16 %v4741_v57, %v4741_v57 }
 0x653   : > { %5037 = vmatprep.mubr.bf16.mxu1 %v4745_v58 }
 0x654   : > { %5038 = vmatmul.mubr.bf16.vlgmr.msra.gmra.mxu1 %v4744_v61 }
 0x688   : > { %v4692_v59 = vpop.f32.mrf.mxu1  ;;  %v4733_v62 = vpop.f32.mrf.mxu0 }
 0x689   : > { %v4693_v60 = vadd.f32 %v4692_v59, %v4567_v4 }
 0x68a   : > { %v4694_v0 = vpop.f32.mrf.mxu1  ;;  %v4735_v1 = vpop.f32.mrf.mxu0 }
 0x68b   : > { %v4734_v6 = vadd.f32 %v4733_v62, %v4693_v60  ;;  %v4695_v7 = vadd.f32 %v4694_v0, %v4571_v24 }
 0x68c   : > { %v4696_v8 = vpop.f32.mrf.mxu1  ;;  %v4737_v9 = vpop.f32.mrf.mxu0 }
 0x68d   : > { %v4736_v11 = vadd.f32 %v4735_v1, %v4695_v7  ;;  %v4742_v12 = vmax.f32 %v4734_v6, 0.0 }
 0x68e   : > { %v4697_v13 = vpop.f32.mrf.mxu1  ;;  %v4738_v14 = vpop.f32.mrf.mxu0 }
 0x68f   : > { %v4743_v15 = vmax.f32 %v4736_v11, 0.0  ;;  %v4746_v18 = vpack.c.bf16 %v4742_v12, %v4742_v12 }
 0x691   : > { %v4747_v16 = vpack.c.bf16 %v4743_v15, %v4743_v15 }
 0x693   : > { %5077 = vmatprep.mubr.bf16.mxu0 %v4747_v16 }
 0x694   : > { %5078 = vmatmul.mubr.bf16.vlgmr.msra.gmra.mxu0 %v4746_v18 }
 0x714   : > { %v5936_v63 = vpop.f32.mrf.mxu1 }
 0x716   : > { %v5937_v5 = vpop.f32.mrf.mxu1 }
 0x717   : > { %v5938_v22 = vadd.f32 %v5937_v5, %v5936_v63 }
 0x718   : > { %v5939_v25 = vpop.f32.mrf.mxu1 }
 0x719   : > { %v5040_v2 = vadd.f32 %v5938_v22, %v4812_v54 }
 0x71a   : > { %v5940_v19 = vpop.f32.mrf.mxu1 }
 0x754   : > { %v5958_v21 = vpop.f32.mrf.mxu0 }
 0x756   : > { %v5959_v23 = vpop.f32.mrf.mxu0 }
 0x757   : > { %v5960_v3 = vadd.f32 %v5959_v23, %v5958_v21 }
 0x758   : > { %v5961_v26 = vpop.f32.mrf.mxu0 }
 0x759   : > { %v5080_v27 = vadd.f32 %v5960_v3, %v5040_v2 }
 0x75a   : > { %v5962_v55 = vpop.f32.mrf.mxu0 }
 0x75b   : > { %v5085_v28 = vsub.f32 0.0, %v5080_v27 }
 0x75d   : > { %v5086_v29 = vmul.f32 1.442695, %v5085_v28 }
 0x75f   : > { %6574 = vpow2.f32 %v5086_v29 }
 0x76c   : > { %v6575_v30 = vpop.eup %6574 }
 0x76d   : > { %v5088_v31 = vadd.f32 1.0, %v6575_v30 }
 0x76f   : > { %6576 = vrcp.f32 %v5088_v31 }
 0x77c   : > { %v6577_v32 = vpop.eup %6576 }
 0x77d   : > { %5091 = vst [vmem:[#allocation24] sm:$0x1] %v6577_v32 }
 0x77e PF: > { %p6075_p6 = scmp.eq.s32.totalorder %s7129_s14, 4  ;;  %s7036_s15 = smov [#allocation23]  }
 0x77f   : > { %s5099_s18 = sshll.u32 %s7036_s15, 4  ;;  %s7037_s19 = smov [#allocation24]   ;;  %s5100_s18 = int_to_ptr.vmem [resolvable:$true] %s5099_s18 }
 0x780   : > { %s5110_s4 = sshll.u32 %s7037_s19, 4  ;;  %s6894_s21 = scalar_lea.vmem %s5100_s18, 128  ;;  %s5111_s4 = int_to_ptr.vmem [resolvable:$true] %s5110_s4 }
 0x781   : > { %p6895_p7 = scmp.ne.s32.totalorder %s5100_s18, %s6894_s21  ;;  %p6901_p8 = scmp.lt.s32.totalorder %s5100_s18, %s5100_s18 }
 0x782   : > { %p6902_p9 = scmp.lt.s32.totalorder %s6894_s21, %s6894_s21 }
 0x783   : > { %p6896_p2 = pnand %p6895_p7, %p6075_p6 }
 0x784   : > { %p6903_p10 = por %p6902_p9, %p6901_p8 }
 0x785   : > { %p6897_p5 = pneg %p6896_p2 }
 0x787   : > { %p6904_p11 = pnand %p6903_p10, %p6897_p5 }
 0x789   : > { %6907 = shalt.err (!%p6904_p11)
}
 0x78a   : > { %6009 = dma.vmem_to_hbm [thread:$0]  (%p6075_p6), %s5100_s18, 128, %s7767_s12, [#allocation5]  }
 0x78b   : > { %s6918_s22 = scalar_lea.vmem %s5111_s4, 16  ;;  %s6924_s2 = scalar_lea.vmem %s5111_s4, 32 }
 0x78c   : > { %p6919_p13 = scmp.ne.s32.totalorder %s5111_s4, %s6918_s22  ;;  %p6925_p4 = scmp.lt.s32.totalorder %s5111_s4, %s5111_s4 }
 0x78d   : > { %p6926_p1 = scmp.lt.s32.totalorder %s6924_s2, %s6918_s22 }
 0x78e   : > { %p6920_p3 = pnand %p6919_p13, %p6075_p6 }
 0x78f   : > { %p6927_p0 = por %p6926_p1, %p6925_p4 }
 0x790   : > { %p6921_p12 = pneg %p6920_p3 }
 0x792   : > { %p6928_p7 = pnand %p6927_p0, %p6921_p12 }
 0x794   : > { %6931 = shalt.err (!%p6928_p7)
}
 0x795   : > { %6011 = dma.vmem_to_hbm [thread:$0]  (%p6075_p6), %s5111_s4, 16, %s7768_s13, [#allocation25]  }
 0x796   : > { %6991 = dma.done.wait (%p6075_p6), [#allocation5], 128  }
 0x797   : > { %6993 = vsyncadd (%p6075_p6), [#allocation5], 4294967168 }
 0x798   : > { %6995 = dma.done.wait (%p6075_p6), [#allocation25], 16  }
 0x799   : > { %6997 = vsyncadd (%p6075_p6), [#allocation25], 4294967280 }
 0x79a PF: > { %p34_p2 = scmp.ge.s32.totalorder %s7240_s23, 7   ;;  %s7807_s25 = smov %s7004_s26 }
 0x79b   : > { %s7808_s26 = smov %s7008_s27  ;;  %s7809_s27 = smov %s7252_s29 }
 0x79c   : > { %s7810_s28 = smov %s7240_s23  ;;  %36 = sbr.rel (!%p34_p2) target bundleno = 18 (0x12), region = 174 }
 0x7a1   :  { %5127 = vsyncpa [#allocation4], 1 }
 0x7a2   :  { %5129 = vsyncpa [#allocation4 + $0x1], 1 }
 0x7a3   :  { %5130 = vsyncpa [#allocation7], 1 }
 0x7a4   :  { %5132 = vsyncpa [#allocation7 + $0x1], 1 }
 0x7a5   :  { %5133 = vsyncpa [#allocation10], 1 }
 0x7a6   :  { %5134 = vsyncpa [#allocation13], 1 }
 0x7a7   :  { %5135 = vsyncpa [#allocation16], 1 }
 0x7a8   :  { %5136 = vsyncpa [#allocation19], 1 }
 0x7a9   :  { %5137 = vsyncpa [#allocation22], 1 }
 0x7aa   :  { %5138 = vsyncpa [#allocation5], 1 }
 0x7ab   :  { %5140 = vsyncpa [#allocation5 + $0x1], 1 }
 0x7ac   :  { %5141 = vsyncpa [#allocation25], 1 }

</bundles_post_ra>
